<compile_context>
chip_gen: v5e
topology: v5e:2x2
jax: 0.10.0
libtpu: 0.0.40
codegen_flags: <defaults>
</compile_context>

<pallas_src>
import jax
import jax.numpy as jnp
import numpy as np
from jax import lax
from jax.experimental import pallas as pl
from jax.experimental.pallas import tpu as pltpu


_TAPS = tuple((dy, dx) for dy in range(3) for dx in range(3))


def _tap_masks(H, W, n_images):
    """(9, 1, n_images*H*W) f32 validity masks for the 3x3 taps on a
    lane-flattened [img0 | img1 | ...] slab (1 where the shifted source pixel
    is inside the image, 0 where it falls in the zero-padding border)."""
    hh, ww = np.meshgrid(np.arange(H), np.arange(W), indexing="ij")
    hh = np.tile(hh.reshape(-1), n_images)
    ww = np.tile(ww.reshape(-1), n_images)
    masks = []
    for dy, dx in _TAPS:
        valid = ((hh + dy - 1 >= 0) & (hh + dy - 1 < H)
                 & (ww + dx - 1 >= 0) & (ww + dx - 1 < W))
        masks.append(valid.astype(np.float32))
    return jnp.asarray(np.stack(masks)[:, None, :])


def df_module_pallas(x, y, kp):
    """DF_Module forward.  x, y: (N, dim_in, H, W) f32.  kp: folded params."""
    N, Din, H, W = x.shape
    S = H * W
    C = kp["wred"].shape[0]            # reduced channels = dim_in // 2
    Dout2 = kp["wout"].shape[0]        # 2 * dim_out (stacked add/diff heads)
    Dout = Dout2 // 2
    f32 = jnp.float32

    # Free reshapes (row-major contiguous): spatial flattened onto lanes.
    xs = x.reshape(N, Din, S).astype(f32)
    ys = y.reshape(N, Din, S).astype(f32)
    masks = _tap_masks(H, W, 2)                       # (9, 1, 2S)

    def kernel(x_ref, y_ref, m_ref, wred_ref, bred_ref,
               wc1_ref, bc1_ref, wc2_ref, bc2_ref, wc3_ref, bc3_ref,
               wout_ref, bout_ref, wfin_ref, bfin_ref, o_ref):

        def shift_lanes(a, off):
            # out[..., p] = a[..., (p + off) mod L]  (off is a static int)
            L = a.shape[-1]
            i = off % L
            if i == 0:
                return a
            return jnp.concatenate([a[..., i:], a[..., :i]], axis=-1)

        def conv3x3_relu(act, w_tap, bias):
            """Zero-padded 3x3 conv + bias + ReLU on a lane-flattened slab.
            act: (Cin, L); w_tap(t) -> (Cout, Cin); bias: (Cout, 1)."""
            L = act.shape[-1]
            acc = None
            for t, (dy, dx) in enumerate(_TAPS):
                off = (dy - 1) * W + (dx - 1)
                if off == 0:
                    tap = act                      # centre tap: no shift/mask
                else:
                    m = m_ref[t]                   # (1, 2S)
                    if m.shape[-1] != L:
                        m = m[:, :L]
                    tap = shift_lanes(act, off) * m
                d = jnp.dot(w_tap(t), tap, preferred_element_type=f32)
                acc = d if acc is None else acc + d
            return jnp.maximum(acc + bias, 0.0)

        # [x | y] along lanes: shared-weight convs batch both branches.
        xy = jnp.concatenate([x_ref[0], y_ref[0]], axis=-1)          # (Din, 2S)

        # reduction: 1x1 conv (BN folded) + ReLU
        r = jnp.maximum(
            jnp.dot(wred_ref[...], xy, preferred_element_type=f32)
            + bred_ref[...], 0.0)                                    # (C, 2S)

        # cat1 / cat2 stacked along sublanes: conv1 stacks outputs, conv2/3
        # use block-diagonal weights -> one dense chain instead of two.
        a1 = conv3x3_relu(r, lambda t: wc1_ref[t], bc1_ref[...])     # (2C, 2S)
        a2 = conv3x3_relu(a1, lambda t: wc2_ref[t], bc2_ref[...])    # (2C, 2S)
        a3 = conv3x3_relu(a2 + a1, lambda t: wc3_ref[t], bc3_ref[...])
        s = a1 + a2 + a3                                             # (2C, 2S)

        # Split x/y halves along lanes; rows 0:C belong to cat1 (add),
        # rows C:2C to cat2 (diff).  Select per-row without sublane slicing.
        s_l, s_r = s[:, :S], s[:, S:]                                # (2C, S)
        rows = lax.broadcasted_iota(jnp.int32, (2 * C, S), 0)
        h = jnp.where(rows < C, s_l + s_r, jnp.abs(s_l - s_r))       # (2C, S)

        # Both conv_out heads fused into one block-diagonal 1x1 dot.
        xo = jnp.maximum(
            jnp.dot(wout_ref[...], h, preferred_element_type=f32)
            + bout_ref[...], 0.0)                                    # (2*Dout, S)
        x_add = xo[:Dout]
        x_dif = xo[Dout:]

        # final 3x3 conv (BN folded) + ReLU, then residual add of x_add
        y_fin = conv3x3_relu(x_dif, lambda t: wfin_ref[t], bfin_ref[...])
        o_ref[0] = y_fin + x_add

    def _const_spec(a):
        zeros = (0,) * a.ndim
        return pl.BlockSpec(a.shape, lambda n, _z=zeros: _z)

    weight_args = (masks, kp["wred"], kp["bred"],
                   kp["wc1"], kp["bc1"], kp["wc2"], kp["bc2"],
                   kp["wc3"], kp["bc3"],
                   kp["wout"], kp["bout"], kp["wfin"], kp["bfin"])

    flops_per_image = (
        2 * (2 * S) * Din * C                      # reduction 1x1 (x and y)
        + 9 * 2 * (2 * S) * (2 * C) * C            # stacked conv1
        + 2 * 9 * 2 * (2 * S) * (2 * C) * (2 * C)  # block-diag conv2 + conv3
        + 2 * S * (2 * Dout) * (2 * C)             # fused conv_out heads
        + 9 * 2 * S * Dout * Dout)                 # final 3x3 conv
    bytes_accessed = 4 * (int(xs.size) + int(ys.size) + N * Dout * S
                          + sum(int(a.size) for a in weight_args))

    out = pl.pallas_call(
        kernel,
        out_shape=jax.ShapeDtypeStruct((N, Dout, S), f32),
        grid_spec=pltpu.PrefetchScalarGridSpec(
            num_scalar_prefetch=0,
            grid=(N,),
            in_specs=[
                pl.BlockSpec((1, Din, S), lambda n: (n, 0, 0)),
                pl.BlockSpec((1, Din, S), lambda n: (n, 0, 0)),
            ] + [_const_spec(a) for a in weight_args],
            out_specs=pl.BlockSpec((1, Dout, S), lambda n: (n, 0, 0)),
        ),
        compiler_params=pltpu.CompilerParams(
            dimension_semantics=("parallel",),
            vmem_limit_bytes=32 * 1024 * 1024),
        cost_estimate=pl.CostEstimate(
            flops=int(N * flops_per_image),
            transcendentals=0,
            bytes_accessed=int(bytes_accessed)),
    )(xs, ys, *weight_args)

    return out.reshape(N, Dout, H, W)


# ----------------------------------------------------------------------------
# Parameter handling: raw PyTorch-style params -> folded kernel params.
# ----------------------------------------------------------------------------

def init_raw_params(key, dim_in, dim_out):
    c = dim_in // 2
    keys = iter(jax.random.split(key, 48))

    def nrm(shape, scale=0.25):
        return scale * jax.random.normal(next(keys), shape, jnp.float32)

    def bn_params(n):
        g = 1.0 + 0.1 * jax.random.normal(next(keys), (n,), jnp.float32)
        b = 0.1 * jax.random.normal(next(keys), (n,), jnp.float32)
        m = 0.1 * jax.random.normal(next(keys), (n,), jnp.float32)
        v = 0.8 + 0.4 * jax.random.uniform(next(keys), (n,), jnp.float32)
        return (g, b, m, v)

    def cat_params(cin, cout):
        return dict(
            w1=nrm((cin, cin, 3, 3)), b1=nrm((cin,)),
            w2=nrm((cin, cin, 3, 3)), b2=nrm((cin,)),
            w3=nrm((cin, cin, 3, 3)), b3=nrm((cin,)),
            wo=nrm((cout, cin, 1, 1)), bo=nrm((cout,)),
            bn_o=bn_params(cout))

    return dict(
        red_w=nrm((c, dim_in, 1, 1)), red_b=nrm((c,)), red_bn=bn_params(c),
        cat1=cat_params(c, dim_out), cat2=cat_params(c, dim_out),
        fin_w=nrm((dim_out, dim_out, 3, 3)), fin_b=nrm((dim_out,)),
        fin_bn=bn_params(dim_out))


def fold_params(raw, eps=1e-5):
    """Fold eval-mode BN into conv weights; reshape 3x3 weights to per-tap
    (9, Cout, Cin) matrices; stack cat1/cat2 into block-diagonal taps."""
    def bn_fold(p):
        g, b, m, v = p
        s = g / jnp.sqrt(v + eps)
        return s, b - m * s

    def taps_w(w):  # (Cout, Cin, 3, 3) -> (9, Cout, Cin), t = kh*3 + kw
        co, ci = w.shape[0], w.shape[1]
        return jnp.transpose(w, (2, 3, 0, 1)).reshape(9, co, ci)

    s, t = bn_fold(raw["red_bn"])
    wred = s[:, None] * raw["red_w"][:, :, 0, 0]
    bred = (s * raw["red_b"] + t)[:, None]

    p1, p2 = raw["cat1"], raw["cat2"]

    def stack_out(wa, wb):          # -> (9, 2C, C): shared input, stacked out
        return jnp.concatenate([taps_w(wa), taps_w(wb)], axis=1)

    def block_diag_taps(wa, wb):    # -> (9, 2C, 2C)
        ta, tb = taps_w(wa), taps_w(wb)
        z = jnp.zeros_like(ta)
        top = jnp.concatenate([ta, z], axis=2)
        bot = jnp.concatenate([z, tb], axis=2)
        return jnp.concatenate([top, bot], axis=1)

    wc1 = stack_out(p1["w1"], p2["w1"])
    wc2 = block_diag_taps(p1["w2"], p2["w2"])
    wc3 = block_diag_taps(p1["w3"], p2["w3"])
    bc1 = jnp.concatenate([p1["b1"], p2["b1"]])[:, None]
    bc2 = jnp.concatenate([p1["b2"], p2["b2"]])[:, None]
    bc3 = jnp.concatenate([p1["b3"], p2["b3"]])[:, None]

    # conv_out heads (1x1 + BN folded), block-diagonal over [h_add ; h_dif].
    so1, to1 = bn_fold(p1["bn_o"])
    so2, to2 = bn_fold(p2["bn_o"])
    w1o = so1[:, None] * p1["wo"][:, :, 0, 0]          # (Dout, C)
    w2o = so2[:, None] * p2["wo"][:, :, 0, 0]
    zo = jnp.zeros_like(w1o)
    wout = jnp.concatenate(
        [jnp.concatenate([w1o, zo], axis=1),
         jnp.concatenate([zo, w2o], axis=1)], axis=0)   # (2*Dout, 2C)
    bout = jnp.concatenate([so1 * p1["bo"] + to1,
                            so2 * p2["bo"] + to2])[:, None]

    sf, tf = bn_fold(raw["fin_bn"])
    wfin = taps_w(sf[:, None, None, None] * raw["fin_w"])
    bfin = (sf * raw["fin_b"] + tf)[:, None]

    return dict(wred=wred, bred=bred,
                wc1=wc1, bc1=bc1, wc2=wc2, bc2=bc2, wc3=wc3, bc3=bc3,
                wout=wout, bout=bout, wfin=wfin, bfin=bfin)


# ----------------------------------------------------------------------------
# Pure-JAX reference (lax conv, eval-mode BN) operating on the RAW params.
# ----------------------------------------------------------------------------

def ref_forward(x, y, raw, eps=1e-5):
    def bnorm(z, p):
        g, b, m, v = p
        inv = g / jnp.sqrt(v + eps)
        return z * inv[None, :, None, None] + (b - m * inv)[None, :, None, None]

    def conv(z, w, b, padding):
        out = jax.lax.conv_general_dilated(
            z, w, (1, 1), padding,
            dimension_numbers=("NCHW", "OIHW", "NCHW"))
        return out + b[None, :, None, None]

    def cbr1(z, w, b, p):        # 1x1 conv + BN + ReLU
        return jax.nn.relu(bnorm(conv(z, w, b, "VALID"), p))

    def cr3(z, w, b):            # 3x3 conv + ReLU
        return jax.nn.relu(conv(z, w, b, "SAME"))

    def densecat(z1, z2, p, diff):
        a1 = cr3(z1, p["w1"], p["b1"])
        a2 = cr3(a1, p["w2"], p["b2"])
        a3 = cr3(a2 + a1, p["w3"], p["b3"])
        c1 = cr3(z2, p["w1"], p["b1"])
        c2 = cr3(c1, p["w2"], p["b2"])
        c3 = cr3(c2 + c1, p["w3"], p["b3"])
        h = a1 + a2 + a3
        g = c1 + c2 + c3
        h = jnp.abs(h - g) if diff else (h + g)
        return jax.nn.relu(bnorm(conv(h, p["wo"], p["bo"], "VALID"),
                                 p["bn_o"]))

    xr = cbr1(x, raw["red_w"], raw["red_b"], raw["red_bn"])
    yr = cbr1(y, raw["red_w"], raw["red_b"], raw["red_bn"])
    x_add = densecat(xr, yr, raw["cat1"], diff=False)
    x_dif = densecat(xr, yr, raw["cat2"], diff=True)
    fin = jax.nn.relu(bnorm(conv(x_dif, raw["fin_w"], raw["fin_b"], "SAME"),
                            raw["fin_bn"]))
    return fin + x_add


if __name__ == "__main__":
    key = jax.random.PRNGKey(0)
    kx, ky, kparams = jax.random.split(key, 3)

    N, DIM_IN, H, W = 2, 8, 16, 16      # reduction=True -> 4 channels inside
    DIM_OUT = 8

    x = jax.random.normal(kx, (N, DIM_IN, H, W), jnp.float32)
    y = jax.random.normal(ky, (N, DIM_IN, H, W), jnp.float32)
    raw = init_raw_params(kparams, DIM_IN, DIM_OUT)
    kp = fold_params(raw)

    out = jax.block_until_ready(df_module_pallas(x, y, kp))
    ref = jax.block_until_ready(ref_forward(x, y, raw))

    np.testing.assert_allclose(np.asarray(out), np.asarray(ref),
                               rtol=2e-4, atol=2e-4)
    assert out.shape == (N, DIM_OUT, H, W)
    print("KERNEL_OK")
</pallas_src>

<mosaic_0001>
module attributes {stable_mosaic.version = 11 : i64} {
  func.func @kernel(%arg0: i32, %arg1: memref<1x8x256xf32, #tpu.memory_space<vmem>>, %arg2: memref<1x8x256xf32, #tpu.memory_space<vmem>>, %arg3: memref<9x1x512xf32, #tpu.memory_space<vmem>>, %arg4: memref<4x8xf32, #tpu.memory_space<vmem>>, %arg5: memref<4x1xf32, #tpu.memory_space<vmem>>, %arg6: memref<9x8x4xf32, #tpu.memory_space<vmem>>, %arg7: memref<8x1xf32, #tpu.memory_space<vmem>>, %arg8: memref<9x8x8xf32, #tpu.memory_space<vmem>>, %arg9: memref<8x1xf32, #tpu.memory_space<vmem>>, %arg10: memref<9x8x8xf32, #tpu.memory_space<vmem>>, %arg11: memref<8x1xf32, #tpu.memory_space<vmem>>, %arg12: memref<16x8xf32, #tpu.memory_space<vmem>>, %arg13: memref<16x1xf32, #tpu.memory_space<vmem>>, %arg14: memref<9x8x8xf32, #tpu.memory_space<vmem>>, %arg15: memref<8x1xf32, #tpu.memory_space<vmem>>, %arg16: memref<1x8x256xf32, #tpu.memory_space<vmem>>) attributes {dimension_semantics = [#tpu.dimension_semantics<parallel>], iteration_bounds = array<i64: 2>, scalar_prefetch = 0 : i64, scratch_operands = 0 : i64, tpu.core_type = #tpu.core_type<tc>, window_params = [{transform_indices = @transform_0, window_bounds = array<i64: 1, 8, 256>}, {transform_indices = @transform_1, window_bounds = array<i64: 1, 8, 256>}, {pipeline_mode = #tpu.pipeline_mode<synchronous>, transform_indices = @transform_2, window_bounds = array<i64: 9, 1, 512>}, {pipeline_mode = #tpu.pipeline_mode<synchronous>, transform_indices = @transform_3, window_bounds = array<i64: 4, 8>}, {pipeline_mode = #tpu.pipeline_mode<synchronous>, transform_indices = @transform_4, window_bounds = array<i64: 4, 1>}, {pipeline_mode = #tpu.pipeline_mode<synchronous>, transform_indices = @transform_5, window_bounds = array<i64: 9, 8, 4>}, {pipeline_mode = #tpu.pipeline_mode<synchronous>, transform_indices = @transform_6, window_bounds = array<i64: 8, 1>}, {pipeline_mode = #tpu.pipeline_mode<synchronous>, transform_indices = @transform_7, window_bounds = array<i64: 9, 8, 8>}, {pipeline_mode = #tpu.pipeline_mode<synchronous>, transform_indices = @transform_8, window_bounds = array<i64: 8, 1>}, {pipeline_mode = #tpu.pipeline_mode<synchronous>, transform_indices = @transform_9, window_bounds = array<i64: 9, 8, 8>}, {pipeline_mode = #tpu.pipeline_mode<synchronous>, transform_indices = @transform_10, window_bounds = array<i64: 8, 1>}, {pipeline_mode = #tpu.pipeline_mode<synchronous>, transform_indices = @transform_11, window_bounds = array<i64: 16, 8>}, {pipeline_mode = #tpu.pipeline_mode<synchronous>, transform_indices = @transform_12, window_bounds = array<i64: 16, 1>}, {pipeline_mode = #tpu.pipeline_mode<synchronous>, transform_indices = @transform_13, window_bounds = array<i64: 9, 8, 8>}, {pipeline_mode = #tpu.pipeline_mode<synchronous>, transform_indices = @transform_14, window_bounds = array<i64: 8, 1>}, {transform_indices = @transform_15, window_bounds = array<i64: 1, 8, 256>}]} {
    %c0 = arith.constant 0 : index
    %c0_0 = arith.constant 0 : index
    %c0_1 = arith.constant 0 : index
    %0 = vector.load %arg1[%c0, %c0_0, %c0_1] : memref<1x8x256xf32, #tpu.memory_space<vmem>>, vector<1x8x256xf32>
    %1 = vector.shape_cast %0 : vector<1x8x256xf32> to vector<8x256xf32>
    %c0_2 = arith.constant 0 : index
    %c0_3 = arith.constant 0 : index
    %c0_4 = arith.constant 0 : index
    %2 = vector.load %arg2[%c0_2, %c0_3, %c0_4] : memref<1x8x256xf32, #tpu.memory_space<vmem>>, vector<1x8x256xf32>
    %3 = vector.shape_cast %2 : vector<1x8x256xf32> to vector<8x256xf32>
    %4 = tpu.concatenate %1, %3 in 1 : vector<8x256xf32>, vector<8x256xf32> -> vector<8x512xf32>
    %c0_5 = arith.constant 0 : index
    %c0_6 = arith.constant 0 : index
    %5 = vector.load %arg4[%c0_5, %c0_6] : memref<4x8xf32, #tpu.memory_space<vmem>>, vector<4x8xf32>
    %cst = arith.constant dense<0.000000e+00> : vector<4x512xf32>
    %6 = tpu.matmul %5, %4, %cst {dimension_numbers = #tpu.dot_dimension_numbers<[1], [0], [0], [1], [0, 0, 1, 1], [], []>} : vector<4x8xf32>, vector<8x512xf32>, vector<4x512xf32> -> vector<4x512xf32>
    %c0_7 = arith.constant 0 : index
    %c0_8 = arith.constant 0 : index
    %7 = vector.load %arg5[%c0_7, %c0_8] : memref<4x1xf32, #tpu.memory_space<vmem>>, vector<4x1xf32>
    %8 = vector.broadcast %7 : vector<4x1xf32> to vector<4x512xf32>
    %9 = arith.addf %6, %8 : vector<4x512xf32>
    %cst_9 = arith.constant 0.000000e+00 : f32
    %10 = vector.broadcast %cst_9 : f32 to vector<4x512xf32>
    %11 = arith.maximumf %9, %10 : vector<4x512xf32>
    %c0_10 = arith.constant 0 : index
    %c0_11 = arith.constant 0 : index
    %12 = vector.load %arg7[%c0_10, %c0_11] : memref<8x1xf32, #tpu.memory_space<vmem>>, vector<8x1xf32>
    %c0_12 = arith.constant 0 : index
    %c0_13 = arith.constant 0 : index
    %c0_14 = arith.constant 0 : index
    %13 = vector.load %arg3[%c0_12, %c0_13, %c0_14] : memref<9x1x512xf32, #tpu.memory_space<vmem>>, vector<1x1x512xf32>
    %14 = vector.shape_cast %13 : vector<1x1x512xf32> to vector<1x512xf32>
    %15 = vector.extract_strided_slice %11 {offsets = [0, 495], sizes = [4, 17], strides = [1, 1]} : vector<4x512xf32> to vector<4x17xf32>
    %16 = vector.extract_strided_slice %11 {offsets = [0, 0], sizes = [4, 495], strides = [1, 1]} : vector<4x512xf32> to vector<4x495xf32>
    %17 = tpu.concatenate %15, %16 in 1 : vector<4x17xf32>, vector<4x495xf32> -> vector<4x512xf32>
    %18 = vector.broadcast %14 : vector<1x512xf32> to vector<4x512xf32>
    %19 = arith.mulf %17, %18 : vector<4x512xf32>
    %c0_15 = arith.constant 0 : index
    %c0_16 = arith.constant 0 : index
    %c0_17 = arith.constant 0 : index
    %20 = vector.load %arg6[%c0_15, %c0_16, %c0_17] : memref<9x8x4xf32, #tpu.memory_space<vmem>>, vector<1x8x4xf32>
    %21 = vector.shape_cast %20 : vector<1x8x4xf32> to vector<8x4xf32>
    %cst_18 = arith.constant dense<0.000000e+00> : vector<8x512xf32>
    %22 = tpu.matmul %21, %19, %cst_18 {dimension_numbers = #tpu.dot_dimension_numbers<[1], [0], [0], [1], [0, 0, 1, 1], [], []>} : vector<8x4xf32>, vector<4x512xf32>, vector<8x512xf32> -> vector<8x512xf32>
    %c1 = arith.constant 1 : index
    %c0_19 = arith.constant 0 : index
    %c0_20 = arith.constant 0 : index
    %23 = vector.load %arg3[%c1, %c0_19, %c0_20] : memref<9x1x512xf32, #tpu.memory_space<vmem>>, vector<1x1x512xf32>
    %24 = vector.shape_cast %23 : vector<1x1x512xf32> to vector<1x512xf32>
    %25 = vector.extract_strided_slice %11 {offsets = [0, 496], sizes = [4, 16], strides = [1, 1]} : vector<4x512xf32> to vector<4x16xf32>
    %26 = vector.extract_strided_slice %11 {offsets = [0, 0], sizes = [4, 496], strides = [1, 1]} : vector<4x512xf32> to vector<4x496xf32>
    %27 = tpu.concatenate %25, %26 in 1 : vector<4x16xf32>, vector<4x496xf32> -> vector<4x512xf32>
    %28 = vector.broadcast %24 : vector<1x512xf32> to vector<4x512xf32>
    %29 = arith.mulf %27, %28 : vector<4x512xf32>
    %c1_21 = arith.constant 1 : index
    %c0_22 = arith.constant 0 : index
    %c0_23 = arith.constant 0 : index
    %30 = vector.load %arg6[%c1_21, %c0_22, %c0_23] : memref<9x8x4xf32, #tpu.memory_space<vmem>>, vector<1x8x4xf32>
    %31 = vector.shape_cast %30 : vector<1x8x4xf32> to vector<8x4xf32>
    %cst_24 = arith.constant dense<0.000000e+00> : vector<8x512xf32>
    %32 = tpu.matmul %31, %29, %cst_24 {dimension_numbers = #tpu.dot_dimension_numbers<[1], [0], [0], [1], [0, 0, 1, 1], [], []>} : vector<8x4xf32>, vector<4x512xf32>, vector<8x512xf32> -> vector<8x512xf32>
    %33 = arith.addf %22, %32 : vector<8x512xf32>
    %c2 = arith.constant 2 : index
    %c0_25 = arith.constant 0 : index
    %c0_26 = arith.constant 0 : index
    %34 = vector.load %arg3[%c2, %c0_25, %c0_26] : memref<9x1x512xf32, #tpu.memory_space<vmem>>, vector<1x1x512xf32>
    %35 = vector.shape_cast %34 : vector<1x1x512xf32> to vector<1x512xf32>
    %36 = vector.extract_strided_slice %11 {offsets = [0, 497], sizes = [4, 15], strides = [1, 1]} : vector<4x512xf32> to vector<4x15xf32>
    %37 = vector.extract_strided_slice %11 {offsets = [0, 0], sizes = [4, 497], strides = [1, 1]} : vector<4x512xf32> to vector<4x497xf32>
    %38 = tpu.concatenate %36, %37 in 1 : vector<4x15xf32>, vector<4x497xf32> -> vector<4x512xf32>
    %39 = vector.broadcast %35 : vector<1x512xf32> to vector<4x512xf32>
    %40 = arith.mulf %38, %39 : vector<4x512xf32>
    %c2_27 = arith.constant 2 : index
    %c0_28 = arith.constant 0 : index
    %c0_29 = arith.constant 0 : index
    %41 = vector.load %arg6[%c2_27, %c0_28, %c0_29] : memref<9x8x4xf32, #tpu.memory_space<vmem>>, vector<1x8x4xf32>
    %42 = vector.shape_cast %41 : vector<1x8x4xf32> to vector<8x4xf32>
    %cst_30 = arith.constant dense<0.000000e+00> : vector<8x512xf32>
    %43 = tpu.matmul %42, %40, %cst_30 {dimension_numbers = #tpu.dot_dimension_numbers<[1], [0], [0], [1], [0, 0, 1, 1], [], []>} : vector<8x4xf32>, vector<4x512xf32>, vector<8x512xf32> -> vector<8x512xf32>
    %44 = arith.addf %33, %43 : vector<8x512xf32>
    %c3 = arith.constant 3 : index
    %c0_31 = arith.constant 0 : index
    %c0_32 = arith.constant 0 : index
    %45 = vector.load %arg3[%c3, %c0_31, %c0_32] : memref<9x1x512xf32, #tpu.memory_space<vmem>>, vector<1x1x512xf32>
    %46 = vector.shape_cast %45 : vector<1x1x512xf32> to vector<1x512xf32>
    %47 = vector.extract_strided_slice %11 {offsets = [0, 511], sizes = [4, 1], strides = [1, 1]} : vector<4x512xf32> to vector<4x1xf32>
    %48 = vector.extract_strided_slice %11 {offsets = [0, 0], sizes = [4, 511], strides = [1, 1]} : vector<4x512xf32> to vector<4x511xf32>
    %49 = tpu.concatenate %47, %48 in 1 : vector<4x1xf32>, vector<4x511xf32> -> vector<4x512xf32>
    %50 = vector.broadcast %46 : vector<1x512xf32> to vector<4x512xf32>
    %51 = arith.mulf %49, %50 : vector<4x512xf32>
    %c3_33 = arith.constant 3 : index
    %c0_34 = arith.constant 0 : index
    %c0_35 = arith.constant 0 : index
    %52 = vector.load %arg6[%c3_33, %c0_34, %c0_35] : memref<9x8x4xf32, #tpu.memory_space<vmem>>, vector<1x8x4xf32>
    %53 = vector.shape_cast %52 : vector<1x8x4xf32> to vector<8x4xf32>
    %cst_36 = arith.constant dense<0.000000e+00> : vector<8x512xf32>
    %54 = tpu.matmul %53, %51, %cst_36 {dimension_numbers = #tpu.dot_dimension_numbers<[1], [0], [0], [1], [0, 0, 1, 1], [], []>} : vector<8x4xf32>, vector<4x512xf32>, vector<8x512xf32> -> vector<8x512xf32>
    %55 = arith.addf %44, %54 : vector<8x512xf32>
    %c4 = arith.constant 4 : index
    %c0_37 = arith.constant 0 : index
    %c0_38 = arith.constant 0 : index
    %56 = vector.load %arg6[%c4, %c0_37, %c0_38] : memref<9x8x4xf32, #tpu.memory_space<vmem>>, vector<1x8x4xf32>
    %57 = vector.shape_cast %56 : vector<1x8x4xf32> to vector<8x4xf32>
    %cst_39 = arith.constant dense<0.000000e+00> : vector<8x512xf32>
    %58 = tpu.matmul %57, %11, %cst_39 {dimension_numbers = #tpu.dot_dimension_numbers<[1], [0], [0], [1], [0, 0, 1, 1], [], []>} : vector<8x4xf32>, vector<4x512xf32>, vector<8x512xf32> -> vector<8x512xf32>
    %59 = arith.addf %55, %58 : vector<8x512xf32>
    %c5 = arith.constant 5 : index
    %c0_40 = arith.constant 0 : index
    %c0_41 = arith.constant 0 : index
    %60 = vector.load %arg3[%c5, %c0_40, %c0_41] : memref<9x1x512xf32, #tpu.memory_space<vmem>>, vector<1x1x512xf32>
    %61 = vector.shape_cast %60 : vector<1x1x512xf32> to vector<1x512xf32>
    %62 = vector.extract_strided_slice %11 {offsets = [0, 1], sizes = [4, 511], strides = [1, 1]} : vector<4x512xf32> to vector<4x511xf32>
    %63 = vector.extract_strided_slice %11 {offsets = [0, 0], sizes = [4, 1], strides = [1, 1]} : vector<4x512xf32> to vector<4x1xf32>
    %64 = tpu.concatenate %62, %63 in 1 : vector<4x511xf32>, vector<4x1xf32> -> vector<4x512xf32>
    %65 = vector.broadcast %61 : vector<1x512xf32> to vector<4x512xf32>
    %66 = arith.mulf %64, %65 : vector<4x512xf32>
    %c5_42 = arith.constant 5 : index
    %c0_43 = arith.constant 0 : index
    %c0_44 = arith.constant 0 : index
    %67 = vector.load %arg6[%c5_42, %c0_43, %c0_44] : memref<9x8x4xf32, #tpu.memory_space<vmem>>, vector<1x8x4xf32>
    %68 = vector.shape_cast %67 : vector<1x8x4xf32> to vector<8x4xf32>
    %cst_45 = arith.constant dense<0.000000e+00> : vector<8x512xf32>
    %69 = tpu.matmul %68, %66, %cst_45 {dimension_numbers = #tpu.dot_dimension_numbers<[1], [0], [0], [1], [0, 0, 1, 1], [], []>} : vector<8x4xf32>, vector<4x512xf32>, vector<8x512xf32> -> vector<8x512xf32>
    %70 = arith.addf %59, %69 : vector<8x512xf32>
    %c6 = arith.constant 6 : index
    %c0_46 = arith.constant 0 : index
    %c0_47 = arith.constant 0 : index
    %71 = vector.load %arg3[%c6, %c0_46, %c0_47] : memref<9x1x512xf32, #tpu.memory_space<vmem>>, vector<1x1x512xf32>
    %72 = vector.shape_cast %71 : vector<1x1x512xf32> to vector<1x512xf32>
    %73 = vector.extract_strided_slice %11 {offsets = [0, 15], sizes = [4, 497], strides = [1, 1]} : vector<4x512xf32> to vector<4x497xf32>
    %74 = vector.extract_strided_slice %11 {offsets = [0, 0], sizes = [4, 15], strides = [1, 1]} : vector<4x512xf32> to vector<4x15xf32>
    %75 = tpu.concatenate %73, %74 in 1 : vector<4x497xf32>, vector<4x15xf32> -> vector<4x512xf32>
    %76 = vector.broadcast %72 : vector<1x512xf32> to vector<4x512xf32>
    %77 = arith.mulf %75, %76 : vector<4x512xf32>
    %c6_48 = arith.constant 6 : index
    %c0_49 = arith.constant 0 : index
    %c0_50 = arith.constant 0 : index
    %78 = vector.load %arg6[%c6_48, %c0_49, %c0_50] : memref<9x8x4xf32, #tpu.memory_space<vmem>>, vector<1x8x4xf32>
    %79 = vector.shape_cast %78 : vector<1x8x4xf32> to vector<8x4xf32>
    %cst_51 = arith.constant dense<0.000000e+00> : vector<8x512xf32>
    %80 = tpu.matmul %79, %77, %cst_51 {dimension_numbers = #tpu.dot_dimension_numbers<[1], [0], [0], [1], [0, 0, 1, 1], [], []>} : vector<8x4xf32>, vector<4x512xf32>, vector<8x512xf32> -> vector<8x512xf32>
    %81 = arith.addf %70, %80 : vector<8x512xf32>
    %c7 = arith.constant 7 : index
    %c0_52 = arith.constant 0 : index
    %c0_53 = arith.constant 0 : index
    %82 = vector.load %arg3[%c7, %c0_52, %c0_53] : memref<9x1x512xf32, #tpu.memory_space<vmem>>, vector<1x1x512xf32>
    %83 = vector.shape_cast %82 : vector<1x1x512xf32> to vector<1x512xf32>
    %84 = vector.extract_strided_slice %11 {offsets = [0, 16], sizes = [4, 496], strides = [1, 1]} : vector<4x512xf32> to vector<4x496xf32>
    %85 = vector.extract_strided_slice %11 {offsets = [0, 0], sizes = [4, 16], strides = [1, 1]} : vector<4x512xf32> to vector<4x16xf32>
    %86 = tpu.concatenate %84, %85 in 1 : vector<4x496xf32>, vector<4x16xf32> -> vector<4x512xf32>
    %87 = vector.broadcast %83 : vector<1x512xf32> to vector<4x512xf32>
    %88 = arith.mulf %86, %87 : vector<4x512xf32>
    %c7_54 = arith.constant 7 : index
    %c0_55 = arith.constant 0 : index
    %c0_56 = arith.constant 0 : index
    %89 = vector.load %arg6[%c7_54, %c0_55, %c0_56] : memref<9x8x4xf32, #tpu.memory_space<vmem>>, vector<1x8x4xf32>
    %90 = vector.shape_cast %89 : vector<1x8x4xf32> to vector<8x4xf32>
    %cst_57 = arith.constant dense<0.000000e+00> : vector<8x512xf32>
    %91 = tpu.matmul %90, %88, %cst_57 {dimension_numbers = #tpu.dot_dimension_numbers<[1], [0], [0], [1], [0, 0, 1, 1], [], []>} : vector<8x4xf32>, vector<4x512xf32>, vector<8x512xf32> -> vector<8x512xf32>
    %92 = arith.addf %81, %91 : vector<8x512xf32>
    %c8 = arith.constant 8 : index
    %c0_58 = arith.constant 0 : index
    %c0_59 = arith.constant 0 : index
    %93 = vector.load %arg3[%c8, %c0_58, %c0_59] : memref<9x1x512xf32, #tpu.memory_space<vmem>>, vector<1x1x512xf32>
    %94 = vector.shape_cast %93 : vector<1x1x512xf32> to vector<1x512xf32>
    %95 = vector.extract_strided_slice %11 {offsets = [0, 17], sizes = [4, 495], strides = [1, 1]} : vector<4x512xf32> to vector<4x495xf32>
    %96 = vector.extract_strided_slice %11 {offsets = [0, 0], sizes = [4, 17], strides = [1, 1]} : vector<4x512xf32> to vector<4x17xf32>
    %97 = tpu.concatenate %95, %96 in 1 : vector<4x495xf32>, vector<4x17xf32> -> vector<4x512xf32>
    %98 = vector.broadcast %94 : vector<1x512xf32> to vector<4x512xf32>
    %99 = arith.mulf %97, %98 : vector<4x512xf32>
    %c8_60 = arith.constant 8 : index
    %c0_61 = arith.constant 0 : index
    %c0_62 = arith.constant 0 : index
    %100 = vector.load %arg6[%c8_60, %c0_61, %c0_62] : memref<9x8x4xf32, #tpu.memory_space<vmem>>, vector<1x8x4xf32>
    %101 = vector.shape_cast %100 : vector<1x8x4xf32> to vector<8x4xf32>
    %cst_63 = arith.constant dense<0.000000e+00> : vector<8x512xf32>
    %102 = tpu.matmul %101, %99, %cst_63 {dimension_numbers = #tpu.dot_dimension_numbers<[1], [0], [0], [1], [0, 0, 1, 1], [], []>} : vector<8x4xf32>, vector<4x512xf32>, vector<8x512xf32> -> vector<8x512xf32>
    %103 = arith.addf %92, %102 : vector<8x512xf32>
    %104 = vector.broadcast %12 : vector<8x1xf32> to vector<8x512xf32>
    %105 = arith.addf %103, %104 : vector<8x512xf32>
    %cst_64 = arith.constant 0.000000e+00 : f32
    %106 = vector.broadcast %cst_64 : f32 to vector<8x512xf32>
    %107 = arith.maximumf %105, %106 : vector<8x512xf32>
    %c0_65 = arith.constant 0 : index
    %c0_66 = arith.constant 0 : index
    %108 = vector.load %arg9[%c0_65, %c0_66] : memref<8x1xf32, #tpu.memory_space<vmem>>, vector<8x1xf32>
    %c0_67 = arith.constant 0 : index
    %c0_68 = arith.constant 0 : index
    %c0_69 = arith.constant 0 : index
    %109 = vector.load %arg3[%c0_67, %c0_68, %c0_69] : memref<9x1x512xf32, #tpu.memory_space<vmem>>, vector<1x1x512xf32>
    %110 = vector.shape_cast %109 : vector<1x1x512xf32> to vector<1x512xf32>
    %111 = vector.extract_strided_slice %107 {offsets = [0, 495], sizes = [8, 17], strides = [1, 1]} : vector<8x512xf32> to vector<8x17xf32>
    %112 = vector.extract_strided_slice %107 {offsets = [0, 0], sizes = [8, 495], strides = [1, 1]} : vector<8x512xf32> to vector<8x495xf32>
    %113 = tpu.concatenate %111, %112 in 1 : vector<8x17xf32>, vector<8x495xf32> -> vector<8x512xf32>
    %114 = vector.broadcast %110 : vector<1x512xf32> to vector<8x512xf32>
    %115 = arith.mulf %113, %114 : vector<8x512xf32>
    %c0_70 = arith.constant 0 : index
    %c0_71 = arith.constant 0 : index
    %c0_72 = arith.constant 0 : index
    %116 = vector.load %arg8[%c0_70, %c0_71, %c0_72] : memref<9x8x8xf32, #tpu.memory_space<vmem>>, vector<1x8x8xf32>
    %117 = vector.shape_cast %116 : vector<1x8x8xf32> to vector<8x8xf32>
    %cst_73 = arith.constant dense<0.000000e+00> : vector<8x512xf32>
    %118 = tpu.matmul %117, %115, %cst_73 {dimension_numbers = #tpu.dot_dimension_numbers<[1], [0], [0], [1], [0, 0, 1, 1], [], []>} : vector<8x8xf32>, vector<8x512xf32>, vector<8x512xf32> -> vector<8x512xf32>
    %c1_74 = arith.constant 1 : index
    %c0_75 = arith.constant 0 : index
    %c0_76 = arith.constant 0 : index
    %119 = vector.load %arg3[%c1_74, %c0_75, %c0_76] : memref<9x1x512xf32, #tpu.memory_space<vmem>>, vector<1x1x512xf32>
    %120 = vector.shape_cast %119 : vector<1x1x512xf32> to vector<1x512xf32>
    %121 = vector.extract_strided_slice %107 {offsets = [0, 496], sizes = [8, 16], strides = [1, 1]} : vector<8x512xf32> to vector<8x16xf32>
    %122 = vector.extract_strided_slice %107 {offsets = [0, 0], sizes = [8, 496], strides = [1, 1]} : vector<8x512xf32> to vector<8x496xf32>
    %123 = tpu.concatenate %121, %122 in 1 : vector<8x16xf32>, vector<8x496xf32> -> vector<8x512xf32>
    %124 = vector.broadcast %120 : vector<1x512xf32> to vector<8x512xf32>
    %125 = arith.mulf %123, %124 : vector<8x512xf32>
    %c1_77 = arith.constant 1 : index
    %c0_78 = arith.constant 0 : index
    %c0_79 = arith.constant 0 : index
    %126 = vector.load %arg8[%c1_77, %c0_78, %c0_79] : memref<9x8x8xf32, #tpu.memory_space<vmem>>, vector<1x8x8xf32>
    %127 = vector.shape_cast %126 : vector<1x8x8xf32> to vector<8x8xf32>
    %cst_80 = arith.constant dense<0.000000e+00> : vector<8x512xf32>
    %128 = tpu.matmul %127, %125, %cst_80 {dimension_numbers = #tpu.dot_dimension_numbers<[1], [0], [0], [1], [0, 0, 1, 1], [], []>} : vector<8x8xf32>, vector<8x512xf32>, vector<8x512xf32> -> vector<8x512xf32>
    %129 = arith.addf %118, %128 : vector<8x512xf32>
    %c2_81 = arith.constant 2 : index
    %c0_82 = arith.constant 0 : index
    %c0_83 = arith.constant 0 : index
    %130 = vector.load %arg3[%c2_81, %c0_82, %c0_83] : memref<9x1x512xf32, #tpu.memory_space<vmem>>, vector<1x1x512xf32>
    %131 = vector.shape_cast %130 : vector<1x1x512xf32> to vector<1x512xf32>
    %132 = vector.extract_strided_slice %107 {offsets = [0, 497], sizes = [8, 15], strides = [1, 1]} : vector<8x512xf32> to vector<8x15xf32>
    %133 = vector.extract_strided_slice %107 {offsets = [0, 0], sizes = [8, 497], strides = [1, 1]} : vector<8x512xf32> to vector<8x497xf32>
    %134 = tpu.concatenate %132, %133 in 1 : vector<8x15xf32>, vector<8x497xf32> -> vector<8x512xf32>
    %135 = vector.broadcast %131 : vector<1x512xf32> to vector<8x512xf32>
    %136 = arith.mulf %134, %135 : vector<8x512xf32>
    %c2_84 = arith.constant 2 : index
    %c0_85 = arith.constant 0 : index
    %c0_86 = arith.constant 0 : index
    %137 = vector.load %arg8[%c2_84, %c0_85, %c0_86] : memref<9x8x8xf32, #tpu.memory_space<vmem>>, vector<1x8x8xf32>
    %138 = vector.shape_cast %137 : vector<1x8x8xf32> to vector<8x8xf32>
    %cst_87 = arith.constant dense<0.000000e+00> : vector<8x512xf32>
    %139 = tpu.matmul %138, %136, %cst_87 {dimension_numbers = #tpu.dot_dimension_numbers<[1], [0], [0], [1], [0, 0, 1, 1], [], []>} : vector<8x8xf32>, vector<8x512xf32>, vector<8x512xf32> -> vector<8x512xf32>
    %140 = arith.addf %129, %139 : vector<8x512xf32>
    %c3_88 = arith.constant 3 : index
    %c0_89 = arith.constant 0 : index
    %c0_90 = arith.constant 0 : index
    %141 = vector.load %arg3[%c3_88, %c0_89, %c0_90] : memref<9x1x512xf32, #tpu.memory_space<vmem>>, vector<1x1x512xf32>
    %142 = vector.shape_cast %141 : vector<1x1x512xf32> to vector<1x512xf32>
    %143 = vector.extract_strided_slice %107 {offsets = [0, 511], sizes = [8, 1], strides = [1, 1]} : vector<8x512xf32> to vector<8x1xf32>
    %144 = vector.extract_strided_slice %107 {offsets = [0, 0], sizes = [8, 511], strides = [1, 1]} : vector<8x512xf32> to vector<8x511xf32>
    %145 = tpu.concatenate %143, %144 in 1 : vector<8x1xf32>, vector<8x511xf32> -> vector<8x512xf32>
    %146 = vector.broadcast %142 : vector<1x512xf32> to vector<8x512xf32>
    %147 = arith.mulf %145, %146 : vector<8x512xf32>
    %c3_91 = arith.constant 3 : index
    %c0_92 = arith.constant 0 : index
    %c0_93 = arith.constant 0 : index
    %148 = vector.load %arg8[%c3_91, %c0_92, %c0_93] : memref<9x8x8xf32, #tpu.memory_space<vmem>>, vector<1x8x8xf32>
    %149 = vector.shape_cast %148 : vector<1x8x8xf32> to vector<8x8xf32>
    %cst_94 = arith.constant dense<0.000000e+00> : vector<8x512xf32>
    %150 = tpu.matmul %149, %147, %cst_94 {dimension_numbers = #tpu.dot_dimension_numbers<[1], [0], [0], [1], [0, 0, 1, 1], [], []>} : vector<8x8xf32>, vector<8x512xf32>, vector<8x512xf32> -> vector<8x512xf32>
    %151 = arith.addf %140, %150 : vector<8x512xf32>
    %c4_95 = arith.constant 4 : index
    %c0_96 = arith.constant 0 : index
    %c0_97 = arith.constant 0 : index
    %152 = vector.load %arg8[%c4_95, %c0_96, %c0_97] : memref<9x8x8xf32, #tpu.memory_space<vmem>>, vector<1x8x8xf32>
    %153 = vector.shape_cast %152 : vector<1x8x8xf32> to vector<8x8xf32>
    %cst_98 = arith.constant dense<0.000000e+00> : vector<8x512xf32>
    %154 = tpu.matmul %153, %107, %cst_98 {dimension_numbers = #tpu.dot_dimension_numbers<[1], [0], [0], [1], [0, 0, 1, 1], [], []>} : vector<8x8xf32>, vector<8x512xf32>, vector<8x512xf32> -> vector<8x512xf32>
    %155 = arith.addf %151, %154 : vector<8x512xf32>
    %c5_99 = arith.constant 5 : index
    %c0_100 = arith.constant 0 : index
    %c0_101 = arith.constant 0 : index
    %156 = vector.load %arg3[%c5_99, %c0_100, %c0_101] : memref<9x1x512xf32, #tpu.memory_space<vmem>>, vector<1x1x512xf32>
    %157 = vector.shape_cast %156 : vector<1x1x512xf32> to vector<1x512xf32>
    %158 = vector.extract_strided_slice %107 {offsets = [0, 1], sizes = [8, 511], strides = [1, 1]} : vector<8x512xf32> to vector<8x511xf32>
    %159 = vector.extract_strided_slice %107 {offsets = [0, 0], sizes = [8, 1], strides = [1, 1]} : vector<8x512xf32> to vector<8x1xf32>
    %160 = tpu.concatenate %158, %159 in 1 : vector<8x511xf32>, vector<8x1xf32> -> vector<8x512xf32>
    %161 = vector.broadcast %157 : vector<1x512xf32> to vector<8x512xf32>
    %162 = arith.mulf %160, %161 : vector<8x512xf32>
    %c5_102 = arith.constant 5 : index
    %c0_103 = arith.constant 0 : index
    %c0_104 = arith.constant 0 : index
    %163 = vector.load %arg8[%c5_102, %c0_103, %c0_104] : memref<9x8x8xf32, #tpu.memory_space<vmem>>, vector<1x8x8xf32>
    %164 = vector.shape_cast %163 : vector<1x8x8xf32> to vector<8x8xf32>
    %cst_105 = arith.constant dense<0.000000e+00> : vector<8x512xf32>
    %165 = tpu.matmul %164, %162, %cst_105 {dimension_numbers = #tpu.dot_dimension_numbers<[1], [0], [0], [1], [0, 0, 1, 1], [], []>} : vector<8x8xf32>, vector<8x512xf32>, vector<8x512xf32> -> vector<8x512xf32>
    %166 = arith.addf %155, %165 : vector<8x512xf32>
    %c6_106 = arith.constant 6 : index
    %c0_107 = arith.constant 0 : index
    %c0_108 = arith.constant 0 : index
    %167 = vector.load %arg3[%c6_106, %c0_107, %c0_108] : memref<9x1x512xf32, #tpu.memory_space<vmem>>, vector<1x1x512xf32>
    %168 = vector.shape_cast %167 : vector<1x1x512xf32> to vector<1x512xf32>
    %169 = vector.extract_strided_slice %107 {offsets = [0, 15], sizes = [8, 497], strides = [1, 1]} : vector<8x512xf32> to vector<8x497xf32>
    %170 = vector.extract_strided_slice %107 {offsets = [0, 0], sizes = [8, 15], strides = [1, 1]} : vector<8x512xf32> to vector<8x15xf32>
    %171 = tpu.concatenate %169, %170 in 1 : vector<8x497xf32>, vector<8x15xf32> -> vector<8x512xf32>
    %172 = vector.broadcast %168 : vector<1x512xf32> to vector<8x512xf32>
    %173 = arith.mulf %171, %172 : vector<8x512xf32>
    %c6_109 = arith.constant 6 : index
    %c0_110 = arith.constant 0 : index
    %c0_111 = arith.constant 0 : index
    %174 = vector.load %arg8[%c6_109, %c0_110, %c0_111] : memref<9x8x8xf32, #tpu.memory_space<vmem>>, vector<1x8x8xf32>
    %175 = vector.shape_cast %174 : vector<1x8x8xf32> to vector<8x8xf32>
    %cst_112 = arith.constant dense<0.000000e+00> : vector<8x512xf32>
    %176 = tpu.matmul %175, %173, %cst_112 {dimension_numbers = #tpu.dot_dimension_numbers<[1], [0], [0], [1], [0, 0, 1, 1], [], []>} : vector<8x8xf32>, vector<8x512xf32>, vector<8x512xf32> -> vector<8x512xf32>
    %177 = arith.addf %166, %176 : vector<8x512xf32>
    %c7_113 = arith.constant 7 : index
    %c0_114 = arith.constant 0 : index
    %c0_115 = arith.constant 0 : index
    %178 = vector.load %arg3[%c7_113, %c0_114, %c0_115] : memref<9x1x512xf32, #tpu.memory_space<vmem>>, vector<1x1x512xf32>
    %179 = vector.shape_cast %178 : vector<1x1x512xf32> to vector<1x512xf32>
    %180 = vector.extract_strided_slice %107 {offsets = [0, 16], sizes = [8, 496], strides = [1, 1]} : vector<8x512xf32> to vector<8x496xf32>
    %181 = vector.extract_strided_slice %107 {offsets = [0, 0], sizes = [8, 16], strides = [1, 1]} : vector<8x512xf32> to vector<8x16xf32>
    %182 = tpu.concatenate %180, %181 in 1 : vector<8x496xf32>, vector<8x16xf32> -> vector<8x512xf32>
    %183 = vector.broadcast %179 : vector<1x512xf32> to vector<8x512xf32>
    %184 = arith.mulf %182, %183 : vector<8x512xf32>
    %c7_116 = arith.constant 7 : index
    %c0_117 = arith.constant 0 : index
    %c0_118 = arith.constant 0 : index
    %185 = vector.load %arg8[%c7_116, %c0_117, %c0_118] : memref<9x8x8xf32, #tpu.memory_space<vmem>>, vector<1x8x8xf32>
    %186 = vector.shape_cast %185 : vector<1x8x8xf32> to vector<8x8xf32>
    %cst_119 = arith.constant dense<0.000000e+00> : vector<8x512xf32>
    %187 = tpu.matmul %186, %184, %cst_119 {dimension_numbers = #tpu.dot_dimension_numbers<[1], [0], [0], [1], [0, 0, 1, 1], [], []>} : vector<8x8xf32>, vector<8x512xf32>, vector<8x512xf32> -> vector<8x512xf32>
    %188 = arith.addf %177, %187 : vector<8x512xf32>
    %c8_120 = arith.constant 8 : index
    %c0_121 = arith.constant 0 : index
    %c0_122 = arith.constant 0 : index
    %189 = vector.load %arg3[%c8_120, %c0_121, %c0_122] : memref<9x1x512xf32, #tpu.memory_space<vmem>>, vector<1x1x512xf32>
    %190 = vector.shape_cast %189 : vector<1x1x512xf32> to vector<1x512xf32>
    %191 = vector.extract_strided_slice %107 {offsets = [0, 17], sizes = [8, 495], strides = [1, 1]} : vector<8x512xf32> to vector<8x495xf32>
    %192 = vector.extract_strided_slice %107 {offsets = [0, 0], sizes = [8, 17], strides = [1, 1]} : vector<8x512xf32> to vector<8x17xf32>
    %193 = tpu.concatenate %191, %192 in 1 : vector<8x495xf32>, vector<8x17xf32> -> vector<8x512xf32>
    %194 = vector.broadcast %190 : vector<1x512xf32> to vector<8x512xf32>
    %195 = arith.mulf %193, %194 : vector<8x512xf32>
    %c8_123 = arith.constant 8 : index
    %c0_124 = arith.constant 0 : index
    %c0_125 = arith.constant 0 : index
    %196 = vector.load %arg8[%c8_123, %c0_124, %c0_125] : memref<9x8x8xf32, #tpu.memory_space<vmem>>, vector<1x8x8xf32>
    %197 = vector.shape_cast %196 : vector<1x8x8xf32> to vector<8x8xf32>
    %cst_126 = arith.constant dense<0.000000e+00> : vector<8x512xf32>
    %198 = tpu.matmul %197, %195, %cst_126 {dimension_numbers = #tpu.dot_dimension_numbers<[1], [0], [0], [1], [0, 0, 1, 1], [], []>} : vector<8x8xf32>, vector<8x512xf32>, vector<8x512xf32> -> vector<8x512xf32>
    %199 = arith.addf %188, %198 : vector<8x512xf32>
    %200 = vector.broadcast %108 : vector<8x1xf32> to vector<8x512xf32>
    %201 = arith.addf %199, %200 : vector<8x512xf32>
    %cst_127 = arith.constant 0.000000e+00 : f32
    %202 = vector.broadcast %cst_127 : f32 to vector<8x512xf32>
    %203 = arith.maximumf %201, %202 : vector<8x512xf32>
    %204 = arith.addf %203, %107 : vector<8x512xf32>
    %c0_128 = arith.constant 0 : index
    %c0_129 = arith.constant 0 : index
    %205 = vector.load %arg11[%c0_128, %c0_129] : memref<8x1xf32, #tpu.memory_space<vmem>>, vector<8x1xf32>
    %c0_130 = arith.constant 0 : index
    %c0_131 = arith.constant 0 : index
    %c0_132 = arith.constant 0 : index
    %206 = vector.load %arg3[%c0_130, %c0_131, %c0_132] : memref<9x1x512xf32, #tpu.memory_space<vmem>>, vector<1x1x512xf32>
    %207 = vector.shape_cast %206 : vector<1x1x512xf32> to vector<1x512xf32>
    %208 = vector.extract_strided_slice %204 {offsets = [0, 495], sizes = [8, 17], strides = [1, 1]} : vector<8x512xf32> to vector<8x17xf32>
    %209 = vector.extract_strided_slice %204 {offsets = [0, 0], sizes = [8, 495], strides = [1, 1]} : vector<8x512xf32> to vector<8x495xf32>
    %210 = tpu.concatenate %208, %209 in 1 : vector<8x17xf32>, vector<8x495xf32> -> vector<8x512xf32>
    %211 = vector.broadcast %207 : vector<1x512xf32> to vector<8x512xf32>
    %212 = arith.mulf %210, %211 : vector<8x512xf32>
    %c0_133 = arith.constant 0 : index
    %c0_134 = arith.constant 0 : index
    %c0_135 = arith.constant 0 : index
    %213 = vector.load %arg10[%c0_133, %c0_134, %c0_135] : memref<9x8x8xf32, #tpu.memory_space<vmem>>, vector<1x8x8xf32>
    %214 = vector.shape_cast %213 : vector<1x8x8xf32> to vector<8x8xf32>
    %cst_136 = arith.constant dense<0.000000e+00> : vector<8x512xf32>
    %215 = tpu.matmul %214, %212, %cst_136 {dimension_numbers = #tpu.dot_dimension_numbers<[1], [0], [0], [1], [0, 0, 1, 1], [], []>} : vector<8x8xf32>, vector<8x512xf32>, vector<8x512xf32> -> vector<8x512xf32>
    %c1_137 = arith.constant 1 : index
    %c0_138 = arith.constant 0 : index
    %c0_139 = arith.constant 0 : index
    %216 = vector.load %arg3[%c1_137, %c0_138, %c0_139] : memref<9x1x512xf32, #tpu.memory_space<vmem>>, vector<1x1x512xf32>
    %217 = vector.shape_cast %216 : vector<1x1x512xf32> to vector<1x512xf32>
    %218 = vector.extract_strided_slice %204 {offsets = [0, 496], sizes = [8, 16], strides = [1, 1]} : vector<8x512xf32> to vector<8x16xf32>
    %219 = vector.extract_strided_slice %204 {offsets = [0, 0], sizes = [8, 496], strides = [1, 1]} : vector<8x512xf32> to vector<8x496xf32>
    %220 = tpu.concatenate %218, %219 in 1 : vector<8x16xf32>, vector<8x496xf32> -> vector<8x512xf32>
    %221 = vector.broadcast %217 : vector<1x512xf32> to vector<8x512xf32>
    %222 = arith.mulf %220, %221 : vector<8x512xf32>
    %c1_140 = arith.constant 1 : index
    %c0_141 = arith.constant 0 : index
    %c0_142 = arith.constant 0 : index
    %223 = vector.load %arg10[%c1_140, %c0_141, %c0_142] : memref<9x8x8xf32, #tpu.memory_space<vmem>>, vector<1x8x8xf32>
    %224 = vector.shape_cast %223 : vector<1x8x8xf32> to vector<8x8xf32>
    %cst_143 = arith.constant dense<0.000000e+00> : vector<8x512xf32>
    %225 = tpu.matmul %224, %222, %cst_143 {dimension_numbers = #tpu.dot_dimension_numbers<[1], [0], [0], [1], [0, 0, 1, 1], [], []>} : vector<8x8xf32>, vector<8x512xf32>, vector<8x512xf32> -> vector<8x512xf32>
    %226 = arith.addf %215, %225 : vector<8x512xf32>
    %c2_144 = arith.constant 2 : index
    %c0_145 = arith.constant 0 : index
    %c0_146 = arith.constant 0 : index
    %227 = vector.load %arg3[%c2_144, %c0_145, %c0_146] : memref<9x1x512xf32, #tpu.memory_space<vmem>>, vector<1x1x512xf32>
    %228 = vector.shape_cast %227 : vector<1x1x512xf32> to vector<1x512xf32>
    %229 = vector.extract_strided_slice %204 {offsets = [0, 497], sizes = [8, 15], strides = [1, 1]} : vector<8x512xf32> to vector<8x15xf32>
    %230 = vector.extract_strided_slice %204 {offsets = [0, 0], sizes = [8, 497], strides = [1, 1]} : vector<8x512xf32> to vector<8x497xf32>
    %231 = tpu.concatenate %229, %230 in 1 : vector<8x15xf32>, vector<8x497xf32> -> vector<8x512xf32>
    %232 = vector.broadcast %228 : vector<1x512xf32> to vector<8x512xf32>
    %233 = arith.mulf %231, %232 : vector<8x512xf32>
    %c2_147 = arith.constant 2 : index
    %c0_148 = arith.constant 0 : index
    %c0_149 = arith.constant 0 : index
    %234 = vector.load %arg10[%c2_147, %c0_148, %c0_149] : memref<9x8x8xf32, #tpu.memory_space<vmem>>, vector<1x8x8xf32>
    %235 = vector.shape_cast %234 : vector<1x8x8xf32> to vector<8x8xf32>
    %cst_150 = arith.constant dense<0.000000e+00> : vector<8x512xf32>
    %236 = tpu.matmul %235, %233, %cst_150 {dimension_numbers = #tpu.dot_dimension_numbers<[1], [0], [0], [1], [0, 0, 1, 1], [], []>} : vector<8x8xf32>, vector<8x512xf32>, vector<8x512xf32> -> vector<8x512xf32>
    %237 = arith.addf %226, %236 : vector<8x512xf32>
    %c3_151 = arith.constant 3 : index
    %c0_152 = arith.constant 0 : index
    %c0_153 = arith.constant 0 : index
    %238 = vector.load %arg3[%c3_151, %c0_152, %c0_153] : memref<9x1x512xf32, #tpu.memory_space<vmem>>, vector<1x1x512xf32>
    %239 = vector.shape_cast %238 : vector<1x1x512xf32> to vector<1x512xf32>
    %240 = vector.extract_strided_slice %204 {offsets = [0, 511], sizes = [8, 1], strides = [1, 1]} : vector<8x512xf32> to vector<8x1xf32>
    %241 = vector.extract_strided_slice %204 {offsets = [0, 0], sizes = [8, 511], strides = [1, 1]} : vector<8x512xf32> to vector<8x511xf32>
    %242 = tpu.concatenate %240, %241 in 1 : vector<8x1xf32>, vector<8x511xf32> -> vector<8x512xf32>
    %243 = vector.broadcast %239 : vector<1x512xf32> to vector<8x512xf32>
    %244 = arith.mulf %242, %243 : vector<8x512xf32>
    %c3_154 = arith.constant 3 : index
    %c0_155 = arith.constant 0 : index
    %c0_156 = arith.constant 0 : index
    %245 = vector.load %arg10[%c3_154, %c0_155, %c0_156] : memref<9x8x8xf32, #tpu.memory_space<vmem>>, vector<1x8x8xf32>
    %246 = vector.shape_cast %245 : vector<1x8x8xf32> to vector<8x8xf32>
    %cst_157 = arith.constant dense<0.000000e+00> : vector<8x512xf32>
    %247 = tpu.matmul %246, %244, %cst_157 {dimension_numbers = #tpu.dot_dimension_numbers<[1], [0], [0], [1], [0, 0, 1, 1], [], []>} : vector<8x8xf32>, vector<8x512xf32>, vector<8x512xf32> -> vector<8x512xf32>
    %248 = arith.addf %237, %247 : vector<8x512xf32>
    %c4_158 = arith.constant 4 : index
    %c0_159 = arith.constant 0 : index
    %c0_160 = arith.constant 0 : index
    %249 = vector.load %arg10[%c4_158, %c0_159, %c0_160] : memref<9x8x8xf32, #tpu.memory_space<vmem>>, vector<1x8x8xf32>
    %250 = vector.shape_cast %249 : vector<1x8x8xf32> to vector<8x8xf32>
    %cst_161 = arith.constant dense<0.000000e+00> : vector<8x512xf32>
    %251 = tpu.matmul %250, %204, %cst_161 {dimension_numbers = #tpu.dot_dimension_numbers<[1], [0], [0], [1], [0, 0, 1, 1], [], []>} : vector<8x8xf32>, vector<8x512xf32>, vector<8x512xf32> -> vector<8x512xf32>
    %252 = arith.addf %248, %251 : vector<8x512xf32>
    %c5_162 = arith.constant 5 : index
    %c0_163 = arith.constant 0 : index
    %c0_164 = arith.constant 0 : index
    %253 = vector.load %arg3[%c5_162, %c0_163, %c0_164] : memref<9x1x512xf32, #tpu.memory_space<vmem>>, vector<1x1x512xf32>
    %254 = vector.shape_cast %253 : vector<1x1x512xf32> to vector<1x512xf32>
    %255 = vector.extract_strided_slice %204 {offsets = [0, 1], sizes = [8, 511], strides = [1, 1]} : vector<8x512xf32> to vector<8x511xf32>
    %256 = vector.extract_strided_slice %204 {offsets = [0, 0], sizes = [8, 1], strides = [1, 1]} : vector<8x512xf32> to vector<8x1xf32>
    %257 = tpu.concatenate %255, %256 in 1 : vector<8x511xf32>, vector<8x1xf32> -> vector<8x512xf32>
    %258 = vector.broadcast %254 : vector<1x512xf32> to vector<8x512xf32>
    %259 = arith.mulf %257, %258 : vector<8x512xf32>
    %c5_165 = arith.constant 5 : index
    %c0_166 = arith.constant 0 : index
    %c0_167 = arith.constant 0 : index
    %260 = vector.load %arg10[%c5_165, %c0_166, %c0_167] : memref<9x8x8xf32, #tpu.memory_space<vmem>>, vector<1x8x8xf32>
    %261 = vector.shape_cast %260 : vector<1x8x8xf32> to vector<8x8xf32>
    %cst_168 = arith.constant dense<0.000000e+00> : vector<8x512xf32>
    %262 = tpu.matmul %261, %259, %cst_168 {dimension_numbers = #tpu.dot_dimension_numbers<[1], [0], [0], [1], [0, 0, 1, 1], [], []>} : vector<8x8xf32>, vector<8x512xf32>, vector<8x512xf32> -> vector<8x512xf32>
    %263 = arith.addf %252, %262 : vector<8x512xf32>
    %c6_169 = arith.constant 6 : index
    %c0_170 = arith.constant 0 : index
    %c0_171 = arith.constant 0 : index
    %264 = vector.load %arg3[%c6_169, %c0_170, %c0_171] : memref<9x1x512xf32, #tpu.memory_space<vmem>>, vector<1x1x512xf32>
    %265 = vector.shape_cast %264 : vector<1x1x512xf32> to vector<1x512xf32>
    %266 = vector.extract_strided_slice %204 {offsets = [0, 15], sizes = [8, 497], strides = [1, 1]} : vector<8x512xf32> to vector<8x497xf32>
    %267 = vector.extract_strided_slice %204 {offsets = [0, 0], sizes = [8, 15], strides = [1, 1]} : vector<8x512xf32> to vector<8x15xf32>
    %268 = tpu.concatenate %266, %267 in 1 : vector<8x497xf32>, vector<8x15xf32> -> vector<8x512xf32>
    %269 = vector.broadcast %265 : vector<1x512xf32> to vector<8x512xf32>
    %270 = arith.mulf %268, %269 : vector<8x512xf32>
    %c6_172 = arith.constant 6 : index
    %c0_173 = arith.constant 0 : index
    %c0_174 = arith.constant 0 : index
    %271 = vector.load %arg10[%c6_172, %c0_173, %c0_174] : memref<9x8x8xf32, #tpu.memory_space<vmem>>, vector<1x8x8xf32>
    %272 = vector.shape_cast %271 : vector<1x8x8xf32> to vector<8x8xf32>
    %cst_175 = arith.constant dense<0.000000e+00> : vector<8x512xf32>
    %273 = tpu.matmul %272, %270, %cst_175 {dimension_numbers = #tpu.dot_dimension_numbers<[1], [0], [0], [1], [0, 0, 1, 1], [], []>} : vector<8x8xf32>, vector<8x512xf32>, vector<8x512xf32> -> vector<8x512xf32>
    %274 = arith.addf %263, %273 : vector<8x512xf32>
    %c7_176 = arith.constant 7 : index
    %c0_177 = arith.constant 0 : index
    %c0_178 = arith.constant 0 : index
    %275 = vector.load %arg3[%c7_176, %c0_177, %c0_178] : memref<9x1x512xf32, #tpu.memory_space<vmem>>, vector<1x1x512xf32>
    %276 = vector.shape_cast %275 : vector<1x1x512xf32> to vector<1x512xf32>
    %277 = vector.extract_strided_slice %204 {offsets = [0, 16], sizes = [8, 496], strides = [1, 1]} : vector<8x512xf32> to vector<8x496xf32>
    %278 = vector.extract_strided_slice %204 {offsets = [0, 0], sizes = [8, 16], strides = [1, 1]} : vector<8x512xf32> to vector<8x16xf32>
    %279 = tpu.concatenate %277, %278 in 1 : vector<8x496xf32>, vector<8x16xf32> -> vector<8x512xf32>
    %280 = vector.broadcast %276 : vector<1x512xf32> to vector<8x512xf32>
    %281 = arith.mulf %279, %280 : vector<8x512xf32>
    %c7_179 = arith.constant 7 : index
    %c0_180 = arith.constant 0 : index
    %c0_181 = arith.constant 0 : index
    %282 = vector.load %arg10[%c7_179, %c0_180, %c0_181] : memref<9x8x8xf32, #tpu.memory_space<vmem>>, vector<1x8x8xf32>
    %283 = vector.shape_cast %282 : vector<1x8x8xf32> to vector<8x8xf32>
    %cst_182 = arith.constant dense<0.000000e+00> : vector<8x512xf32>
    %284 = tpu.matmul %283, %281, %cst_182 {dimension_numbers = #tpu.dot_dimension_numbers<[1], [0], [0], [1], [0, 0, 1, 1], [], []>} : vector<8x8xf32>, vector<8x512xf32>, vector<8x512xf32> -> vector<8x512xf32>
    %285 = arith.addf %274, %284 : vector<8x512xf32>
    %c8_183 = arith.constant 8 : index
    %c0_184 = arith.constant 0 : index
    %c0_185 = arith.constant 0 : index
    %286 = vector.load %arg3[%c8_183, %c0_184, %c0_185] : memref<9x1x512xf32, #tpu.memory_space<vmem>>, vector<1x1x512xf32>
    %287 = vector.shape_cast %286 : vector<1x1x512xf32> to vector<1x512xf32>
    %288 = vector.extract_strided_slice %204 {offsets = [0, 17], sizes = [8, 495], strides = [1, 1]} : vector<8x512xf32> to vector<8x495xf32>
    %289 = vector.extract_strided_slice %204 {offsets = [0, 0], sizes = [8, 17], strides = [1, 1]} : vector<8x512xf32> to vector<8x17xf32>
    %290 = tpu.concatenate %288, %289 in 1 : vector<8x495xf32>, vector<8x17xf32> -> vector<8x512xf32>
    %291 = vector.broadcast %287 : vector<1x512xf32> to vector<8x512xf32>
    %292 = arith.mulf %290, %291 : vector<8x512xf32>
    %c8_186 = arith.constant 8 : index
    %c0_187 = arith.constant 0 : index
    %c0_188 = arith.constant 0 : index
    %293 = vector.load %arg10[%c8_186, %c0_187, %c0_188] : memref<9x8x8xf32, #tpu.memory_space<vmem>>, vector<1x8x8xf32>
    %294 = vector.shape_cast %293 : vector<1x8x8xf32> to vector<8x8xf32>
    %cst_189 = arith.constant dense<0.000000e+00> : vector<8x512xf32>
    %295 = tpu.matmul %294, %292, %cst_189 {dimension_numbers = #tpu.dot_dimension_numbers<[1], [0], [0], [1], [0, 0, 1, 1], [], []>} : vector<8x8xf32>, vector<8x512xf32>, vector<8x512xf32> -> vector<8x512xf32>
    %296 = arith.addf %285, %295 : vector<8x512xf32>
    %297 = vector.broadcast %205 : vector<8x1xf32> to vector<8x512xf32>
    %298 = arith.addf %296, %297 : vector<8x512xf32>
    %cst_190 = arith.constant 0.000000e+00 : f32
    %299 = vector.broadcast %cst_190 : f32 to vector<8x512xf32>
    %300 = arith.maximumf %298, %299 : vector<8x512xf32>
    %301 = arith.addf %107, %203 : vector<8x512xf32>
    %302 = arith.addf %301, %300 : vector<8x512xf32>
    %303 = vector.extract_strided_slice %302 {offsets = [0, 0], sizes = [8, 256], strides = [1, 1]} : vector<8x512xf32> to vector<8x256xf32>
    %304 = vector.extract_strided_slice %302 {offsets = [0, 256], sizes = [8, 256], strides = [1, 1]} : vector<8x512xf32> to vector<8x256xf32>
    %305 = tpu.iota {dimensions = array<i32: 0>} : vector<8x256xi32>
    %c4_i32 = arith.constant 4 : i32
    %306 = vector.broadcast %c4_i32 : i32 to vector<8x256xi32>
    %307 = arith.cmpi slt, %305, %306 : vector<8x256xi32>
    %308 = arith.addf %303, %304 : vector<8x256xf32>
    %309 = arith.subf %303, %304 : vector<8x256xf32>
    %310 = math.absf %309 : vector<8x256xf32>
    %311 = arith.select %307, %308, %310 : vector<8x256xi1>, vector<8x256xf32>
    %c0_191 = arith.constant 0 : index
    %c0_192 = arith.constant 0 : index
    %312 = vector.load %arg12[%c0_191, %c0_192] : memref<16x8xf32, #tpu.memory_space<vmem>>, vector<16x8xf32>
    %cst_193 = arith.constant dense<0.000000e+00> : vector<16x256xf32>
    %313 = tpu.matmul %312, %311, %cst_193 {dimension_numbers = #tpu.dot_dimension_numbers<[1], [0], [0], [1], [0, 0, 1, 1], [], []>} : vector<16x8xf32>, vector<8x256xf32>, vector<16x256xf32> -> vector<16x256xf32>
    %c0_194 = arith.constant 0 : index
    %c0_195 = arith.constant 0 : index
    %314 = vector.load %arg13[%c0_194, %c0_195] : memref<16x1xf32, #tpu.memory_space<vmem>>, vector<16x1xf32>
    %315 = vector.broadcast %314 : vector<16x1xf32> to vector<16x256xf32>
    %316 = arith.addf %313, %315 : vector<16x256xf32>
    %cst_196 = arith.constant 0.000000e+00 : f32
    %317 = vector.broadcast %cst_196 : f32 to vector<16x256xf32>
    %318 = arith.maximumf %316, %317 : vector<16x256xf32>
    %319 = vector.extract_strided_slice %318 {offsets = [0, 0], sizes = [8, 256], strides = [1, 1]} : vector<16x256xf32> to vector<8x256xf32>
    %320 = vector.extract_strided_slice %318 {offsets = [8, 0], sizes = [8, 256], strides = [1, 1]} : vector<16x256xf32> to vector<8x256xf32>
    %c0_197 = arith.constant 0 : index
    %c0_198 = arith.constant 0 : index
    %321 = vector.load %arg15[%c0_197, %c0_198] : memref<8x1xf32, #tpu.memory_space<vmem>>, vector<8x1xf32>
    %c0_199 = arith.constant 0 : index
    %c0_200 = arith.constant 0 : index
    %c0_201 = arith.constant 0 : index
    %322 = vector.load %arg3[%c0_199, %c0_200, %c0_201] : memref<9x1x512xf32, #tpu.memory_space<vmem>>, vector<1x1x512xf32>
    %323 = vector.shape_cast %322 : vector<1x1x512xf32> to vector<1x512xf32>
    %324 = vector.extract_strided_slice %323 {offsets = [0, 0], sizes = [1, 256], strides = [1, 1]} : vector<1x512xf32> to vector<1x256xf32>
    %325 = vector.extract_strided_slice %320 {offsets = [0, 239], sizes = [8, 17], strides = [1, 1]} : vector<8x256xf32> to vector<8x17xf32>
    %326 = vector.extract_strided_slice %320 {offsets = [0, 0], sizes = [8, 239], strides = [1, 1]} : vector<8x256xf32> to vector<8x239xf32>
    %327 = tpu.concatenate %325, %326 in 1 : vector<8x17xf32>, vector<8x239xf32> -> vector<8x256xf32>
    %328 = vector.broadcast %324 : vector<1x256xf32> to vector<8x256xf32>
    %329 = arith.mulf %327, %328 : vector<8x256xf32>
    %c0_202 = arith.constant 0 : index
    %c0_203 = arith.constant 0 : index
    %c0_204 = arith.constant 0 : index
    %330 = vector.load %arg14[%c0_202, %c0_203, %c0_204] : memref<9x8x8xf32, #tpu.memory_space<vmem>>, vector<1x8x8xf32>
    %331 = vector.shape_cast %330 : vector<1x8x8xf32> to vector<8x8xf32>
    %cst_205 = arith.constant dense<0.000000e+00> : vector<8x256xf32>
    %332 = tpu.matmul %331, %329, %cst_205 {dimension_numbers = #tpu.dot_dimension_numbers<[1], [0], [0], [1], [0, 0, 1, 1], [], []>} : vector<8x8xf32>, vector<8x256xf32>, vector<8x256xf32> -> vector<8x256xf32>
    %c1_206 = arith.constant 1 : index
    %c0_207 = arith.constant 0 : index
    %c0_208 = arith.constant 0 : index
    %333 = vector.load %arg3[%c1_206, %c0_207, %c0_208] : memref<9x1x512xf32, #tpu.memory_space<vmem>>, vector<1x1x512xf32>
    %334 = vector.shape_cast %333 : vector<1x1x512xf32> to vector<1x512xf32>
    %335 = vector.extract_strided_slice %334 {offsets = [0, 0], sizes = [1, 256], strides = [1, 1]} : vector<1x512xf32> to vector<1x256xf32>
    %336 = vector.extract_strided_slice %320 {offsets = [0, 240], sizes = [8, 16], strides = [1, 1]} : vector<8x256xf32> to vector<8x16xf32>
    %337 = vector.extract_strided_slice %320 {offsets = [0, 0], sizes = [8, 240], strides = [1, 1]} : vector<8x256xf32> to vector<8x240xf32>
    %338 = tpu.concatenate %336, %337 in 1 : vector<8x16xf32>, vector<8x240xf32> -> vector<8x256xf32>
    %339 = vector.broadcast %335 : vector<1x256xf32> to vector<8x256xf32>
    %340 = arith.mulf %338, %339 : vector<8x256xf32>
    %c1_209 = arith.constant 1 : index
    %c0_210 = arith.constant 0 : index
    %c0_211 = arith.constant 0 : index
    %341 = vector.load %arg14[%c1_209, %c0_210, %c0_211] : memref<9x8x8xf32, #tpu.memory_space<vmem>>, vector<1x8x8xf32>
    %342 = vector.shape_cast %341 : vector<1x8x8xf32> to vector<8x8xf32>
    %cst_212 = arith.constant dense<0.000000e+00> : vector<8x256xf32>
    %343 = tpu.matmul %342, %340, %cst_212 {dimension_numbers = #tpu.dot_dimension_numbers<[1], [0], [0], [1], [0, 0, 1, 1], [], []>} : vector<8x8xf32>, vector<8x256xf32>, vector<8x256xf32> -> vector<8x256xf32>
    %344 = arith.addf %332, %343 : vector<8x256xf32>
    %c2_213 = arith.constant 2 : index
    %c0_214 = arith.constant 0 : index
    %c0_215 = arith.constant 0 : index
    %345 = vector.load %arg3[%c2_213, %c0_214, %c0_215] : memref<9x1x512xf32, #tpu.memory_space<vmem>>, vector<1x1x512xf32>
    %346 = vector.shape_cast %345 : vector<1x1x512xf32> to vector<1x512xf32>
    %347 = vector.extract_strided_slice %346 {offsets = [0, 0], sizes = [1, 256], strides = [1, 1]} : vector<1x512xf32> to vector<1x256xf32>
    %348 = vector.extract_strided_slice %320 {offsets = [0, 241], sizes = [8, 15], strides = [1, 1]} : vector<8x256xf32> to vector<8x15xf32>
    %349 = vector.extract_strided_slice %320 {offsets = [0, 0], sizes = [8, 241], strides = [1, 1]} : vector<8x256xf32> to vector<8x241xf32>
    %350 = tpu.concatenate %348, %349 in 1 : vector<8x15xf32>, vector<8x241xf32> -> vector<8x256xf32>
    %351 = vector.broadcast %347 : vector<1x256xf32> to vector<8x256xf32>
    %352 = arith.mulf %350, %351 : vector<8x256xf32>
    %c2_216 = arith.constant 2 : index
    %c0_217 = arith.constant 0 : index
    %c0_218 = arith.constant 0 : index
    %353 = vector.load %arg14[%c2_216, %c0_217, %c0_218] : memref<9x8x8xf32, #tpu.memory_space<vmem>>, vector<1x8x8xf32>
    %354 = vector.shape_cast %353 : vector<1x8x8xf32> to vector<8x8xf32>
    %cst_219 = arith.constant dense<0.000000e+00> : vector<8x256xf32>
    %355 = tpu.matmul %354, %352, %cst_219 {dimension_numbers = #tpu.dot_dimension_numbers<[1], [0], [0], [1], [0, 0, 1, 1], [], []>} : vector<8x8xf32>, vector<8x256xf32>, vector<8x256xf32> -> vector<8x256xf32>
    %356 = arith.addf %344, %355 : vector<8x256xf32>
    %c3_220 = arith.constant 3 : index
    %c0_221 = arith.constant 0 : index
    %c0_222 = arith.constant 0 : index
    %357 = vector.load %arg3[%c3_220, %c0_221, %c0_222] : memref<9x1x512xf32, #tpu.memory_space<vmem>>, vector<1x1x512xf32>
    %358 = vector.shape_cast %357 : vector<1x1x512xf32> to vector<1x512xf32>
    %359 = vector.extract_strided_slice %358 {offsets = [0, 0], sizes = [1, 256], strides = [1, 1]} : vector<1x512xf32> to vector<1x256xf32>
    %360 = vector.extract_strided_slice %320 {offsets = [0, 255], sizes = [8, 1], strides = [1, 1]} : vector<8x256xf32> to vector<8x1xf32>
    %361 = vector.extract_strided_slice %320 {offsets = [0, 0], sizes = [8, 255], strides = [1, 1]} : vector<8x256xf32> to vector<8x255xf32>
    %362 = tpu.concatenate %360, %361 in 1 : vector<8x1xf32>, vector<8x255xf32> -> vector<8x256xf32>
    %363 = vector.broadcast %359 : vector<1x256xf32> to vector<8x256xf32>
    %364 = arith.mulf %362, %363 : vector<8x256xf32>
    %c3_223 = arith.constant 3 : index
    %c0_224 = arith.constant 0 : index
    %c0_225 = arith.constant 0 : index
    %365 = vector.load %arg14[%c3_223, %c0_224, %c0_225] : memref<9x8x8xf32, #tpu.memory_space<vmem>>, vector<1x8x8xf32>
    %366 = vector.shape_cast %365 : vector<1x8x8xf32> to vector<8x8xf32>
    %cst_226 = arith.constant dense<0.000000e+00> : vector<8x256xf32>
    %367 = tpu.matmul %366, %364, %cst_226 {dimension_numbers = #tpu.dot_dimension_numbers<[1], [0], [0], [1], [0, 0, 1, 1], [], []>} : vector<8x8xf32>, vector<8x256xf32>, vector<8x256xf32> -> vector<8x256xf32>
    %368 = arith.addf %356, %367 : vector<8x256xf32>
    %c4_227 = arith.constant 4 : index
    %c0_228 = arith.constant 0 : index
    %c0_229 = arith.constant 0 : index
    %369 = vector.load %arg14[%c4_227, %c0_228, %c0_229] : memref<9x8x8xf32, #tpu.memory_space<vmem>>, vector<1x8x8xf32>
    %370 = vector.shape_cast %369 : vector<1x8x8xf32> to vector<8x8xf32>
    %cst_230 = arith.constant dense<0.000000e+00> : vector<8x256xf32>
    %371 = tpu.matmul %370, %320, %cst_230 {dimension_numbers = #tpu.dot_dimension_numbers<[1], [0], [0], [1], [0, 0, 1, 1], [], []>} : vector<8x8xf32>, vector<8x256xf32>, vector<8x256xf32> -> vector<8x256xf32>
    %372 = arith.addf %368, %371 : vector<8x256xf32>
    %c5_231 = arith.constant 5 : index
    %c0_232 = arith.constant 0 : index
    %c0_233 = arith.constant 0 : index
    %373 = vector.load %arg3[%c5_231, %c0_232, %c0_233] : memref<9x1x512xf32, #tpu.memory_space<vmem>>, vector<1x1x512xf32>
    %374 = vector.shape_cast %373 : vector<1x1x512xf32> to vector<1x512xf32>
    %375 = vector.extract_strided_slice %374 {offsets = [0, 0], sizes = [1, 256], strides = [1, 1]} : vector<1x512xf32> to vector<1x256xf32>
    %376 = vector.extract_strided_slice %320 {offsets = [0, 1], sizes = [8, 255], strides = [1, 1]} : vector<8x256xf32> to vector<8x255xf32>
    %377 = vector.extract_strided_slice %320 {offsets = [0, 0], sizes = [8, 1], strides = [1, 1]} : vector<8x256xf32> to vector<8x1xf32>
    %378 = tpu.concatenate %376, %377 in 1 : vector<8x255xf32>, vector<8x1xf32> -> vector<8x256xf32>
    %379 = vector.broadcast %375 : vector<1x256xf32> to vector<8x256xf32>
    %380 = arith.mulf %378, %379 : vector<8x256xf32>
    %c5_234 = arith.constant 5 : index
    %c0_235 = arith.constant 0 : index
    %c0_236 = arith.constant 0 : index
    %381 = vector.load %arg14[%c5_234, %c0_235, %c0_236] : memref<9x8x8xf32, #tpu.memory_space<vmem>>, vector<1x8x8xf32>
    %382 = vector.shape_cast %381 : vector<1x8x8xf32> to vector<8x8xf32>
    %cst_237 = arith.constant dense<0.000000e+00> : vector<8x256xf32>
    %383 = tpu.matmul %382, %380, %cst_237 {dimension_numbers = #tpu.dot_dimension_numbers<[1], [0], [0], [1], [0, 0, 1, 1], [], []>} : vector<8x8xf32>, vector<8x256xf32>, vector<8x256xf32> -> vector<8x256xf32>
    %384 = arith.addf %372, %383 : vector<8x256xf32>
    %c6_238 = arith.constant 6 : index
    %c0_239 = arith.constant 0 : index
    %c0_240 = arith.constant 0 : index
    %385 = vector.load %arg3[%c6_238, %c0_239, %c0_240] : memref<9x1x512xf32, #tpu.memory_space<vmem>>, vector<1x1x512xf32>
    %386 = vector.shape_cast %385 : vector<1x1x512xf32> to vector<1x512xf32>
    %387 = vector.extract_strided_slice %386 {offsets = [0, 0], sizes = [1, 256], strides = [1, 1]} : vector<1x512xf32> to vector<1x256xf32>
    %388 = vector.extract_strided_slice %320 {offsets = [0, 15], sizes = [8, 241], strides = [1, 1]} : vector<8x256xf32> to vector<8x241xf32>
    %389 = vector.extract_strided_slice %320 {offsets = [0, 0], sizes = [8, 15], strides = [1, 1]} : vector<8x256xf32> to vector<8x15xf32>
    %390 = tpu.concatenate %388, %389 in 1 : vector<8x241xf32>, vector<8x15xf32> -> vector<8x256xf32>
    %391 = vector.broadcast %387 : vector<1x256xf32> to vector<8x256xf32>
    %392 = arith.mulf %390, %391 : vector<8x256xf32>
    %c6_241 = arith.constant 6 : index
    %c0_242 = arith.constant 0 : index
    %c0_243 = arith.constant 0 : index
    %393 = vector.load %arg14[%c6_241, %c0_242, %c0_243] : memref<9x8x8xf32, #tpu.memory_space<vmem>>, vector<1x8x8xf32>
    %394 = vector.shape_cast %393 : vector<1x8x8xf32> to vector<8x8xf32>
    %cst_244 = arith.constant dense<0.000000e+00> : vector<8x256xf32>
    %395 = tpu.matmul %394, %392, %cst_244 {dimension_numbers = #tpu.dot_dimension_numbers<[1], [0], [0], [1], [0, 0, 1, 1], [], []>} : vector<8x8xf32>, vector<8x256xf32>, vector<8x256xf32> -> vector<8x256xf32>
    %396 = arith.addf %384, %395 : vector<8x256xf32>
    %c7_245 = arith.constant 7 : index
    %c0_246 = arith.constant 0 : index
    %c0_247 = arith.constant 0 : index
    %397 = vector.load %arg3[%c7_245, %c0_246, %c0_247] : memref<9x1x512xf32, #tpu.memory_space<vmem>>, vector<1x1x512xf32>
    %398 = vector.shape_cast %397 : vector<1x1x512xf32> to vector<1x512xf32>
    %399 = vector.extract_strided_slice %398 {offsets = [0, 0], sizes = [1, 256], strides = [1, 1]} : vector<1x512xf32> to vector<1x256xf32>
    %400 = vector.extract_strided_slice %320 {offsets = [0, 16], sizes = [8, 240], strides = [1, 1]} : vector<8x256xf32> to vector<8x240xf32>
    %401 = vector.extract_strided_slice %320 {offsets = [0, 0], sizes = [8, 16], strides = [1, 1]} : vector<8x256xf32> to vector<8x16xf32>
    %402 = tpu.concatenate %400, %401 in 1 : vector<8x240xf32>, vector<8x16xf32> -> vector<8x256xf32>
    %403 = vector.broadcast %399 : vector<1x256xf32> to vector<8x256xf32>
    %404 = arith.mulf %402, %403 : vector<8x256xf32>
    %c7_248 = arith.constant 7 : index
    %c0_249 = arith.constant 0 : index
    %c0_250 = arith.constant 0 : index
    %405 = vector.load %arg14[%c7_248, %c0_249, %c0_250] : memref<9x8x8xf32, #tpu.memory_space<vmem>>, vector<1x8x8xf32>
    %406 = vector.shape_cast %405 : vector<1x8x8xf32> to vector<8x8xf32>
    %cst_251 = arith.constant dense<0.000000e+00> : vector<8x256xf32>
    %407 = tpu.matmul %406, %404, %cst_251 {dimension_numbers = #tpu.dot_dimension_numbers<[1], [0], [0], [1], [0, 0, 1, 1], [], []>} : vector<8x8xf32>, vector<8x256xf32>, vector<8x256xf32> -> vector<8x256xf32>
    %408 = arith.addf %396, %407 : vector<8x256xf32>
    %c8_252 = arith.constant 8 : index
    %c0_253 = arith.constant 0 : index
    %c0_254 = arith.constant 0 : index
    %409 = vector.load %arg3[%c8_252, %c0_253, %c0_254] : memref<9x1x512xf32, #tpu.memory_space<vmem>>, vector<1x1x512xf32>
    %410 = vector.shape_cast %409 : vector<1x1x512xf32> to vector<1x512xf32>
    %411 = vector.extract_strided_slice %410 {offsets = [0, 0], sizes = [1, 256], strides = [1, 1]} : vector<1x512xf32> to vector<1x256xf32>
    %412 = vector.extract_strided_slice %320 {offsets = [0, 17], sizes = [8, 239], strides = [1, 1]} : vector<8x256xf32> to vector<8x239xf32>
    %413 = vector.extract_strided_slice %320 {offsets = [0, 0], sizes = [8, 17], strides = [1, 1]} : vector<8x256xf32> to vector<8x17xf32>
    %414 = tpu.concatenate %412, %413 in 1 : vector<8x239xf32>, vector<8x17xf32> -> vector<8x256xf32>
    %415 = vector.broadcast %411 : vector<1x256xf32> to vector<8x256xf32>
    %416 = arith.mulf %414, %415 : vector<8x256xf32>
    %c8_255 = arith.constant 8 : index
    %c0_256 = arith.constant 0 : index
    %c0_257 = arith.constant 0 : index
    %417 = vector.load %arg14[%c8_255, %c0_256, %c0_257] : memref<9x8x8xf32, #tpu.memory_space<vmem>>, vector<1x8x8xf32>
    %418 = vector.shape_cast %417 : vector<1x8x8xf32> to vector<8x8xf32>
    %cst_258 = arith.constant dense<0.000000e+00> : vector<8x256xf32>
    %419 = tpu.matmul %418, %416, %cst_258 {dimension_numbers = #tpu.dot_dimension_numbers<[1], [0], [0], [1], [0, 0, 1, 1], [], []>} : vector<8x8xf32>, vector<8x256xf32>, vector<8x256xf32> -> vector<8x256xf32>
    %420 = arith.addf %408, %419 : vector<8x256xf32>
    %421 = vector.broadcast %321 : vector<8x1xf32> to vector<8x256xf32>
    %422 = arith.addf %420, %421 : vector<8x256xf32>
    %cst_259 = arith.constant 0.000000e+00 : f32
    %423 = vector.broadcast %cst_259 : f32 to vector<8x256xf32>
    %424 = arith.maximumf %422, %423 : vector<8x256xf32>
    %425 = arith.addf %424, %319 : vector<8x256xf32>
    %c0_260 = arith.constant 0 : index
    %c0_261 = arith.constant 0 : index
    %c0_262 = arith.constant 0 : index
    %426 = vector.load %arg16[%c0_260, %c0_261, %c0_262] : memref<1x8x256xf32, #tpu.memory_space<vmem>>, vector<1x8x256xf32>
    %427 = vector.shape_cast %426 : vector<1x8x256xf32> to vector<8x256xf32>
    %428 = vector.shape_cast %425 : vector<8x256xf32> to vector<1x8x256xf32>
    tpu.vector_store %arg16[%c0_260, %c0_261, %c0_262], %428 {strides = array<i32>} : memref<1x8x256xf32, #tpu.memory_space<vmem>>, vector<1x8x256xf32>,
    return
  }
  func.func @transform_0(%arg0: i32) -> (i32, i32, i32) {
    %c0_i32 = arith.constant 0 : i32
    %c0_i32_0 = arith.constant 0 : i32
    %c0_i32_1 = arith.constant 0 : i32
    return %arg0, %c0_i32, %c0_i32_0 : i32, i32, i32
  }
  func.func @transform_1(%arg0: i32) -> (i32, i32, i32) {
    %c0_i32 = arith.constant 0 : i32
    %c0_i32_0 = arith.constant 0 : i32
    %c0_i32_1 = arith.constant 0 : i32
    return %arg0, %c0_i32, %c0_i32_0 : i32, i32, i32
  }
  func.func @transform_2(%arg0: i32) -> (i32, i32, i32) {
    %c0_i32 = arith.constant 0 : i32
    %c0_i32_0 = arith.constant 0 : i32
    %c0_i32_1 = arith.constant 0 : i32
    %c0_i32_2 = arith.constant 0 : i32
    return %c0_i32, %c0_i32_0, %c0_i32_1 : i32, i32, i32
  }
  func.func @transform_3(%arg0: i32) -> (i32, i32) {
    %c0_i32 = arith.constant 0 : i32
    %c0_i32_0 = arith.constant 0 : i32
    %c0_i32_1 = arith.constant 0 : i32
    return %c0_i32, %c0_i32_0 : i32, i32
  }
  func.func @transform_4(%arg0: i32) -> (i32, i32) {
    %c0_i32 = arith.constant 0 : i32
    %c0_i32_0 = arith.constant 0 : i32
    %c0_i32_1 = arith.constant 0 : i32
    return %c0_i32, %c0_i32_0 : i32, i32
  }
  func.func @transform_5(%arg0: i32) -> (i32, i32, i32) {
    %c0_i32 = arith.constant 0 : i32
    %c0_i32_0 = arith.constant 0 : i32
    %c0_i32_1 = arith.constant 0 : i32
    %c0_i32_2 = arith.constant 0 : i32
    return %c0_i32, %c0_i32_0, %c0_i32_1 : i32, i32, i32
  }
  func.func @transform_6(%arg0: i32) -> (i32, i32) {
    %c0_i32 = arith.constant 0 : i32
    %c0_i32_0 = arith.constant 0 : i32
    %c0_i32_1 = arith.constant 0 : i32
    return %c0_i32, %c0_i32_0 : i32, i32
  }
  func.func @transform_7(%arg0: i32) -> (i32, i32, i32) {
    %c0_i32 = arith.constant 0 : i32
    %c0_i32_0 = arith.constant 0 : i32
    %c0_i32_1 = arith.constant 0 : i32
    %c0_i32_2 = arith.constant 0 : i32
    return %c0_i32, %c0_i32_0, %c0_i32_1 : i32, i32, i32
  }
  func.func @transform_8(%arg0: i32) -> (i32, i32) {
    %c0_i32 = arith.constant 0 : i32
    %c0_i32_0 = arith.constant 0 : i32
    %c0_i32_1 = arith.constant 0 : i32
    return %c0_i32, %c0_i32_0 : i32, i32
  }
  func.func @transform_9(%arg0: i32) -> (i32, i32, i32) {
    %c0_i32 = arith.constant 0 : i32
    %c0_i32_0 = arith.constant 0 : i32
    %c0_i32_1 = arith.constant 0 : i32
    %c0_i32_2 = arith.constant 0 : i32
    return %c0_i32, %c0_i32_0, %c0_i32_1 : i32, i32, i32
  }
  func.func @transform_10(%arg0: i32) -> (i32, i32) {
    %c0_i32 = arith.constant 0 : i32
    %c0_i32_0 = arith.constant 0 : i32
    %c0_i32_1 = arith.constant 0 : i32
    return %c0_i32, %c0_i32_0 : i32, i32
  }
  func.func @transform_11(%arg0: i32) -> (i32, i32) {
    %c0_i32 = arith.constant 0 : i32
    %c0_i32_0 = arith.constant 0 : i32
    %c0_i32_1 = arith.constant 0 : i32
    return %c0_i32, %c0_i32_0 : i32, i32
  }
  func.func @transform_12(%arg0: i32) -> (i32, i32) {
    %c0_i32 = arith.constant 0 : i32
    %c0_i32_0 = arith.constant 0 : i32
    %c0_i32_1 = arith.constant 0 : i32
    return %c0_i32, %c0_i32_0 : i32, i32
  }
  func.func @transform_13(%arg0: i32) -> (i32, i32, i32) {
    %c0_i32 = arith.constant 0 : i32
    %c0_i32_0 = arith.constant 0 : i32
    %c0_i32_1 = arith.constant 0 : i32
    %c0_i32_2 = arith.constant 0 : i32
    return %c0_i32, %c0_i32_0, %c0_i32_1 : i32, i32, i32
  }
  func.func @transform_14(%arg0: i32) -> (i32, i32) {
    %c0_i32 = arith.constant 0 : i32
    %c0_i32_0 = arith.constant 0 : i32
    %c0_i32_1 = arith.constant 0 : i32
    return %c0_i32, %c0_i32_0 : i32, i32
  }
  func.func @transform_15(%arg0: i32) -> (i32, i32, i32) {
    %c0_i32 = arith.constant 0 : i32
    %c0_i32_0 = arith.constant 0 : i32
    %c0_i32_1 = arith.constant 0 : i32
    return %arg0, %c0_i32, %c0_i32_0 : i32, i32, i32
  }
}

</mosaic_0001>

<bundles_post_ra>
// kernel: tpu_custom_call.1
= control target key start
LH: loop header
LB: loop body
LE: loop exit
PB: predicated region body
PF: predicated region fallthrough
CT: control target
= control target key end

     0   :  { %s5881_s0 = inlined_call_operand.vmem [shape: f32[2,8,256], index: 0, kind: input, shape index: {}]   ;;  %s5882_s1 = inlined_call_operand.vmem [shape: f32[2,8,256], index: 1, kind: input, shape index: {}]   ;;  %s5883_s2 = inlined_call_operand.vmem [shape: f32[9,1,512], index: 2, kind: input, shape index: {}]   ;;  %s5884_s3 = inlined_call_operand.vmem [shape: f32[4,8], index: 3, kind: input, shape index: {}]   ;;  %s5885_s4 = inlined_call_operand.vmem [shape: f32[4,1], index: 4, kind: input, shape index: {}]   ;;  %s5886_s5 = inlined_call_operand.vmem [shape: f32[9,8,4], index: 5, kind: input, shape index: {}]   ;;  %s5887_s6 = inlined_call_operand.vmem [shape: f32[8,1], index: 6, kind: input, shape index: {}]   ;;  %s5888_s7 = inlined_call_operand.vmem [shape: f32[9,8,8], index: 7, kind: input, shape index: {}]   ;;  %s5889_s8 = inlined_call_operand.vmem [shape: f32[8,1], index: 8, kind: input, shape index: {}]   ;;  %s5890_s9 = inlined_call_operand.vmem [shape: f32[9,8,8], index: 9, kind: input, shape index: {}]   ;;  %s5891_s10 = inlined_call_operand.vmem [shape: f32[8,1], index: 10, kind: input, shape index: {}]   ;;  %s5892_s11 = inlined_call_operand.vmem [shape: f32[16,8], index: 11, kind: input, shape index: {}]   ;;  %s5893_s12 = inlined_call_operand.vmem [shape: f32[16,1], index: 12, kind: input, shape index: {}]   ;;  %s5894_s13 = inlined_call_operand.vmem [shape: f32[9,8,8], index: 13, kind: input, shape index: {}]   ;;  %s5895_s14 = inlined_call_operand.vmem [shape: f32[8,1], index: 14, kind: input, shape index: {}]   ;;  %s5896_s15 = inlined_call_operand.hbm [shape: f32[2,8,256], index: 15, kind: output, shape index: {}]  }
   0x1   :  { %5942 = sst [smem:[#allocation29_spill]] %s5881_s0 }
   0x2   :  { %20 = vsyncpa [#allocation3], 0 }
   0x3   :  { %22 = vsyncpa [#allocation3 + $0x1], 0  ;;  %s4875_s18 = smov 0   ;;  %s4877_s19 = smov 0  }
   0x4   :  { %s4879_s20 = smov 0   ;;  %s4881_s21 = smov 0  }
   0x5 LB: > { %5943 = sst [smem:[#allocation5_spill]] %s4772_s18  ;;  %s4896_s22 = sadd.s32 4294967295, %s4784_s21   ;;  %s4784_s21 = sphi %s4881_s21, %s6007_s21   ;;  %s4780_s20 = sphi %s4879_s20, %s6009_s20   ;;  %s4776_s19 = sphi %s4877_s19, %s6011_s19   ;;  %s4772_s18 = sphi %s4875_s18, %s6010_s18  }
   0x6   : > { %5944 = sst [smem:[#allocation6_spill]] %s4780_s20  ;;  %s4446_s23 = sadd.s32 4294967294, %s4784_s21  }
   0x7   : > { %5945 = sst [smem:[#allocation7_spill]] %s4784_s21  ;;  %s4900_s24 = sadd.s32 1, %s4784_s21  }
   0x8   : > { %5946 = sst [smem:[#allocation8_spill]] %s4900_s24  ;;  %s360_s25 = sadd.s32 1, %s4780_s20 }
   0x9   : > { %s357_s26 = ssub.s32 %s4784_s21, %s4900_s24  ;;  %p370_p0 = scmp.ne.s32.totalorder %s4780_s20, %s4776_s19 }
   0xa   : > { %p358_p1 = scmp.eq.s32.totalorder %s357_s26, 0  ;;  %p371_p2 = scmp.eq.s32.totalorder %s4896_s22, 1 }
   0xb   : > { %p376_p3 = scmp.ne.s32.totalorder %s4776_s19, %s4772_s18  ;;  %p377_p4 = scmp.eq.s32.totalorder %s4446_s23, 1 }
   0xc   : > { %s4911_s27 = scalar_select %p358_p1, %s4780_s20, %s360_s25  }
   0xd   : > { %p4913_p5 = por %p371_p2, %p370_p0  ;;  %p4917_p6 = por %p377_p4, %p376_p3 }
   0xe   : > { %5947 = sst [smem:[#allocation9_spill]] %s4911_s27  ;;  %p4449_p7 = scmp.ge.s32.totalorder %s4784_s21, 1 }
   0xf   : > { %s5949_s29 = scalar_select %p4917_p6, 1, 0 }
  0x10   : > { %p450_p8 = scmp.lt.s32.totalorder %s4784_s21, 3 }
  0x11   : > { %5950 = sst [smem:[#allocation10_spill]] %s5949_s29 }
  0x12   : > { %p451_p9 = pnand %p4449_p7, %p450_p8 }
  0x14   : > { %454 = sbr.rel (%p451_p9) target bundleno = 1613 (0x64d), region = 80 }
  0x19   : > { %p503_p10 = scmp.lt.s32.totalorder %s4896_s22, 1  ;;  %v4786_v0 = vmov 0   ;;  %v518_v1 = vld [vmem:[%s5885_s4] sm:$0xf]  ;;  %s5951_s0 = sld [smem:[#allocation29_spill]]  ;;  %vm524_vm0 = vcmask 64512  }
  0x1a   : > { %4720 = vset.pattern.permute.xlu0 %v4786_v0  ;;  %4721 = vset.pattern.permute.xlu1 %v4786_v0  ;;  %v517_v2 = vld [vmem:[%s5884_s3] sm:$0xf]  ;;  %s4787_s18 = smov 17   ;;  %s4788_s20 = smov 16   ;;  %v4459_v24 = vld [vmem:[%s5883_s2 + $0x4] sm:$0xf] }
  0x1b   : > { %s504_s17 = scalar_select %p503_p10, %s4896_s22, 1  ;;  %521 = vperm.xlu0 %4720, %v518_v1   ;;  %v612_v20 = vld [vmem:[%s5887_s6] sm:$0xff]  ;;  %vm661_vm1 = vcmask 130048   ;;  %v5026_v27 = vperm.slane %v4459_v24, 1  ;;  %vm627_vm2 = vcmask 138240   ;;  %vm689_vm3 = vcmask 1043456  }
  0x1c   : > { %s4789_s21 = smov 15   ;;  %s4790_s24 = smov 1   ;;  %v613_v25 = vld [vmem:[%s5883_s2] sm:$0xf]  ;;  %v4460_v35 = vld [vmem:[%s5886_s5 + $0x8] sm:$0xff]  ;;  %vm685_vm4 = vcmask 31744  }
  0x1d   : > { %s4669_s23 = sshll.u32 %s504_s17, 4  ;;  %s5903_s30 = smov 112   ;;  %v5024_v26 = vperm.slane %v613_v25, 1  ;;  %v5038_v36 = vperm.slane %v4459_v24, 0  ;;  %v5040_v37 = vperm.slane %v613_v25, 0  ;;  %v649_v45 = vld [vmem:[%s5886_s5] sm:$0xff] }
  0x1e   : > { %s512_s29 = scalar_lea.vmem %s5882_s1, %s4669_s23  ;;  %s4794_s16 = smov 111   ;;  %v4477_v46 = vld [vmem:[%s5883_s2 + $0x8] sm:$0xf]  ;;  %v5059_v47 = vperm.slane %v4459_v24, 2  ;;  %v5061_v48 = vperm.slane %v4459_v24, 3  ;;  %vm888_vm5 = vcmask 121856  }
  0x1f   : > { %s507_s27 = scalar_lea.vmem %s5951_s0, %s4669_s23  ;;  %v515_v5 = vld [vmem:[%s512_s29] sm:$0xff]  ;;  %v516_v6 = vld [vmem:[%s512_s29 + $0x8] sm:$0xff]  ;;  %s5905_s29 = smov 127   ;;  %v5063_v49 = vperm.slane %v4477_v46, 1  ;;  %v4478_v59 = vld [vmem:[%s5886_s5 + $0x10] sm:$0xff]  ;;  %v5082_v60 = vperm.slane %v613_v25, 2 }
  0x20   : > { %v513_v3 = vld [vmem:[%s507_s27] sm:$0xff]  ;;  %v514_v4 = vld [vmem:[%s507_s27 + $0x8] sm:$0xff]  ;;  %583 = vmatpush.msra.mxu2 %v515_v5  ;;  %603 = vmatpush.msra.mxu3 %v516_v6  ;;  %s4791_s27 = smov 113   ;;  %v5084_v61 = vperm.slane %v613_v25, 3  ;;  %v5086_v62 = vperm.slane %v4477_v46, 0  ;;  %v5089_v63 = vperm.slane %v4477_v46, 3 }
  0x21   : > { %543 = vmatpush.msra.mxu0 %v513_v3  ;;  %563 = vmatpush.msra.mxu1 %v514_v4  ;;  %v5091_v0 = vperm.slane %v4477_v46, 2  ;;  %vm1022_vm6 = vcmask 7168   ;;  %vm1252_vm7 = vcmask 1039360   ;;  %vm1386_vm8 = vcmask 924672   ;;  %s500_s17 = sand.u32 1, %s4776_s19  }
  0x22   : > { %4455 = vmatmul.msk.f32.vlgmr.msra.gmra.mxu0 %vm524_vm0, %v517_v2  ;;  %4456 = vmatmul.msk.f32.vlgmr.msra.gmra.mxu1 %vm524_vm0, %v517_v2  ;;  %vm1520_vm9 = vcmask 916480   ;;  %vm1654_vm10 = vcmask 908288   ;;  %s4450_s23 = sshll.u32 %s500_s17, 4 }
  0x23   : > { %4457 = vmatmul.msk.f32.vlgmr.msra.gmra.mxu2 %vm524_vm0, %v517_v2  ;;  %4458 = vmatmul.msk.f32.vlgmr.msra.gmra.mxu3 %vm524_vm0, %v517_v2 }
  0x8d   : > { %v522_v7 = vpop.permute.xlu0 %521 }
  0x9f   : > { %v545_v8 = vpop.f32.mrf.mxu0  ;;  %v565_v9 = vpop.f32.mrf.mxu1 }
  0xa0   : > { %v546_v10 = vadd.f32 %v545_v8, %v522_v7  ;;  %v566_v11 = vadd.f32 %v565_v9, %v522_v7 }
  0xa2   : > { %v4941_v12 = vmax.f32 %v546_v10, 0.0  ;;  %v4943_v13 = vmax.f32 %v566_v11, 0.0 }
  0xa4   : > { %623 = vrot.lane.b32.xlu0 %v4943_v13, %s4787_s18  ;;  %657 = vrot.lane.b32.xlu1 %v4943_v13, %s4788_s20 }
  0xa5   : > { %655 = vrot.lane.b32.xlu2 %v4941_v12, %s4788_s20 }
  0xa6   : > { %v605_v14 = vpop.f32.mrf.mxu3  ;;  %v585_v17 = vpop.f32.mrf.mxu2 }
  0xa7   : > { %v606_v15 = vadd.f32 %v605_v14, %v522_v7  ;;  %v586_v18 = vadd.f32 %v585_v17, %v522_v7  ;;  %v4487_v14 = vld [vmem:[%s5883_s2 + $0xc] sm:$0xf] }
  0xa9   : > { %v4951_v16 = vmax.f32 %v606_v15, 0.0  ;;  %v4959_v19 = vmax.f32 %v586_v18, 0.0  ;;  %v5113_v18 = vperm.slane %v4487_v14, 1 }
  0xac   : > { %652 = vrot.lane.b32.xlu0 %v4951_v16, %s4788_s20  ;;  %884 = vrot.lane.b32.xlu1 %v4943_v13, %s4789_s21 }
  0xad   : > { %621 = vrot.lane.b32.xlu2 %v4941_v12, %s4787_s18 }
  0xb4   : > { %659 = vrot.lane.b32.xlu1 %v4959_v19, %s4788_s20  ;;  %882 = vrot.lane.b32.xlu0 %v4941_v12, %s4789_s21 }
  0xb5   : > { %615 = vrot.lane.b32.xlu2 %v4951_v16, %s4787_s18 }
  0xbc   : > { %625 = vrot.lane.b32.xlu1 %v4959_v19, %s4787_s18  ;;  %879 = vrot.lane.b32.xlu0 %v4951_v16, %s4789_s21 }
  0xbd   : > { %886 = vrot.lane.b32.xlu2 %v4959_v19, %s4789_s21 }
  0xc4   : > { %1016 = vrot.lane.b32.xlu1 %v4941_v12, %s4790_s24  ;;  %1020 = vrot.lane.b32.xlu0 %v4959_v19, %s4790_s24 }
  0xc5   : > { %1018 = vrot.lane.b32.xlu2 %v4943_v13, %s4790_s24 }
  0xcc   : > { %1013 = vrot.lane.b32.xlu1 %v4951_v16, %s4790_s24  ;;  %1378 = vrot.lane.b32.xlu0 %v4941_v12, %s4791_s27 }
  0xcd   : > { %1244 = vrot.lane.b32.xlu2 %v4941_v12, %s5905_s29 }
  0xd4   : > { %1512 = vrot.lane.b32.xlu1 %v4941_v12, %s5903_s30  ;;  %1248 = vrot.lane.b32.xlu0 %v4959_v19, %s5905_s29 }
  0xd5   : > { %1246 = vrot.lane.b32.xlu2 %v4943_v13, %s5905_s29 }
  0xdc   : > { %1250 = vrot.lane.b32.xlu1 %v4951_v16, %s5905_s29  ;;  %1380 = vrot.lane.b32.xlu0 %v4943_v13, %s4791_s27  ;;  %s5970_s29 = smov 127  }
  0xdd   : > { %1384 = vrot.lane.b32.xlu2 %v4951_v16, %s4791_s27 }
  0xe4   : > { %1382 = vrot.lane.b32.xlu1 %v4959_v19, %s4791_s27  ;;  %1518 = vrot.lane.b32.xlu0 %v4951_v16, %s5903_s30 }
  0xe5   : > { %1516 = vrot.lane.b32.xlu2 %v4959_v19, %s5903_s30 }
  0xec   : > { %1514 = vrot.lane.b32.xlu1 %v4943_v13, %s5903_s30  ;;  %1650 = vrot.lane.b32.xlu0 %v4959_v19, %s4794_s16  ;;  %s5971_s30 = smov 112  }
  0xed   : > { %1646 = vrot.lane.b32.xlu2 %v4941_v12, %s4794_s16 }
  0xf4   : > { %1652 = vrot.lane.b32.xlu1 %v4951_v16, %s4794_s16  ;;  %1780 = vperm.xlu0 %4720, %v612_v20   ;;  %v5115_v20 = vperm.slane %v4487_v14, 2 }
  0xf5   : > { %1648 = vrot.lane.b32.xlu2 %v4943_v13, %s4794_s16 }
  0xff   : > { %v656_v21 = vpop.permute.xlu2 %655 }
 0x107   : > { %v622_v22 = vpop.permute.xlu2 %621 }
 0x10f   : > { %v5016_v23 = vpop.permute.xlu2 %615 }
 0x110   : > { %v635_v38 = vsel %vm627_vm2, %v5016_v23, %v622_v22 }
 0x111   : > { %v645_v44 = vmul.f32 %v5040_v37, %v635_v38 }
 0x116   : > { %v624_v28 = vpop.permute.xlu0 %623  ;;  %v658_v29 = vpop.permute.xlu1 %657 }
 0x117   : > { %v628_v30 = vsel %vm627_vm2, %v622_v22, %v624_v28  ;;  %v662_v31 = vsel %vm661_vm1, %v656_v21, %v658_v29  ;;  %v887_v32 = vpop.permute.xlu2 %886 }
 0x118   : > { %v646_v33 = vmul.f32 %v5024_v26, %v628_v30  ;;  %v680_v34 = vmul.f32 %v5026_v27, %v662_v31  ;;  %v5135_v30 = vperm.slane %v4487_v14, 0  ;;  %v5137_v31 = vperm.slane %v4487_v14, 3 }
 0x11a   : > { %4463 = vmatpush.msk.msrb.mxu1 %vm689_vm3, %v680_v34  ;;  %5952 = vst [vmem:[#allocation11_spill] sm:$0xff] %v5135_v30 }
 0x11b   : > { %4464 = vmatmul.msk.f32.vlgmr.msrb.gmra.mxu1 %vm685_vm4, %v4460_v35  ;;  %5953 = vst [vmem:[#allocation12_spill] sm:$0xff] %v5137_v31 }
 0x11c   : > { %4471 = vmatpush.msk.msra.mxu1 %vm689_vm3, %v646_v33 }
 0x11e   : > { %v653_v39 = vpop.permute.xlu0 %652  ;;  %v885_v40 = vpop.permute.xlu1 %884 }
 0x11f   : > { %v669_v41 = vsel %vm661_vm1, %v653_v39, %v656_v21  ;;  %v5045_v42 = vpop.permute.xlu2 %1018  ;;  %v890_v1 = vsel %vm888_vm5, %v885_v40, %v887_v32 }
 0x120   : > { %v679_v43 = vmul.f32 %v5038_v36, %v669_v41  ;;  %v908_v15 = vmul.f32 %v5091_v0, %v890_v1 }
 0x122   : > { %4461 = vmatpush.msk.msrb.mxu0 %vm689_vm3, %v679_v43 }
 0x123   : > { %4462 = vmatmul.msk.f32.vlgmr.msrb.gmra.mxu0 %vm685_vm4, %v4460_v35  ;;  %4472 = vmatmul.msk.f32.vlgmr.msra.gmra.mxu1 %vm685_vm4, %v649_v45 }
 0x124   : > { %4469 = vmatpush.msk.msra.mxu0 %vm689_vm3, %v645_v44 }
 0x126   : > { %v660_v50 = vpop.permute.xlu1 %659  ;;  %v883_v51 = vpop.permute.xlu0 %882 }
 0x127   : > { %v663_v52 = vsel %vm661_vm1, %v658_v29, %v660_v50  ;;  %v664_v53 = vsel %vm661_vm1, %v660_v50, %v653_v39  ;;  %v889_v54 = vsel %vm888_vm5, %v883_v51, %v885_v40  ;;  %v5071_v58 = vpop.permute.xlu2 %1244  ;;  %v4488_v29 = vld [vmem:[%s5886_s5 + $0x18] sm:$0xff] }
 0x128   : > { %v681_v55 = vmul.f32 %v5059_v47, %v663_v52  ;;  %v682_v56 = vmul.f32 %v5061_v48, %v664_v53  ;;  %v907_v57 = vmul.f32 %v5063_v49, %v889_v54 }
 0x12a   : > { %4465 = vmatpush.msk.msrb.mxu2 %vm689_vm3, %v681_v55  ;;  %4467 = vmatpush.msk.msrb.mxu3 %vm689_vm3, %v682_v56 }
 0x12b   : > { %4481 = vmatpush.msk.msrb.mxu1 %vm689_vm3, %v907_v57  ;;  %4466 = vmatmul.msk.f32.vlgmr.msrb.gmra.mxu2 %vm685_vm4, %v4460_v35 }
 0x12c   : > { %4468 = vmatmul.msk.f32.vlgmr.msrb.gmra.mxu3 %vm685_vm4, %v4460_v35  ;;  %4470 = vmatmul.msk.f32.vlgmr.msra.gmra.mxu0 %vm685_vm4, %v649_v45 }
 0x12d   : > { %4482 = vmatmul.msk.f32.vlgmr.msrb.gmra.mxu1 %vm685_vm4, %v4478_v59 }
 0x12e   : > { %v626_v2 = vpop.permute.xlu1 %625  ;;  %v880_v3 = vpop.permute.xlu0 %879 }
 0x12f   : > { %v629_v4 = vsel %vm627_vm2, %v624_v28, %v626_v2  ;;  %v630_v5 = vsel %vm627_vm2, %v626_v2, %v5016_v23  ;;  %v891_v6 = vsel %vm888_vm5, %v887_v32, %v880_v3  ;;  %v896_v7 = vsel %vm888_vm5, %v880_v3, %v883_v51  ;;  %v1247_v17 = vpop.permute.xlu2 %1246  ;;  %v4506_v32 = vld [vmem:[%s5883_s2 + $0x14] sm:$0xf] }
 0x130   : > { %v647_v8 = vmul.f32 %v5082_v60, %v629_v4  ;;  %v648_v9 = vmul.f32 %v5084_v61, %v630_v5  ;;  %v906_v10 = vmul.f32 %v5086_v62, %v896_v7  ;;  %v909_v11 = vmul.f32 %v5089_v63, %v891_v6 }
 0x131   : > { %v5148_v39 = vperm.slane %v4506_v32, 0  ;;  %v5165_v44 = vperm.slane %v4506_v32, 1  ;;  %v5187_v53 = vperm.slane %v4506_v32, 2  ;;  %v5189_v54 = vperm.slane %v4506_v32, 3 }
 0x132   : > { %4473 = vmatpush.msk.msra.mxu2 %vm689_vm3, %v647_v8  ;;  %4475 = vmatpush.msk.msra.mxu3 %vm689_vm3, %v648_v9  ;;  %v4526_v9 = vld [vmem:[%s5883_s2 + $0x1c] sm:$0xf] }
 0x133   : > { %4479 = vmatpush.msk.msrb.mxu0 %vm689_vm3, %v906_v10  ;;  %4474 = vmatmul.msk.f32.vlgmr.msra.gmra.mxu2 %vm685_vm4, %v649_v45  ;;  %5954 = vst [vmem:[#allocation13_spill] sm:$0xff] %v5148_v39  ;;  %v5221_v14 = vperm.slane %v4526_v9, 3 }
 0x134   : > { %4476 = vmatmul.msk.f32.vlgmr.msra.gmra.mxu3 %vm685_vm4, %v649_v45  ;;  %4483 = vmatpush.msk.msrb.mxu2 %vm689_vm3, %v908_v15  ;;  %5955 = vst [vmem:[#allocation14_spill] sm:$0xff] %v5165_v44  ;;  %v5224_v15 = vperm.slane %v4526_v9, 2 }
 0x135   : > { %4485 = vmatpush.msk.msrb.mxu3 %vm689_vm3, %v909_v11  ;;  %4480 = vmatmul.msk.f32.vlgmr.msrb.gmra.mxu0 %vm685_vm4, %v4478_v59  ;;  %5956 = vst [vmem:[#allocation15_spill] sm:$0xff] %v5187_v53 }
 0x136   : > { %v1017_v21 = vpop.permute.xlu1 %1016  ;;  %v1021_v22 = vpop.permute.xlu0 %1020  ;;  %5957 = vst [vmem:[#allocation16_spill] sm:$0xff] %v5189_v54 }
 0x137   : > { %v1023_v23 = vsel %vm1022_vm6, %v1017_v21, %v5045_v42  ;;  %v1024_v24 = vsel %vm1022_vm6, %v5045_v42, %v1021_v22  ;;  %v5142_v33 = vpop.permute.xlu2 %1384  ;;  %v1253_v42 = vsel %vm1252_vm7, %v5071_v58, %v1247_v17  ;;  %5962 = vst [vmem:[#allocation21_spill] sm:$0xff] %v5221_v14 }
 0x138   : > { %v1041_v25 = vmul.f32 %v5113_v18, %v1023_v23  ;;  %v1042_v28 = vmul.f32 %v5115_v20, %v1024_v24  ;;  %v1271_v43 = vmul.f32 %v5148_v39, %v1253_v42  ;;  %5963 = vst [vmem:[#allocation22_spill] sm:$0xff] %v5224_v15 }
 0x13a   : > { %4491 = vmatpush.msk.msra.mxu1 %vm689_vm3, %v1041_v25  ;;  %4493 = vmatpush.msk.msra.mxu2 %vm689_vm3, %v1042_v28 }
 0x13b   : > { %4484 = vmatmul.msk.f32.vlgmr.msrb.gmra.mxu2 %vm685_vm4, %v4478_v59  ;;  %4492 = vmatmul.msk.f32.vlgmr.msra.gmra.mxu1 %vm685_vm4, %v4488_v29 }
 0x13c   : > { %4486 = vmatmul.msk.f32.vlgmr.msrb.gmra.mxu3 %vm685_vm4, %v4478_v59  ;;  %4500 = vmatpush.msk.msrb.mxu1 %vm689_vm3, %v4943_v13 }
 0x13d   : > { %4502 = vmatpush.msk.msrb.mxu2 %vm689_vm3, %v4959_v19  ;;  %v4497_v19 = vld [vmem:[%s5886_s5 + $0x20] sm:$0xff] }
 0x13e   : > { %v1014_v34 = vpop.permute.xlu1 %1013  ;;  %v1379_v35 = vpop.permute.xlu0 %1378 }
 0x13f   : > { %v1025_v38 = vsel %vm1022_vm6, %v1021_v22, %v1014_v34  ;;  %v1030_v13 = vsel %vm1022_vm6, %v1014_v34, %v1017_v21  ;;  %v5173_v50 = vpop.permute.xlu2 %1516  ;;  %v1395_v4 = vsel %vm1386_vm8, %v5142_v33, %v1379_v35  ;;  %v4517_v34 = vld [vmem:[%s5886_s5 + $0x30] sm:$0xff] }
 0x140   : > { %v1040_v40 = vmul.f32 %v5135_v30, %v1030_v13  ;;  %v1043_v41 = vmul.f32 %v5137_v31, %v1025_v38  ;;  %v5249_v13 = vperm.slane %v4526_v9, 0 }
 0x142   : > { %4489 = vmatpush.msk.msra.mxu0 %vm689_vm3, %v1040_v40  ;;  %4495 = vmatpush.msk.msra.mxu3 %vm689_vm3, %v1043_v41  ;;  %5964 = vst [vmem:[#allocation23_spill] sm:$0xff] %v5249_v13  ;;  %v5251_v40 = vperm.slane %v4526_v9, 1  ;;  %v4537_v9 = vld [vmem:[%s5886_s5 + $0x40] sm:$0xff] }
 0x143   : > { %4490 = vmatmul.msk.f32.vlgmr.msra.gmra.mxu0 %vm685_vm4, %v4488_v29  ;;  %4494 = vmatmul.msk.f32.vlgmr.msra.gmra.mxu2 %vm685_vm4, %v4488_v29 }
 0x144   : > { %4496 = vmatmul.msk.f32.vlgmr.msra.gmra.mxu3 %vm685_vm4, %v4488_v29  ;;  %4498 = vmatpush.msk.msrb.mxu0 %vm689_vm3, %v4941_v12  ;;  %v4507_v12 = vld [vmem:[%s5886_s5 + $0x28] sm:$0xff]  ;;  %5965 = vst [vmem:[#allocation24_spill] sm:$0xff] %v5251_v40 }
 0x145   : > { %4501 = vmatmul.msk.f32.vlgmr.msrb.gmra.mxu1 %vm685_vm4, %v4497_v19  ;;  %4504 = vmatpush.msk.msrb.mxu3 %vm689_vm3, %v4951_v16  ;;  %v4516_v16 = vld [vmem:[%s5883_s2 + $0x18] sm:$0xf] }
 0x146   : > { %4508 = vmatpush.msk.msra.mxu0 %vm689_vm3, %v1271_v43  ;;  %v5171_v45 = vpop.permute.xlu1 %1512  ;;  %v1249_v46 = vpop.permute.xlu0 %1248  ;;  %v5191_v55 = vperm.slane %v4516_v16, 0  ;;  %v5194_v59 = vperm.slane %v4516_v16, 3  ;;  %v5217_v10 = vperm.slane %v4516_v16, 1  ;;  %v5219_v11 = vperm.slane %v4516_v16, 2 }
 0x147   : > { %v1254_v51 = vsel %vm1252_vm7, %v1247_v17, %v1249_v46  ;;  %v5205_v8 = vpop.permute.xlu2 %1646 }
 0x148   : > { %v1272_v52 = vmul.f32 %v5165_v44, %v1254_v51  ;;  %5958 = vst [vmem:[#allocation17_spill] sm:$0xff] %v5191_v55 }
 0x149   : > { %5959 = vst [vmem:[#allocation18_spill] sm:$0xff] %v5194_v59 }
 0x14a   : > { %4510 = vmatpush.msk.msra.mxu1 %vm689_vm3, %v1272_v52  ;;  %5960 = vst [vmem:[#allocation19_spill] sm:$0xff] %v5217_v10 }
 0x14b   : > { %4499 = vmatmul.msk.f32.vlgmr.msrb.gmra.mxu0 %vm685_vm4, %v4497_v19  ;;  %4503 = vmatmul.msk.f32.vlgmr.msrb.gmra.mxu2 %vm685_vm4, %v4497_v19  ;;  %5961 = vst [vmem:[#allocation20_spill] sm:$0xff] %v5219_v11 }
 0x14c   : > { %4505 = vmatmul.msk.f32.vlgmr.msrb.gmra.mxu3 %vm685_vm4, %v4497_v19 }
 0x14d   : > { %4511 = vmatmul.msk.f32.vlgmr.msra.gmra.mxu1 %vm685_vm4, %v4507_v12 }
 0x14e   : > { %v1251_v56 = vpop.permute.xlu1 %1250  ;;  %v1381_v57 = vpop.permute.xlu0 %1380 }
 0x14f   : > { %v1255_v1 = vsel %vm1252_vm7, %v1249_v46, %v1251_v56  ;;  %v1261_v2 = vsel %vm1252_vm7, %v1251_v56, %v5071_v58  ;;  %v1387_v3 = vsel %vm1386_vm8, %v1379_v35, %v1381_v57  ;;  %v1408_v58 = vmul.f32 %v5194_v59, %v1395_v4  ;;  %v1649_v38 = vpop.permute.xlu2 %1648 }
 0x150   : > { %v1273_v5 = vmul.f32 %v5187_v53, %v1255_v1  ;;  %v1274_v6 = vmul.f32 %v5189_v54, %v1261_v2  ;;  %v1405_v7 = vmul.f32 %v5191_v55, %v1387_v3  ;;  %v1655_v19 = vsel %vm1654_vm10, %v5205_v8, %v1649_v38 }
 0x152   : > { %4512 = vmatpush.msk.msra.mxu2 %vm689_vm3, %v1273_v5  ;;  %4514 = vmatpush.msk.msra.mxu3 %vm689_vm3, %v1274_v6 }
 0x153   : > { %4518 = vmatpush.msk.msrb.mxu0 %vm689_vm3, %v1405_v7  ;;  %4513 = vmatmul.msk.f32.vlgmr.msra.gmra.mxu2 %vm685_vm4, %v4507_v12 }
 0x154   : > { %4509 = vmatmul.msk.f32.vlgmr.msra.gmra.mxu0 %vm685_vm4, %v4507_v12  ;;  %4515 = vmatmul.msk.f32.vlgmr.msra.gmra.mxu3 %vm685_vm4, %v4507_v12 }
 0x155   : > { %4524 = vmatpush.msk.msrb.mxu3 %vm689_vm3, %v1408_v58 }
 0x156   : > { %v1383_v17 = vpop.permute.xlu1 %1382  ;;  %v1519_v21 = vpop.permute.xlu0 %1518 }
 0x157   : > { %v1388_v22 = vsel %vm1386_vm8, %v1381_v57, %v1383_v17  ;;  %v1389_v23 = vsel %vm1386_vm8, %v1383_v17, %v5142_v33  ;;  %v1523_v24 = vsel %vm1520_vm9, %v5173_v50, %v1519_v21  ;;  %v1529_v25 = vsel %vm1520_vm9, %v1519_v21, %v5171_v45  ;;  %v4536_v33 = vld [vmem:[%s5883_s2 + $0x20] sm:$0xf]  ;;  %v4527_v57 = vld [vmem:[%s5886_s5 + $0x38] sm:$0xff] }
 0x158   : > { %v1406_v28 = vmul.f32 %v5217_v10, %v1388_v22  ;;  %v1407_v29 = vmul.f32 %v5219_v11, %v1389_v23  ;;  %v1542_v32 = vmul.f32 %v5221_v14, %v1529_v25  ;;  %v1541_v35 = vmul.f32 %v5224_v15, %v1523_v24 }
 0x159   : > { %v5253_v41 = vperm.slane %v4536_v33, 0  ;;  %v5257_v42 = vperm.slane %v4536_v33, 1 }
 0x15a   : > { %4520 = vmatpush.msk.msrb.mxu1 %vm689_vm3, %v1406_v28  ;;  %4522 = vmatpush.msk.msrb.mxu2 %vm689_vm3, %v1407_v29 }
 0x15b   : > { %4534 = vmatpush.msk.msra.mxu3 %vm689_vm3, %v1542_v32  ;;  %4521 = vmatmul.msk.f32.vlgmr.msrb.gmra.mxu1 %vm685_vm4, %v4517_v34  ;;  %5966 = vst [vmem:[#allocation25_spill] sm:$0xff] %v5253_v41  ;;  %v1673_v1 = vmul.f32 %v5253_v41, %v1655_v19 }
 0x15c   : > { %4519 = vmatmul.msk.f32.vlgmr.msrb.gmra.mxu0 %vm685_vm4, %v4517_v34  ;;  %4523 = vmatmul.msk.f32.vlgmr.msrb.gmra.mxu2 %vm685_vm4, %v4517_v34  ;;  %5967 = vst [vmem:[#allocation26_spill] sm:$0xff] %v5257_v42 }
 0x15d   : > { %4525 = vmatmul.msk.f32.vlgmr.msrb.gmra.mxu3 %vm685_vm4, %v4517_v34  ;;  %4532 = vmatpush.msk.msra.mxu2 %vm689_vm3, %v1541_v35 }
 0x15e   : > { %v1515_v43 = vpop.permute.xlu1 %1514  ;;  %v1651_v46 = vpop.permute.xlu0 %1650 }
 0x15f   : > { %v1521_v51 = vsel %vm1520_vm9, %v5171_v45, %v1515_v43  ;;  %v1522_v52 = vsel %vm1520_vm9, %v1515_v43, %v5173_v50  ;;  %v1656_v12 = vsel %vm1654_vm10, %v1649_v38, %v1651_v46  ;;  %v5279_v45 = vperm.slane %v4536_v33, 2 }
 0x160   : > { %v1539_v16 = vmul.f32 %v5249_v13, %v1521_v51  ;;  %v1540_v56 = vmul.f32 %v5251_v40, %v1522_v52  ;;  %v1674_v2 = vmul.f32 %v5257_v42, %v1656_v12  ;;  %v5281_v50 = vperm.slane %v4536_v33, 3 }
 0x161   : > { %5968 = vst [vmem:[#allocation27_spill] sm:$0xff] %v5279_v45 }
 0x162   : > { %4528 = vmatpush.msk.msra.mxu0 %vm689_vm3, %v1539_v16  ;;  %4530 = vmatpush.msk.msra.mxu1 %vm689_vm3, %v1540_v56  ;;  %5969 = vst [vmem:[#allocation28_spill] sm:$0xff] %v5281_v50 }
 0x163   : > { %4531 = vmatmul.msk.f32.vlgmr.msra.gmra.mxu1 %vm685_vm4, %v4527_v57 }
 0x164   : > { %4538 = vmatpush.msk.msrb.mxu0 %vm689_vm3, %v1673_v1  ;;  %4533 = vmatmul.msk.f32.vlgmr.msra.gmra.mxu2 %vm685_vm4, %v4527_v57 }
 0x165   : > { %4529 = vmatmul.msk.f32.vlgmr.msra.gmra.mxu0 %vm685_vm4, %v4527_v57  ;;  %4535 = vmatmul.msk.f32.vlgmr.msra.gmra.mxu3 %vm685_vm4, %v4527_v57 }
 0x166   : > { %4540 = vmatpush.msk.msrb.mxu1 %vm689_vm3, %v1674_v2  ;;  %v1653_v3 = vpop.permute.xlu1 %1652 }
 0x167   : > { %v1657_v4 = vsel %vm1654_vm10, %v1651_v46, %v1653_v3  ;;  %v1663_v5 = vsel %vm1654_vm10, %v1653_v3, %v5205_v8 }
 0x168   : > { %v1675_v6 = vmul.f32 %v5279_v45, %v1657_v4  ;;  %v1676_v7 = vmul.f32 %v5281_v50, %v1663_v5 }
 0x16a   : > { %4542 = vmatpush.msk.msrb.mxu2 %vm689_vm3, %v1675_v6  ;;  %4544 = vmatpush.msk.msrb.mxu3 %vm689_vm3, %v1676_v7 }
 0x16b   : > { %4541 = vmatmul.msk.f32.vlgmr.msrb.gmra.mxu1 %vm685_vm4, %v4537_v9 }
 0x16c   : > { %4543 = vmatmul.msk.f32.vlgmr.msrb.gmra.mxu2 %vm685_vm4, %v4537_v9 }
 0x16d   : > { %4539 = vmatmul.msk.f32.vlgmr.msrb.gmra.mxu0 %vm685_vm4, %v4537_v9  ;;  %4545 = vmatmul.msk.f32.vlgmr.msrb.gmra.mxu3 %vm685_vm4, %v4537_v9 }
 0x198   : > { %v739_v8 = vpop.f32.mrf.mxu1 }
 0x1a0   : > { %v719_v58 = vpop.f32.mrf.mxu0  ;;  %v834_v17 = vpop.f32.mrf.mxu1 }
 0x1a1   : > { %v835_v2 = vadd.f32 %v834_v17, %v739_v8 }
 0x1a9   : > { %v814_v21 = vpop.f32.mrf.mxu0 }
 0x1aa   : > { %v964_v24 = vpop.f32.mrf.mxu1  ;;  %v815_v4 = vadd.f32 %v814_v21, %v719_v58 }
 0x1ab   : > { %v1008_v5 = vadd.f32 %v964_v24, %v835_v2 }
 0x1ae   : > { %v759_v22 = vpop.f32.mrf.mxu2 }
 0x1af   : > { %v779_v23 = vpop.f32.mrf.mxu3 }
 0x1b2   : > { %v944_v29 = vpop.f32.mrf.mxu0 }
 0x1b3   : > { %v1007_v45 = vadd.f32 %v944_v29, %v815_v4  ;;  %v1781_v29 = vpop.permute.xlu0 %1780 }
 0x1b6   : > { %v854_v25 = vpop.f32.mrf.mxu2 }
 0x1b7   : > { %v874_v28 = vpop.f32.mrf.mxu3  ;;  %v855_v40 = vadd.f32 %v854_v25, %v759_v22 }
 0x1b8   : > { %v1098_v32 = vpop.f32.mrf.mxu1  ;;  %v875_v54 = vadd.f32 %v874_v28, %v779_v23 }
 0x1b9   : > { %v1142_v6 = vadd.f32 %v1098_v32, %v1008_v5 }
 0x1be   : > { %v984_v34 = vpop.f32.mrf.mxu2 }
 0x1bf   : > { %v1004_v35 = vpop.f32.mrf.mxu3  ;;  %v1009_v11 = vadd.f32 %v984_v34, %v855_v40 }
 0x1c0   : > { %v1078_v33 = vpop.f32.mrf.mxu0  ;;  %v1010_v32 = vadd.f32 %v1004_v35, %v875_v54 }
 0x1c1   : > { %v1141_v13 = vadd.f32 %v1078_v33, %v1007_v45 }
 0x1c2   : > { %v1195_v38 = vpop.f32.mrf.mxu1 }
 0x1c3   : > { %v1239_v42 = vadd.f32 %v1195_v38, %v1142_v6 }
 0x1c6   : > { %v1118_v19 = vpop.f32.mrf.mxu2 }
 0x1c7   : > { %v1138_v43 = vpop.f32.mrf.mxu3  ;;  %v1143_v59 = vadd.f32 %v1118_v19, %v1009_v11 }
 0x1c8   : > { %v1175_v46 = vpop.f32.mrf.mxu0  ;;  %v1144_v22 = vadd.f32 %v1138_v43, %v1010_v32  ;;  %v1791_v43 = vld [vmem:[%s5889_s8] sm:$0xff] }
 0x1c9   : > { %v1238_v10 = vadd.f32 %v1175_v46, %v1141_v13 }
 0x1ca   : > { %v1329_v12 = vpop.f32.mrf.mxu1 }
 0x1cb   : > { %v1373_v15 = vadd.f32 %v1329_v12, %v1239_v42 }
 0x1ce   : > { %v1215_v51 = vpop.f32.mrf.mxu2 }
 0x1cf   : > { %v1235_v52 = vpop.f32.mrf.mxu3  ;;  %v1240_v58 = vadd.f32 %v1215_v51, %v1143_v59 }
 0x1d0   : > { %v1241_v13 = vadd.f32 %v1235_v52, %v1144_v22 }
 0x1d1   : > { %v1309_v16 = vpop.f32.mrf.mxu0 }
 0x1d2   : > { %v1372_v53 = vadd.f32 %v1309_v16, %v1238_v10 }
 0x1d6   : > { %v1349_v56 = vpop.f32.mrf.mxu2 }
 0x1d7   : > { %v1369_v57 = vpop.f32.mrf.mxu3  ;;  %v1374_v38 = vadd.f32 %v1349_v56, %v1240_v58  ;;  %v4546_v58 = vld [vmem:[%s5888_s7 + $0x8] sm:$0xff] }
 0x1d8   : > { %v1463_v1 = vpop.f32.mrf.mxu1 }
 0x1d9   : > { %v1443_v3 = vpop.f32.mrf.mxu0  ;;  %v1507_v14 = vadd.f32 %v1463_v1, %v1373_v15 }
 0x1da   : > { %v1506_v2 = vadd.f32 %v1443_v3, %v1372_v53 }
 0x1df   : > { %v1483_v7 = vpop.f32.mrf.mxu2 }
 0x1e0   : > { %v1503_v9 = vpop.f32.mrf.mxu3  ;;  %v1597_v50 = vpop.f32.mrf.mxu1  ;;  %v1508_v40 = vadd.f32 %v1483_v7, %v1374_v38 }
 0x1e1   : > { %v1641_v8 = vadd.f32 %v1597_v50, %v1507_v14  ;;  %v1375_v14 = vadd.f32 %v1369_v57, %v1241_v13  ;;  %v1817_v13 = vld [vmem:[%s5888_s7] sm:$0xff] }
 0x1e2   : > { %v1577_v41 = vpop.f32.mrf.mxu0 }
 0x1e3   : > { %v1640_v45 = vadd.f32 %v1577_v41, %v1506_v2  ;;  %v1509_v54 = vadd.f32 %v1503_v9, %v1375_v14 }
 0x1e7   : > { %v1617_v17 = vpop.f32.mrf.mxu2 }
 0x1e8   : > { %v1637_v21 = vpop.f32.mrf.mxu3  ;;  %v1731_v24 = vpop.f32.mrf.mxu1  ;;  %v1642_v10 = vadd.f32 %v1617_v17, %v1508_v40 }
 0x1e9   : > { %v1775_v5 = vadd.f32 %v1731_v24, %v1641_v8  ;;  %v1643_v25 = vadd.f32 %v1637_v21, %v1509_v54 }
 0x1ea   : > { %v1711_v4 = vpop.f32.mrf.mxu0 }
 0x1eb   : > { %v1784_v42 = vadd.f32 %v1781_v29, %v1775_v5  ;;  %v1774_v15 = vadd.f32 %v1711_v4, %v1640_v45 }
 0x1ed   : > { %v5299_v11 = vmax.f32 %v1784_v42, 0.0  ;;  %v1783_v59 = vadd.f32 %v1781_v29, %v1774_v15 }
 0x1ef   : > { %v1751_v50 = vpop.f32.mrf.mxu2  ;;  %2012 = vrot.lane.b32.xlu1 %v5299_v11, %s4789_s21  ;;  %1801 = vrot.lane.b32.xlu0 %v5299_v11, %s4787_s18  ;;  %v5307_v28 = vmax.f32 %v1783_v59, 0.0 }
 0x1f0   : > { %v1776_v53 = vadd.f32 %v1751_v50, %v1642_v10  ;;  %1823 = vrot.lane.b32.xlu2 %v5299_v11, %s4788_s20  ;;  %v1771_v23 = vpop.f32.mrf.mxu3 }
 0x1f1   : > { %v1777_v35 = vadd.f32 %v1771_v23, %v1643_v25 }
 0x1f2   : > { %v1785_v41 = vadd.f32 %v1781_v29, %v1776_v53 }
 0x1f3   : > { %v1786_v33 = vadd.f32 %v1781_v29, %v1777_v35 }
 0x1f4   : > { %v5309_v34 = vmax.f32 %v1785_v41, 0.0 }
 0x1f5   : > { %v5317_v19 = vmax.f32 %v1786_v33, 0.0  ;;  %v4555_v33 = vld [vmem:[%s5888_s7 + $0x10] sm:$0xff] }
 0x1f7   : > { %1825 = vrot.lane.b32.xlu0 %v5309_v34, %s4788_s20  ;;  %1821 = vrot.lane.b32.xlu1 %v5307_v28, %s4788_s20 }
 0x1f8   : > { %1799 = vrot.lane.b32.xlu2 %v5307_v28, %s4787_s18 }
 0x1ff   : > { %2010 = vrot.lane.b32.xlu0 %v5307_v28, %s4789_s21  ;;  %1818 = vrot.lane.b32.xlu1 %v5317_v19, %s4788_s20 }
 0x200   : > { %1793 = vrot.lane.b32.xlu2 %v5317_v19, %s4787_s18 }
 0x207   : > { %2007 = vrot.lane.b32.xlu0 %v5317_v19, %s4789_s21  ;;  %1803 = vrot.lane.b32.xlu1 %v5309_v34, %s4787_s18 }
 0x208   : > { %2014 = vrot.lane.b32.xlu2 %v5309_v34, %s4789_s21 }
 0x20f   : > { %2124 = vrot.lane.b32.xlu0 %v5309_v34, %s4790_s24  ;;  %2120 = vrot.lane.b32.xlu1 %v5307_v28, %s4790_s24 }
 0x210   : > { %2122 = vrot.lane.b32.xlu2 %v5299_v11, %s4790_s24 }
 0x217   : > { %2426 = vrot.lane.b32.xlu0 %v5307_v28, %s4791_s27  ;;  %2117 = vrot.lane.b32.xlu1 %v5317_v19, %s4790_s24 }
 0x218   : > { %2316 = vrot.lane.b32.xlu2 %v5307_v28, %s5970_s29 }
 0x21f   : > { %2320 = vrot.lane.b32.xlu0 %v5309_v34, %s5970_s29  ;;  %2536 = vrot.lane.b32.xlu1 %v5307_v28, %s5971_s30 }
 0x220   : > { %2318 = vrot.lane.b32.xlu2 %v5299_v11, %s5970_s29 }
 0x227   : > { %2428 = vrot.lane.b32.xlu0 %v5299_v11, %s4791_s27  ;;  %2322 = vrot.lane.b32.xlu1 %v5317_v19, %s5970_s29 }
 0x228   : > { %2432 = vrot.lane.b32.xlu2 %v5317_v19, %s4791_s27 }
 0x22f   : > { %2542 = vrot.lane.b32.xlu0 %v5317_v19, %s5971_s30  ;;  %2430 = vrot.lane.b32.xlu1 %v5309_v34, %s4791_s27 }
 0x230   : > { %2540 = vrot.lane.b32.xlu2 %v5309_v34, %s5971_s30 }
 0x237   : > { %2650 = vrot.lane.b32.xlu0 %v5309_v34, %s4794_s16  ;;  %2538 = vrot.lane.b32.xlu1 %v5299_v11, %s5971_s30 }
 0x238   : > { %2646 = vrot.lane.b32.xlu2 %v5307_v28, %s4794_s16 }
 0x23f   : > { %2758 = vperm.xlu0 %4720, %v1791_v43   ;;  %2652 = vrot.lane.b32.xlu1 %v5317_v19, %s4794_s16 }
 0x240   : > { %2648 = vrot.lane.b32.xlu2 %v5299_v11, %s4794_s16 }
 0x24a   : > { %v1824_v46 = vpop.permute.xlu2 %1823 }
 0x252   : > { %v1800_v51 = vpop.permute.xlu2 %1799 }
 0x25a   : > { %v1794_v52 = vpop.permute.xlu2 %1793 }
 0x25b   : > { %v1812_v2 = vsel %vm627_vm2, %v1794_v52, %v1800_v51 }
 0x25c   : > { %v1813_v40 = vmul.f32 %v1812_v2, %v5040_v37 }
 0x261   : > { %v2013_v12 = vpop.permute.xlu1 %2012  ;;  %v1802_v16 = vpop.permute.xlu0 %1801 }
 0x262   : > { %v2015_v56 = vpop.permute.xlu2 %2014  ;;  %v1805_v3 = vsel %vm627_vm2, %v1800_v51, %v1802_v16 }
 0x263   : > { %v1814_v21 = vmul.f32 %v1805_v3, %v5024_v26  ;;  %v2017_v59 = vsel %vm888_vm5, %v2013_v12, %v2015_v56 }
 0x264   : > { %v2026_v43 = vmul.f32 %v2017_v59, %v5091_v0  ;;  %v5973_v59 = vld [vmem:[#allocation16_spill] sm:$0xff] }
 0x269   : > { %v1826_v57 = vpop.permute.xlu0 %1825  ;;  %v1822_v1 = vpop.permute.xlu1 %1821 }
 0x26a   : > { %v1828_v6 = vsel %vm661_vm1, %v1824_v46, %v1826_v57  ;;  %v2123_v7 = vpop.permute.xlu2 %2122  ;;  %v1827_v9 = vsel %vm661_vm1, %v1822_v1, %v1824_v46 }
 0x26b   : > { %v1837_v8 = vmul.f32 %v1828_v6, %v5059_v47  ;;  %v1836_v17 = vmul.f32 %v1827_v9, %v5026_v27 }
 0x26d   : > { %1879 = vmatpush.msra.mxu1 %v1836_v17  ;;  %1899 = vmatpush.msra.mxu2 %v1837_v8 }
 0x26e   : > { %4548 = vmatmul.msk.f32.vlgmr.msra.gmra.mxu1 %vm524_vm0, %v4546_v58  ;;  %4549 = vmatmul.msk.f32.vlgmr.msra.gmra.mxu2 %vm524_vm0, %v4546_v58 }
 0x26f   : > { %1962 = vmatpush.msrb.mxu1 %v1814_v21 }
 0x271   : > { %v2011_v24 = vpop.permute.xlu0 %2010  ;;  %v1819_v32 = vpop.permute.xlu1 %1818 }
 0x272   : > { %v2016_v5 = vsel %vm888_vm5, %v2011_v24, %v2013_v12  ;;  %v1829_v29 = vsel %vm661_vm1, %v1826_v57, %v1819_v32  ;;  %v1834_v38 = vsel %vm661_vm1, %v1819_v32, %v1822_v1  ;;  %v5392_v42 = vpop.permute.xlu2 %2316  ;;  %v4560_v1 = vld [vmem:[%s5888_s7 + $0x18] sm:$0xff] }
 0x273   : > { %v2025_v4 = vmul.f32 %v2016_v5, %v5063_v49  ;;  %v1835_v22 = vmul.f32 %v1834_v38, %v5038_v36  ;;  %v1838_v45 = vmul.f32 %v1829_v29, %v5061_v48 }
 0x275   : > { %1859 = vmatpush.msra.mxu0 %v1835_v22  ;;  %1919 = vmatpush.msra.mxu3 %v1838_v45  ;;  %v4570_v22 = vld [vmem:[%s5888_s7 + $0x28] sm:$0xff] }
 0x276   : > { %2068 = vmatpush.msra.mxu1 %v2025_v4  ;;  %4547 = vmatmul.msk.f32.vlgmr.msra.gmra.mxu0 %vm524_vm0, %v4546_v58 }
 0x277   : > { %4550 = vmatmul.msk.f32.vlgmr.msra.gmra.mxu3 %vm524_vm0, %v4546_v58  ;;  %1942 = vmatpush.msrb.mxu0 %v1813_v40 }
 0x278   : > { %4552 = vmatmul.msk.f32.vlgmr.msrb.gmra.mxu1 %vm524_vm0, %v1817_v13 }
 0x279   : > { %v2008_v15 = vpop.permute.xlu0 %2007  ;;  %v1804_v10 = vpop.permute.xlu1 %1803 }
 0x27a   : > { %v2018_v14 = vsel %vm888_vm5, %v2015_v56, %v2008_v15  ;;  %v2023_v50 = vsel %vm888_vm5, %v2008_v15, %v2011_v24  ;;  %v1806_v53 = vsel %vm627_vm2, %v1802_v16, %v1804_v10  ;;  %v1807_v54 = vsel %vm627_vm2, %v1804_v10, %v1794_v52  ;;  %v2319_v46 = vpop.permute.xlu2 %2318  ;;  %v4565_v24 = vld [vmem:[%s5888_s7 + $0x20] sm:$0xff] }
 0x27b   : > { %v2024_v41 = vmul.f32 %v2023_v50, %v5086_v62  ;;  %v1815_v23 = vmul.f32 %v1806_v53, %v5082_v60  ;;  %v1816_v25 = vmul.f32 %v1807_v54, %v5084_v61  ;;  %v2027_v35 = vmul.f32 %v2018_v14, %v5089_v63  ;;  %v5972_v53 = vld [vmem:[#allocation15_spill] sm:$0xff] }
 0x27c   : > { %v2324_v21 = vsel %vm1252_vm7, %v5392_v42, %v2319_v46 }
 0x27d   : > { %1982 = vmatpush.msrb.mxu2 %v1815_v23  ;;  %2048 = vmatpush.msra.mxu0 %v2024_v41  ;;  %v2333_v32 = vmul.f32 %v2324_v21, %v5148_v39  ;;  %v5974_v23 = vld [vmem:[#allocation18_spill] sm:$0xff] }
 0x27e   : > { %2002 = vmatpush.msrb.mxu3 %v1816_v25  ;;  %4551 = vmatmul.msk.f32.vlgmr.msrb.gmra.mxu0 %vm524_vm0, %v1817_v13 }
 0x27f   : > { %4553 = vmatmul.msk.f32.vlgmr.msrb.gmra.mxu2 %vm524_vm0, %v1817_v13  ;;  %4554 = vmatmul.msk.f32.vlgmr.msrb.gmra.mxu3 %vm524_vm0, %v1817_v13 }
 0x280   : > { %4557 = vmatmul.msk.f32.vlgmr.msra.gmra.mxu1 %vm524_vm0, %v4555_v33  ;;  %2088 = vmatpush.msra.mxu2 %v2026_v43 }
 0x281   : > { %2108 = vmatpush.msra.mxu3 %v2027_v35  ;;  %v2125_v51 = vpop.permute.xlu0 %2124  ;;  %v2121_v52 = vpop.permute.xlu1 %2120 }
 0x282   : > { %v2127_v12 = vsel %vm1022_vm6, %v2123_v7, %v2125_v51  ;;  %v2126_v16 = vsel %vm1022_vm6, %v2121_v52, %v2123_v7  ;;  %v2433_v3 = vpop.permute.xlu2 %2432 }
 0x283   : > { %v2136_v56 = vmul.f32 %v2127_v12, %v5115_v20  ;;  %v2135_v57 = vmul.f32 %v2126_v16, %v5113_v18  ;;  %v5975_v12 = vld [vmem:[#allocation21_spill] sm:$0xff] }
 0x285   : > { %2178 = vmatpush.msrb.mxu1 %v2135_v57  ;;  %2198 = vmatpush.msrb.mxu2 %v2136_v56  ;;  %v5976_v56 = vld [vmem:[#allocation19_spill] sm:$0xff] }
 0x286   : > { %4556 = vmatmul.msk.f32.vlgmr.msra.gmra.mxu0 %vm524_vm0, %v4555_v33 }
 0x287   : > { %2267 = vmatpush.msra.mxu1 %v5299_v11  ;;  %4558 = vmatmul.msk.f32.vlgmr.msra.gmra.mxu2 %vm524_vm0, %v4555_v33 }
 0x288   : > { %4559 = vmatmul.msk.f32.vlgmr.msra.gmra.mxu3 %vm524_vm0, %v4555_v33  ;;  %4562 = vmatmul.msk.f32.vlgmr.msrb.gmra.mxu1 %vm524_vm0, %v4560_v1 }
 0x289   : > { %2287 = vmatpush.msra.mxu2 %v5309_v34  ;;  %v2427_v6 = vpop.permute.xlu0 %2426  ;;  %v2118_v7 = vpop.permute.xlu1 %2117 }
 0x28a   : > { %v2128_v9 = vsel %vm1022_vm6, %v2125_v51, %v2118_v7  ;;  %v2133_v8 = vsel %vm1022_vm6, %v2118_v7, %v2121_v52  ;;  %v2541_v29 = vpop.permute.xlu2 %2540  ;;  %v2442_v45 = vsel %vm1386_vm8, %v2433_v3, %v2427_v6  ;;  %v4575_v7 = vld [vmem:[%s5888_s7 + $0x30] sm:$0xff] }
 0x28b   : > { %v2134_v17 = vmul.f32 %v2133_v8, %v5135_v30  ;;  %v2137_v58 = vmul.f32 %v2128_v9, %v5137_v31  ;;  %v2446_v25 = vmul.f32 %v2442_v45, %v5974_v23  ;;  %v5978_v9 = vld [vmem:[#allocation22_spill] sm:$0xff] }
 0x28d   : > { %2158 = vmatpush.msrb.mxu0 %v2134_v17  ;;  %2218 = vmatpush.msrb.mxu3 %v2137_v58 }
 0x28e   : > { %4561 = vmatmul.msk.f32.vlgmr.msrb.gmra.mxu0 %vm524_vm0, %v4560_v1 }
 0x28f   : > { %2307 = vmatpush.msra.mxu3 %v5317_v19  ;;  %4563 = vmatmul.msk.f32.vlgmr.msrb.gmra.mxu2 %vm524_vm0, %v4560_v1 }
 0x290   : > { %4564 = vmatmul.msk.f32.vlgmr.msrb.gmra.mxu3 %vm524_vm0, %v4560_v1  ;;  %2247 = vmatpush.msra.mxu0 %v5307_v28  ;;  %v5977_v1 = vld [vmem:[#allocation20_spill] sm:$0xff] }
 0x291   : > { %4567 = vmatmul.msk.f32.vlgmr.msra.gmra.mxu1 %vm524_vm0, %v4565_v24  ;;  %v2321_v2 = vpop.permute.xlu0 %2320  ;;  %v2537_v5 = vpop.permute.xlu1 %2536 }
 0x292   : > { %2357 = vmatpush.msrb.mxu0 %v2333_v32  ;;  %v2325_v38 = vsel %vm1252_vm7, %v2319_v46, %v2321_v2  ;;  %v2647_v35 = vpop.permute.xlu2 %2646 }
 0x293   : > { %v2334_v4 = vmul.f32 %v2325_v38, %v5165_v44  ;;  %v5979_v38 = vld [vmem:[#allocation23_spill] sm:$0xff] }
 0x295   : > { %2377 = vmatpush.msrb.mxu1 %v2334_v4 }
 0x296   : > { %4566 = vmatmul.msk.f32.vlgmr.msra.gmra.mxu0 %vm524_vm0, %v4565_v24 }
 0x297   : > { %4568 = vmatmul.msk.f32.vlgmr.msra.gmra.mxu2 %vm524_vm0, %v4565_v24 }
 0x298   : > { %4569 = vmatmul.msk.f32.vlgmr.msra.gmra.mxu3 %vm524_vm0, %v4565_v24 }
 0x299   : > { %4572 = vmatmul.msk.f32.vlgmr.msrb.gmra.mxu1 %vm524_vm0, %v4570_v22  ;;  %v2429_v40 = vpop.permute.xlu0 %2428  ;;  %v2323_v13 = vpop.permute.xlu1 %2322 }
 0x29a   : > { %v2434_v15 = vsel %vm1386_vm8, %v2427_v6, %v2429_v40  ;;  %v2326_v10 = vsel %vm1252_vm7, %v2321_v2, %v2323_v13  ;;  %v2332_v14 = vsel %vm1252_vm7, %v2323_v13, %v5392_v42  ;;  %v2649_v17 = vpop.permute.xlu2 %2648  ;;  %v5981_v13 = vld [vmem:[#allocation25_spill] sm:$0xff] }
 0x29b   : > { %v2443_v50 = vmul.f32 %v2434_v15, %v5191_v55  ;;  %v2335_v54 = vmul.f32 %v2326_v10, %v5972_v53  ;;  %v2336_v41 = vmul.f32 %v2332_v14, %v5973_v59  ;;  %v5982_v10 = vld [vmem:[#allocation26_spill] sm:$0xff] }
 0x29d   : > { %2397 = vmatpush.msrb.mxu2 %v2335_v54  ;;  %2417 = vmatpush.msrb.mxu3 %v2336_v41  ;;  %v5983_v54 = vld [vmem:[#allocation27_spill] sm:$0xff] }
 0x29e   : > { %2467 = vmatpush.msra.mxu0 %v2443_v50 }
 0x29f   : > { %2527 = vmatpush.msra.mxu3 %v2446_v25  ;;  %4571 = vmatmul.msk.f32.vlgmr.msrb.gmra.mxu0 %vm524_vm0, %v4570_v22  ;;  %v5984_v25 = vld [vmem:[#allocation28_spill] sm:$0xff] }
 0x2a0   : > { %4573 = vmatmul.msk.f32.vlgmr.msrb.gmra.mxu2 %vm524_vm0, %v4570_v22  ;;  %4574 = vmatmul.msk.f32.vlgmr.msrb.gmra.mxu3 %vm524_vm0, %v4570_v22  ;;  %v5980_v22 = vld [vmem:[#allocation24_spill] sm:$0xff] }
 0x2a1   : > { %v2543_v42 = vpop.permute.xlu0 %2542  ;;  %v2431_v33 = vpop.permute.xlu1 %2430 }
 0x2a2   : > { %v2546_v43 = vsel %vm1520_vm9, %v2541_v29, %v2543_v42  ;;  %v2552_v46 = vsel %vm1520_vm9, %v2543_v42, %v2537_v5  ;;  %v2435_v51 = vsel %vm1386_vm8, %v2429_v40, %v2431_v33  ;;  %v2436_v52 = vsel %vm1386_vm8, %v2431_v33, %v2433_v3  ;;  %v4580_v40 = vld [vmem:[%s5888_s7 + $0x38] sm:$0xff]  ;;  %v4585_v33 = vld [vmem:[%s5888_s7 + $0x40] sm:$0xff] }
 0x2a3   : > { %v2556_v16 = vmul.f32 %v2552_v46, %v5975_v12  ;;  %v2444_v57 = vmul.f32 %v2435_v51, %v5976_v56  ;;  %v2445_v6 = vmul.f32 %v2436_v52, %v5977_v1  ;;  %v2555_v8 = vmul.f32 %v2546_v43, %v5978_v9 }
 0x2a4   : > { %v2654_v3 = vsel %vm1654_vm10, %v2647_v35, %v2649_v17 }
 0x2a5   : > { %2487 = vmatpush.msra.mxu1 %v2444_v57  ;;  %2507 = vmatpush.msra.mxu2 %v2445_v6  ;;  %v2663_v15 = vmul.f32 %v2654_v3, %v5981_v13 }
 0x2a6   : > { %2637 = vmatpush.msrb.mxu3 %v2556_v16  ;;  %4577 = vmatmul.msk.f32.vlgmr.msra.gmra.mxu1 %vm524_vm0, %v4575_v7 }
 0x2a7   : > { %4576 = vmatmul.msk.f32.vlgmr.msra.gmra.mxu0 %vm524_vm0, %v4575_v7  ;;  %2617 = vmatpush.msrb.mxu2 %v2555_v8 }
 0x2a8   : > { %4578 = vmatmul.msk.f32.vlgmr.msra.gmra.mxu2 %vm524_vm0, %v4575_v7  ;;  %4579 = vmatmul.msk.f32.vlgmr.msra.gmra.mxu3 %vm524_vm0, %v4575_v7 }
 0x2a9   : > { %v2651_v58 = vpop.permute.xlu0 %2650  ;;  %v2539_v21 = vpop.permute.xlu1 %2538 }
 0x2aa   : > { %v2655_v24 = vsel %vm1654_vm10, %v2649_v17, %v2651_v58  ;;  %v2544_v32 = vsel %vm1520_vm9, %v2537_v5, %v2539_v21  ;;  %v2545_v2 = vsel %vm1520_vm9, %v2539_v21, %v2541_v29 }
 0x2ab   : > { %v2553_v4 = vmul.f32 %v2544_v32, %v5979_v38  ;;  %v2554_v45 = vmul.f32 %v2545_v2, %v5980_v22  ;;  %v2664_v14 = vmul.f32 %v2655_v24, %v5982_v10 }
 0x2ad   : > { %2577 = vmatpush.msrb.mxu0 %v2553_v4  ;;  %2597 = vmatpush.msrb.mxu1 %v2554_v45 }
 0x2ae   : > { %4582 = vmatmul.msk.f32.vlgmr.msrb.gmra.mxu1 %vm524_vm0, %v4580_v40 }
 0x2af   : > { %2687 = vmatpush.msra.mxu0 %v2663_v15  ;;  %2707 = vmatpush.msra.mxu1 %v2664_v14 }
 0x2b0   : > { %4581 = vmatmul.msk.f32.vlgmr.msrb.gmra.mxu0 %vm524_vm0, %v4580_v40  ;;  %4583 = vmatmul.msk.f32.vlgmr.msrb.gmra.mxu2 %vm524_vm0, %v4580_v40 }
 0x2b1   : > { %4584 = vmatmul.msk.f32.vlgmr.msrb.gmra.mxu3 %vm524_vm0, %v4580_v40  ;;  %v2653_v5 = vpop.permute.xlu1 %2652 }
 0x2b2   : > { %v2656_v29 = vsel %vm1654_vm10, %v2651_v58, %v2653_v5  ;;  %v2662_v50 = vsel %vm1654_vm10, %v2653_v5, %v2647_v35 }
 0x2b3   : > { %v2665_v41 = vmul.f32 %v2656_v29, %v5983_v54  ;;  %v2666_v42 = vmul.f32 %v2662_v50, %v5984_v25 }
 0x2b5   : > { %2727 = vmatpush.msra.mxu2 %v2665_v41  ;;  %2747 = vmatpush.msra.mxu3 %v2666_v42 }
 0x2b6   : > { %4587 = vmatmul.msk.f32.vlgmr.msra.gmra.mxu1 %vm524_vm0, %v4585_v33 }
 0x2b8   : > { %4586 = vmatmul.msk.f32.vlgmr.msra.gmra.mxu0 %vm524_vm0, %v4585_v33  ;;  %4588 = vmatmul.msk.f32.vlgmr.msra.gmra.mxu2 %vm524_vm0, %v4585_v33 }
 0x2b9   : > { %4589 = vmatmul.msk.f32.vlgmr.msra.gmra.mxu3 %vm524_vm0, %v4585_v33 }
 0x2eb   : > { %v1881_v43 = vpop.f32.mrf.mxu1 }
 0x2f1   : > { %v1901_v51 = vpop.f32.mrf.mxu2 }
 0x2f3   : > { %v1861_v35 = vpop.f32.mrf.mxu0 }
 0x2f5   : > { %v1964_v46 = vpop.f32.mrf.mxu1 }
 0x2f6   : > { %v1965_v42 = vadd.f32 %v1964_v46, %v1881_v43 }
 0x2fa   : > { %v1921_v52 = vpop.f32.mrf.mxu3 }
 0x2fb   : > { %v1944_v16 = vpop.f32.mrf.mxu0 }
 0x2fc   : > { %v1945_v33 = vadd.f32 %v1944_v16, %v1861_v35 }
 0x2fd   : > { %v2070_v57 = vpop.f32.mrf.mxu1 }
 0x2fe   : > { %v2114_v25 = vadd.f32 %v2070_v57, %v1965_v42 }
 0x302   : > { %v1984_v6 = vpop.f32.mrf.mxu2  ;;  %v2004_v7 = vpop.f32.mrf.mxu3 }
 0x303   : > { %v2050_v8 = vpop.f32.mrf.mxu0  ;;  %v1985_v12 = vadd.f32 %v1984_v6, %v1901_v51  ;;  %v2005_v55 = vadd.f32 %v2004_v7, %v1921_v52 }
 0x304   : > { %v2113_v54 = vadd.f32 %v2050_v8, %v1945_v33 }
 0x305   : > { %v2180_v17 = vpop.f32.mrf.mxu1 }
 0x306   : > { %v2224_v10 = vadd.f32 %v2180_v17, %v2114_v25 }
 0x30a   : > { %v2090_v3 = vpop.f32.mrf.mxu2 }
 0x30b   : > { %v2110_v58 = vpop.f32.mrf.mxu3  ;;  %v2160_v21 = vpop.f32.mrf.mxu0  ;;  %v2115_v53 = vadd.f32 %v2090_v3, %v1985_v12 }
 0x30c   : > { %v2223_v9 = vadd.f32 %v2160_v21, %v2113_v54  ;;  %v2116_v30 = vadd.f32 %v2110_v58, %v2005_v55  ;;  %v2759_v21 = vpop.permute.xlu0 %2758 }
 0x30e   : > { %v2269_v24 = vpop.f32.mrf.mxu1 }
 0x30f   : > { %v2313_v1 = vadd.f32 %v2269_v24, %v2224_v10 }
 0x312   : > { %v2200_v32 = vpop.f32.mrf.mxu2 }
 0x313   : > { %v2220_v2 = vpop.f32.mrf.mxu3  ;;  %v2249_v4 = vpop.f32.mrf.mxu0  ;;  %v2225_v31 = vadd.f32 %v2200_v32, %v2115_v53 }
 0x314   : > { %v2312_v23 = vadd.f32 %v2249_v4, %v2223_v9  ;;  %v2226_v8 = vadd.f32 %v2220_v2, %v2116_v30 }
 0x316   : > { %v2379_v15 = vpop.f32.mrf.mxu1 }
 0x317   : > { %v2423_v59 = vadd.f32 %v2379_v15, %v2313_v1 }
 0x31a   : > { %v2289_v45 = vpop.f32.mrf.mxu2 }
 0x31b   : > { %v2309_v40 = vpop.f32.mrf.mxu3  ;;  %v2314_v16 = vadd.f32 %v2289_v45, %v2225_v31 }
 0x31c   : > { %v2359_v14 = vpop.f32.mrf.mxu0  ;;  %v2315_v9 = vadd.f32 %v2309_v40, %v2226_v8 }
 0x31d   : > { %v2422_v44 = vadd.f32 %v2359_v14, %v2312_v23 }
 0x323   : > { %v2399_v5 = vpop.f32.mrf.mxu2  ;;  %v2419_v29 = vpop.f32.mrf.mxu3 }
 0x324   : > { %v2489_v50 = vpop.f32.mrf.mxu1  ;;  %v2469_v41 = vpop.f32.mrf.mxu0  ;;  %v2424_v51 = vadd.f32 %v2399_v5, %v2314_v16  ;;  %v2425_v23 = vadd.f32 %v2419_v29, %v2315_v9  ;;  %v2799_v9 = vld [vmem:[%s5890_s9] sm:$0xff] }
 0x325   : > { %v2533_v39 = vadd.f32 %v2489_v50, %v2423_v59  ;;  %v2532_v43 = vadd.f32 %v2469_v41, %v2422_v44 }
 0x32b   : > { %v2509_v13 = vpop.f32.mrf.mxu2  ;;  %v2529_v22 = vpop.f32.mrf.mxu3 }
 0x32c   : > { %v2599_v38 = vpop.f32.mrf.mxu1  ;;  %v2534_v52 = vadd.f32 %v2509_v13, %v2424_v51  ;;  %v2535_v55 = vadd.f32 %v2529_v22, %v2425_v23 }
 0x32d   : > { %v2579_v56 = vpop.f32.mrf.mxu0  ;;  %v2643_v35 = vadd.f32 %v2599_v38, %v2533_v39 }
 0x32e   : > { %v2642_v17 = vadd.f32 %v2579_v56, %v2532_v43  ;;  %v4590_v43 = vld [vmem:[%s5890_s9 + $0x8] sm:$0xff] }
 0x333   : > { %v2619_v46 = vpop.f32.mrf.mxu2 }
 0x334   : > { %v2639_v25 = vpop.f32.mrf.mxu3  ;;  %v2709_v57 = vpop.f32.mrf.mxu1  ;;  %v2644_v53 = vadd.f32 %v2619_v46, %v2534_v52 }
 0x335   : > { %v2689_v54 = vpop.f32.mrf.mxu0  ;;  %v2753_v10 = vadd.f32 %v2709_v57, %v2643_v35  ;;  %v2645_v56 = vadd.f32 %v2639_v25, %v2535_v55 }
 0x336   : > { %v2752_v1 = vadd.f32 %v2689_v54, %v2642_v17 }
 0x337   : > { %v2762_v12 = vadd.f32 %v2759_v21, %v2753_v10 }
 0x338   : > { %v2761_v44 = vadd.f32 %v2759_v21, %v2752_v1 }
 0x339   : > { %v2766_v59 = vmax.f32 %v2762_v12, 0.0 }
 0x33a   : > { %v2765_v13 = vmax.f32 %v2761_v44, 0.0 }
 0x33b   : > { %v5510_v39 = vadd.f32 %v2766_v59, %v5299_v11  ;;  %v2729_v31 = vpop.f32.mrf.mxu2 }
 0x33c   : > { %v2754_v38 = vadd.f32 %v2729_v31, %v2644_v53  ;;  %v2749_v30 = vpop.f32.mrf.mxu3  ;;  %v5519_v11 = vadd.f32 %v2765_v13, %v5307_v28  ;;  %v2773_v28 = vld [vmem:[%s5891_s10] sm:$0xff] }
 0x33d   : > { %2994 = vrot.lane.b32.xlu1 %v5510_v39, %s4789_s21  ;;  %2783 = vrot.lane.b32.xlu0 %v5510_v39, %s4787_s18  ;;  %v2755_v22 = vadd.f32 %v2749_v30, %v2645_v56  ;;  %v4599_v30 = vld [vmem:[%s5890_s9 + $0x10] sm:$0xff] }
 0x33e   : > { %v2763_v6 = vadd.f32 %v2759_v21, %v2754_v38  ;;  %2805 = vrot.lane.b32.xlu2 %v5510_v39, %s4788_s20 }
 0x33f   : > { %v2764_v58 = vadd.f32 %v2759_v21, %v2755_v22 }
 0x340   : > { %v2767_v7 = vmax.f32 %v2763_v6, 0.0 }
 0x341   : > { %v2768_v24 = vmax.f32 %v2764_v58, 0.0 }
 0x342   : > { %v5522_v3 = vadd.f32 %v2767_v7, %v5309_v34  ;;  %v4604_v7 = vld [vmem:[%s5890_s9 + $0x18] sm:$0xff] }
 0x343   : > { %v5531_v32 = vadd.f32 %v2768_v24, %v5317_v19 }
 0x345   : > { %2803 = vrot.lane.b32.xlu1 %v5519_v11, %s4788_s20  ;;  %2807 = vrot.lane.b32.xlu0 %v5522_v3, %s4788_s20 }
 0x346   : > { %2781 = vrot.lane.b32.xlu2 %v5519_v11, %s4787_s18 }
 0x34d   : > { %2800 = vrot.lane.b32.xlu1 %v5531_v32, %s4788_s20  ;;  %2992 = vrot.lane.b32.xlu0 %v5519_v11, %s4789_s21 }
 0x34e   : > { %2775 = vrot.lane.b32.xlu2 %v5531_v32, %s4787_s18 }
 0x355   : > { %2785 = vrot.lane.b32.xlu1 %v5522_v3, %s4787_s18  ;;  %2989 = vrot.lane.b32.xlu0 %v5531_v32, %s4789_s21 }
 0x356   : > { %2996 = vrot.lane.b32.xlu2 %v5522_v3, %s4789_s21 }
 0x35d   : > { %3102 = vrot.lane.b32.xlu1 %v5519_v11, %s4790_s24  ;;  %3106 = vrot.lane.b32.xlu0 %v5522_v3, %s4790_s24 }
 0x35e   : > { %3104 = vrot.lane.b32.xlu2 %v5510_v39, %s4790_s24 }
 0x365   : > { %3099 = vrot.lane.b32.xlu1 %v5531_v32, %s4790_s24  ;;  %3408 = vrot.lane.b32.xlu0 %v5519_v11, %s4791_s27 }
 0x366   : > { %3298 = vrot.lane.b32.xlu2 %v5519_v11, %s5970_s29 }
 0x36d   : > { %3518 = vrot.lane.b32.xlu1 %v5519_v11, %s5971_s30  ;;  %3302 = vrot.lane.b32.xlu0 %v5522_v3, %s5970_s29 }
 0x36e   : > { %3300 = vrot.lane.b32.xlu2 %v5510_v39, %s5970_s29 }
 0x375   : > { %3304 = vrot.lane.b32.xlu1 %v5531_v32, %s5970_s29  ;;  %3410 = vrot.lane.b32.xlu0 %v5510_v39, %s4791_s27 }
 0x376   : > { %3414 = vrot.lane.b32.xlu2 %v5531_v32, %s4791_s27 }
 0x37d   : > { %3412 = vrot.lane.b32.xlu1 %v5522_v3, %s4791_s27  ;;  %3524 = vrot.lane.b32.xlu0 %v5531_v32, %s5971_s30 }
 0x37e   : > { %3522 = vrot.lane.b32.xlu2 %v5522_v3, %s5971_s30 }
 0x385   : > { %3520 = vrot.lane.b32.xlu1 %v5510_v39, %s5971_s30  ;;  %3632 = vrot.lane.b32.xlu0 %v5522_v3, %s4794_s16 }
 0x386   : > { %3628 = vrot.lane.b32.xlu2 %v5519_v11, %s4794_s16 }
 0x38d   : > { %3634 = vrot.lane.b32.xlu1 %v5531_v32, %s4794_s16  ;;  %3740 = vperm.xlu0 %4720, %v2773_v28  }
 0x38e   : > { %3630 = vrot.lane.b32.xlu2 %v5510_v39, %s4794_s16 }
 0x398   : > { %v2806_v34 = vpop.permute.xlu2 %2805 }
 0x3a0   : > { %v2782_v19 = vpop.permute.xlu2 %2781 }
 0x3a8   : > { %v2776_v2 = vpop.permute.xlu2 %2775 }
 0x3a9   : > { %v2794_v25 = vsel %vm627_vm2, %v2776_v2, %v2782_v19 }
 0x3aa   : > { %v2795_v51 = vmul.f32 %v2794_v25, %v5040_v37 }
 0x3af   : > { %v2784_v4 = vpop.permute.xlu0 %2783  ;;  %v2995_v45 = vpop.permute.xlu1 %2994 }
 0x3b0   : > { %v2997_v40 = vpop.permute.xlu2 %2996  ;;  %v2787_v5 = vsel %vm627_vm2, %v2782_v19, %v2784_v4  ;;  %v5985_v19 = vld [vmem:[#allocation11_spill] sm:$0xff] }
 0x3b1   : > { %v2796_v35 = vmul.f32 %v2787_v5, %v5024_v26  ;;  %v2999_v53 = vsel %vm888_vm5, %v2995_v45, %v2997_v40 }
 0x3b2   : > { %v3008_v56 = vmul.f32 %v2999_v53, %v5091_v0 }
 0x3b7   : > { %v2808_v15 = vpop.permute.xlu0 %2807  ;;  %v2804_v14 = vpop.permute.xlu1 %2803 }
 0x3b8   : > { %v3105_v29 = vpop.permute.xlu2 %3104  ;;  %v2810_v50 = vsel %vm661_vm1, %v2806_v34, %v2808_v15  ;;  %v2809_v41 = vsel %vm661_vm1, %v2804_v14, %v2806_v34 }
 0x3b9   : > { %v2819_v42 = vmul.f32 %v2810_v50, %v5059_v47  ;;  %v2818_v33 = vmul.f32 %v2809_v41, %v5026_v27 }
 0x3bb   : > { %2861 = vmatpush.msrb.mxu1 %v2818_v33  ;;  %2881 = vmatpush.msrb.mxu2 %v2819_v42  ;;  %v5988_v33 = vld [vmem:[#allocation14_spill] sm:$0xff] }
 0x3bc   : > { %4592 = vmatmul.msk.f32.vlgmr.msrb.gmra.mxu1 %vm524_vm0, %v4590_v43  ;;  %4593 = vmatmul.msk.f32.vlgmr.msrb.gmra.mxu2 %vm524_vm0, %v4590_v43 }
 0x3bd   : > { %2944 = vmatpush.msra.mxu1 %v2796_v35  ;;  %v4614_v35 = vld [vmem:[%s5890_s9 + $0x28] sm:$0xff] }
 0x3bf   : > { %v2993_v46 = vpop.permute.xlu0 %2992  ;;  %v2801_v16 = vpop.permute.xlu1 %2800 }
 0x3c0   : > { %v2998_v47 = vsel %vm888_vm5, %v2993_v46, %v2995_v45  ;;  %v2811_v57 = vsel %vm661_vm1, %v2808_v15, %v2801_v16  ;;  %v2816_v8 = vsel %vm661_vm1, %v2801_v16, %v2804_v14  ;;  %v5606_v21 = vpop.permute.xlu2 %3298  ;;  %v4609_v15 = vld [vmem:[%s5890_s9 + $0x20] sm:$0xff]  ;;  %v5987_v14 = vld [vmem:[#allocation13_spill] sm:$0xff] }
 0x3c1   : > { %v3007_v17 = vmul.f32 %v2998_v47, %v5063_v49  ;;  %v2817_v54 = vmul.f32 %v2816_v8, %v5038_v36  ;;  %v2820_v10 = vmul.f32 %v2811_v57, %v5061_v48 }
 0x3c3   : > { %2841 = vmatpush.msrb.mxu0 %v2817_v54  ;;  %2901 = vmatpush.msrb.mxu3 %v2820_v10  ;;  %v5990_v10 = vld [vmem:[#allocation15_spill] sm:$0xff] }
 0x3c4   : > { %3050 = vmatpush.msrb.mxu1 %v3007_v17  ;;  %4591 = vmatmul.msk.f32.vlgmr.msrb.gmra.mxu0 %vm524_vm0, %v4590_v43  ;;  %v5989_v17 = vld [vmem:[#allocation17_spill] sm:$0xff] }
 0x3c5   : > { %4594 = vmatmul.msk.f32.vlgmr.msrb.gmra.mxu3 %vm524_vm0, %v4590_v43  ;;  %2924 = vmatpush.msra.mxu0 %v2795_v51 }
 0x3c6   : > { %4596 = vmatmul.msk.f32.vlgmr.msra.gmra.mxu1 %vm524_vm0, %v2799_v9 }
 0x3c7   : > { %v2990_v1 = vpop.permute.xlu0 %2989  ;;  %v2786_v48 = vpop.permute.xlu1 %2785 }
 0x3c8   : > { %v3000_v12 = vsel %vm888_vm5, %v2997_v40, %v2990_v1  ;;  %v3005_v52 = vsel %vm888_vm5, %v2990_v1, %v2993_v46  ;;  %v2788_v23 = vsel %vm627_vm2, %v2784_v4, %v2786_v48  ;;  %v2789_v59 = vsel %vm627_vm2, %v2786_v48, %v2776_v2  ;;  %v3301_v6 = vpop.permute.xlu2 %3300  ;;  %v5986_v4 = vld [vmem:[#allocation12_spill] sm:$0xff]  ;;  %v5992_v48 = vld [vmem:[#allocation18_spill] sm:$0xff] }
 0x3c9   : > { %v3006_v55 = vmul.f32 %v3005_v52, %v5086_v62  ;;  %v2797_v44 = vmul.f32 %v2788_v23, %v5082_v60  ;;  %v2798_v31 = vmul.f32 %v2789_v59, %v5084_v61  ;;  %v3009_v38 = vmul.f32 %v3000_v12, %v5089_v63 }
 0x3ca   : > { %v3306_v40 = vsel %vm1252_vm7, %v5606_v21, %v3301_v6 }
 0x3cb   : > { %2964 = vmatpush.msra.mxu2 %v2797_v44  ;;  %3030 = vmatpush.msrb.mxu0 %v3006_v55  ;;  %v3315_v5 = vmul.f32 %v3306_v40, %v5987_v14  ;;  %v4624_v40 = vld [vmem:[%s5890_s9 + $0x38] sm:$0xff] }
 0x3cc   : > { %2984 = vmatpush.msra.mxu3 %v2798_v31  ;;  %4595 = vmatmul.msk.f32.vlgmr.msra.gmra.mxu0 %vm524_vm0, %v2799_v9  ;;  %v5993_v31 = vld [vmem:[#allocation21_spill] sm:$0xff] }
 0x3cd   : > { %4597 = vmatmul.msk.f32.vlgmr.msra.gmra.mxu2 %vm524_vm0, %v2799_v9  ;;  %4598 = vmatmul.msk.f32.vlgmr.msra.gmra.mxu3 %vm524_vm0, %v2799_v9  ;;  %v5991_v9 = vld [vmem:[#allocation16_spill] sm:$0xff] }
 0x3ce   : > { %4601 = vmatmul.msk.f32.vlgmr.msrb.gmra.mxu1 %vm524_vm0, %v4599_v30  ;;  %3070 = vmatpush.msrb.mxu2 %v3008_v56 }
 0x3cf   : > { %3090 = vmatpush.msrb.mxu3 %v3009_v38  ;;  %v3107_v60 = vpop.permute.xlu0 %3106  ;;  %v3103_v61 = vpop.permute.xlu1 %3102 }
 0x3d0   : > { %v3109_v63 = vsel %vm1022_vm6, %v3105_v29, %v3107_v60  ;;  %v3108_v13 = vsel %vm1022_vm6, %v3103_v61, %v3105_v29  ;;  %v3415_v58 = vpop.permute.xlu2 %3414 }
 0x3d1   : > { %v3118_v0 = vmul.f32 %v3109_v63, %v5115_v20  ;;  %v3117_v22 = vmul.f32 %v3108_v13, %v5113_v18  ;;  %v5996_v63 = vld [vmem:[#allocation22_spill] sm:$0xff] }
 0x3d3   : > { %3160 = vmatpush.msra.mxu1 %v3117_v22  ;;  %3180 = vmatpush.msra.mxu2 %v3118_v0 }
 0x3d4   : > { %4600 = vmatmul.msk.f32.vlgmr.msrb.gmra.mxu0 %vm524_vm0, %v4599_v30 }
 0x3d5   : > { %3249 = vmatpush.msrb.mxu1 %v5510_v39  ;;  %4602 = vmatmul.msk.f32.vlgmr.msrb.gmra.mxu2 %vm524_vm0, %v4599_v30 }
 0x3d6   : > { %4603 = vmatmul.msk.f32.vlgmr.msrb.gmra.mxu3 %vm524_vm0, %v4599_v30  ;;  %4606 = vmatmul.msk.f32.vlgmr.msra.gmra.mxu1 %vm524_vm0, %v4604_v7  ;;  %v5994_v30 = vld [vmem:[#allocation19_spill] sm:$0xff] }
 0x3d7   : > { %3269 = vmatpush.msrb.mxu2 %v5522_v3  ;;  %v3409_v20 = vpop.permute.xlu0 %3408  ;;  %v3100_v24 = vpop.permute.xlu1 %3099 }
 0x3d8   : > { %v3110_v28 = vsel %vm1022_vm6, %v3107_v60, %v3100_v24  ;;  %v3115_v34 = vsel %vm1022_vm6, %v3100_v24, %v3103_v61  ;;  %v3523_v41 = vpop.permute.xlu2 %3522  ;;  %v3424_v46 = vsel %vm1386_vm8, %v3415_v58, %v3409_v20  ;;  %v4619_v61 = vld [vmem:[%s5890_s9 + $0x30] sm:$0xff] }
 0x3d9   : > { %v3116_v2 = vmul.f32 %v3115_v34, %v5985_v19  ;;  %v3119_v45 = vmul.f32 %v3110_v28, %v5986_v4  ;;  %v3428_v12 = vmul.f32 %v3424_v46, %v5992_v48  ;;  %v5997_v34 = vld [vmem:[#allocation23_spill] sm:$0xff]  ;;  %v5998_v4 = vld [vmem:[#allocation24_spill] sm:$0xff] }
 0x3db   : > { %3140 = vmatpush.msra.mxu0 %v3116_v2  ;;  %3200 = vmatpush.msra.mxu3 %v3119_v45 }
 0x3dc   : > { %4605 = vmatmul.msk.f32.vlgmr.msra.gmra.mxu0 %vm524_vm0, %v4604_v7 }
 0x3dd   : > { %3289 = vmatpush.msrb.mxu3 %v5531_v32  ;;  %4607 = vmatmul.msk.f32.vlgmr.msra.gmra.mxu2 %vm524_vm0, %v4604_v7 }
 0x3de   : > { %4608 = vmatmul.msk.f32.vlgmr.msra.gmra.mxu3 %vm524_vm0, %v4604_v7  ;;  %3229 = vmatpush.msrb.mxu0 %v5519_v11 }
 0x3df   : > { %4611 = vmatmul.msk.f32.vlgmr.msrb.gmra.mxu1 %vm524_vm0, %v4609_v15  ;;  %v3303_v29 = vpop.permute.xlu0 %3302  ;;  %v3519_v50 = vpop.permute.xlu1 %3518 }
 0x3e0   : > { %3339 = vmatpush.msra.mxu0 %v3315_v5  ;;  %v3307_v42 = vsel %vm1252_vm7, %v3301_v6, %v3303_v29  ;;  %v3629_v52 = vpop.permute.xlu2 %3628  ;;  %v5995_v6 = vld [vmem:[#allocation20_spill] sm:$0xff] }
 0x3e1   : > { %v3316_v43 = vmul.f32 %v3307_v42, %v5988_v33 }
 0x3e3   : > { %3359 = vmatpush.msra.mxu1 %v3316_v43 }
 0x3e4   : > { %4610 = vmatmul.msk.f32.vlgmr.msrb.gmra.mxu0 %vm524_vm0, %v4609_v15 }
 0x3e5   : > { %4612 = vmatmul.msk.f32.vlgmr.msrb.gmra.mxu2 %vm524_vm0, %v4609_v15 }
 0x3e6   : > { %4613 = vmatmul.msk.f32.vlgmr.msrb.gmra.mxu3 %vm524_vm0, %v4609_v15  ;;  %v5999_v15 = vld [vmem:[#allocation25_spill] sm:$0xff] }
 0x3e7   : > { %4616 = vmatmul.msk.f32.vlgmr.msra.gmra.mxu1 %vm524_vm0, %v4614_v35  ;;  %v3411_v16 = vpop.permute.xlu0 %3410  ;;  %v3305_v25 = vpop.permute.xlu1 %3304 }
 0x3e8   : > { %v3416_v47 = vsel %vm1386_vm8, %v3409_v20, %v3411_v16  ;;  %v3308_v57 = vsel %vm1252_vm7, %v3303_v29, %v3305_v25  ;;  %v3314_v8 = vsel %vm1252_vm7, %v3305_v25, %v5606_v21  ;;  %v3631_v0 = vpop.permute.xlu2 %3630  ;;  %v6000_v29 = vld [vmem:[#allocation26_spill] sm:$0xff] }
 0x3e9   : > { %v3425_v54 = vmul.f32 %v3416_v47, %v5989_v17  ;;  %v3317_v51 = vmul.f32 %v3308_v57, %v5990_v10  ;;  %v3318_v1 = vmul.f32 %v3314_v8, %v5991_v9  ;;  %v3636_v22 = vsel %vm1654_vm10, %v3629_v52, %v3631_v0  ;;  %v4629_v47 = vld [vmem:[%s5890_s9 + $0x40] sm:$0xff] }
 0x3ea   : > { %v3645_v5 = vmul.f32 %v3636_v22, %v5999_v15 }
 0x3eb   : > { %3379 = vmatpush.msra.mxu2 %v3317_v51  ;;  %3399 = vmatpush.msra.mxu3 %v3318_v1 }
 0x3ec   : > { %3449 = vmatpush.msrb.mxu0 %v3425_v54 }
 0x3ed   : > { %3509 = vmatpush.msrb.mxu3 %v3428_v12  ;;  %4615 = vmatmul.msk.f32.vlgmr.msra.gmra.mxu0 %vm524_vm0, %v4614_v35 }
 0x3ee   : > { %4617 = vmatmul.msk.f32.vlgmr.msra.gmra.mxu2 %vm524_vm0, %v4614_v35  ;;  %4618 = vmatmul.msk.f32.vlgmr.msra.gmra.mxu3 %vm524_vm0, %v4614_v35  ;;  %v6001_v35 = vld [vmem:[#allocation27_spill] sm:$0xff] }
 0x3ef   : > { %v3525_v21 = vpop.permute.xlu0 %3524  ;;  %v3413_v23 = vpop.permute.xlu1 %3412 }
 0x3f0   : > { %v3528_v59 = vsel %vm1520_vm9, %v3523_v41, %v3525_v21  ;;  %v3534_v53 = vsel %vm1520_vm9, %v3525_v21, %v3519_v50  ;;  %v3417_v55 = vsel %vm1386_vm8, %v3411_v16, %v3413_v23  ;;  %v3418_v44 = vsel %vm1386_vm8, %v3413_v23, %v3415_v58  ;;  %v6002_v16 = vld [vmem:[#allocation28_spill] sm:$0xff] }
 0x3f1   : > { %v3538_v38 = vmul.f32 %v3534_v53, %v5993_v31  ;;  %v3426_v56 = vmul.f32 %v3417_v55, %v5994_v30  ;;  %v3427_v60 = vmul.f32 %v3418_v44, %v5995_v6  ;;  %v3537_v13 = vmul.f32 %v3528_v59, %v5996_v63 }
 0x3f3   : > { %3469 = vmatpush.msrb.mxu1 %v3426_v56  ;;  %3489 = vmatpush.msrb.mxu2 %v3427_v60 }
 0x3f4   : > { %3619 = vmatpush.msra.mxu3 %v3538_v38  ;;  %4621 = vmatmul.msk.f32.vlgmr.msrb.gmra.mxu1 %vm524_vm0, %v4619_v61 }
 0x3f5   : > { %4620 = vmatmul.msk.f32.vlgmr.msrb.gmra.mxu0 %vm524_vm0, %v4619_v61  ;;  %3599 = vmatpush.msra.mxu2 %v3537_v13 }
 0x3f6   : > { %4622 = vmatmul.msk.f32.vlgmr.msrb.gmra.mxu2 %vm524_vm0, %v4619_v61  ;;  %4623 = vmatmul.msk.f32.vlgmr.msrb.gmra.mxu3 %vm524_vm0, %v4619_v61 }
 0x3f7   : > { %v3633_v7 = vpop.permute.xlu0 %3632  ;;  %v3521_v58 = vpop.permute.xlu1 %3520 }
 0x3f8   : > { %v3637_v20 = vsel %vm1654_vm10, %v3631_v0, %v3633_v7  ;;  %v3526_v24 = vsel %vm1520_vm9, %v3519_v50, %v3521_v58  ;;  %v3527_v28 = vsel %vm1520_vm9, %v3521_v58, %v3523_v41 }
 0x3f9   : > { %v3535_v2 = vmul.f32 %v3526_v24, %v5997_v34  ;;  %v3536_v45 = vmul.f32 %v3527_v28, %v5998_v4  ;;  %v3646_v42 = vmul.f32 %v3637_v20, %v6000_v29 }
 0x3fb   : > { %3559 = vmatpush.msra.mxu0 %v3535_v2  ;;  %3579 = vmatpush.msra.mxu1 %v3536_v45 }
 0x3fc   : > { %4626 = vmatmul.msk.f32.vlgmr.msra.gmra.mxu1 %vm524_vm0, %v4624_v40 }
 0x3fd   : > { %3669 = vmatpush.msrb.mxu0 %v3645_v5  ;;  %3689 = vmatpush.msrb.mxu1 %v3646_v42 }
 0x3fe   : > { %4625 = vmatmul.msk.f32.vlgmr.msra.gmra.mxu0 %vm524_vm0, %v4624_v40  ;;  %4627 = vmatmul.msk.f32.vlgmr.msra.gmra.mxu2 %vm524_vm0, %v4624_v40 }
 0x3ff   : > { %4628 = vmatmul.msk.f32.vlgmr.msra.gmra.mxu3 %vm524_vm0, %v4624_v40  ;;  %v3635_v50 = vpop.permute.xlu1 %3634 }
 0x400   : > { %v3638_v41 = vsel %vm1654_vm10, %v3633_v7, %v3635_v50  ;;  %v3644_v43 = vsel %vm1654_vm10, %v3635_v50, %v3629_v52 }
 0x401   : > { %v3647_v46 = vmul.f32 %v3638_v41, %v6001_v35  ;;  %v3648_v25 = vmul.f32 %v3644_v43, %v6002_v16 }
 0x403   : > { %3709 = vmatpush.msrb.mxu2 %v3647_v46  ;;  %3729 = vmatpush.msrb.mxu3 %v3648_v25 }
 0x404   : > { %4631 = vmatmul.msk.f32.vlgmr.msrb.gmra.mxu1 %vm524_vm0, %v4629_v47 }
 0x406   : > { %4630 = vmatmul.msk.f32.vlgmr.msrb.gmra.mxu0 %vm524_vm0, %v4629_v47  ;;  %4632 = vmatmul.msk.f32.vlgmr.msrb.gmra.mxu2 %vm524_vm0, %v4629_v47 }
 0x407   : > { %4633 = vmatmul.msk.f32.vlgmr.msrb.gmra.mxu3 %vm524_vm0, %v4629_v47 }
 0x439   : > { %v2863_v57 = vpop.f32.mrf.mxu1 }
 0x43f   : > { %v2883_v10 = vpop.f32.mrf.mxu2 }
 0x441   : > { %v2843_v8 = vpop.f32.mrf.mxu0 }
 0x443   : > { %v2946_v54 = vpop.f32.mrf.mxu1 }
 0x444   : > { %v2947_v22 = vadd.f32 %v2946_v54, %v2863_v57 }
 0x448   : > { %v2903_v51 = vpop.f32.mrf.mxu3 }
 0x449   : > { %v2926_v9 = vpop.f32.mrf.mxu0 }
 0x44a   : > { %v2927_v58 = vadd.f32 %v2926_v9, %v2843_v8 }
 0x44b   : > { %v3052_v1 = vpop.f32.mrf.mxu1 }
 0x44c   : > { %v3096_v20 = vadd.f32 %v3052_v1, %v2947_v22  ;;  %v3769_v1 = vld [vmem:[%s5893_s12 + $0x8] sm:$0xff] }
 0x44d   : > { %3777 = vperm.xlu1 %4721, %v3769_v1  }
 0x450   : > { %v2966_v48 = vpop.f32.mrf.mxu2  ;;  %v2986_v12 = vpop.f32.mrf.mxu3 }
 0x451   : > { %v3032_v52 = vpop.f32.mrf.mxu0  ;;  %v2967_v50 = vadd.f32 %v2966_v48, %v2883_v10  ;;  %v2987_v43 = vadd.f32 %v2986_v12, %v2903_v51 }
 0x452   : > { %v3095_v24 = vadd.f32 %v3032_v52, %v2927_v58 }
 0x453   : > { %v3162_v21 = vpop.f32.mrf.mxu1 }
 0x454   : > { %v3206_v5 = vadd.f32 %v3162_v21, %v3096_v20 }
 0x458   : > { %v3072_v23 = vpop.f32.mrf.mxu2 }
 0x459   : > { %v3092_v59 = vpop.f32.mrf.mxu3  ;;  %v3142_v53 = vpop.f32.mrf.mxu0  ;;  %v3097_v46 = vadd.f32 %v3072_v23, %v2967_v50 }
 0x45a   : > { %v3205_v2 = vadd.f32 %v3142_v53, %v3095_v24  ;;  %v3098_v25 = vadd.f32 %v3092_v59, %v2987_v43  ;;  %v3755_v24 = vlaneseq }
 0x45c   : > { %v3251_v55 = vpop.f32.mrf.mxu1 }
 0x45d   : > { %v3295_v35 = vadd.f32 %v3251_v55, %v3206_v5 }
 0x460   : > { %v3182_v44 = vpop.f32.mrf.mxu2 }
 0x461   : > { %v3202_v31 = vpop.f32.mrf.mxu3  ;;  %v3231_v38 = vpop.f32.mrf.mxu0  ;;  %v3207_v29 = vadd.f32 %v3182_v44, %v3097_v46 }
 0x462   : > { %v3294_v41 = vadd.f32 %v3231_v38, %v3205_v2  ;;  %v3208_v54 = vadd.f32 %v3202_v31, %v3098_v25  ;;  %v3741_v31 = vpop.permute.xlu0 %3740 }
 0x464   : > { %v3361_v60 = vpop.f32.mrf.mxu1 }
 0x465   : > { %v3405_v47 = vadd.f32 %v3361_v60, %v3295_v35 }
 0x468   : > { %v3271_v56 = vpop.f32.mrf.mxu2 }
 0x469   : > { %v3291_v6 = vpop.f32.mrf.mxu3  ;;  %v3296_v52 = vadd.f32 %v3271_v56, %v3207_v29 }
 0x46a   : > { %v3341_v61 = vpop.f32.mrf.mxu0  ;;  %v3297_v51 = vadd.f32 %v3291_v6, %v3208_v54 }
 0x46b   : > { %v3404_v16 = vadd.f32 %v3341_v61, %v3294_v41 }
 0x471   : > { %v3381_v63 = vpop.f32.mrf.mxu2  ;;  %v3401_v13 = vpop.f32.mrf.mxu3 }
 0x472   : > { %v3471_v0 = vpop.f32.mrf.mxu1  ;;  %v3451_v7 = vpop.f32.mrf.mxu0  ;;  %v3406_v23 = vadd.f32 %v3381_v63, %v3296_v52  ;;  %v3407_v55 = vadd.f32 %v3401_v13, %v3297_v51  ;;  %v3756_v13 = vshrl.u32 %v3755_v24, 7  ;;  %v3768_v51 = vld [vmem:[%s5893_s12] sm:$0xff] }
 0x473   : > { %v3514_v57 = vadd.f32 %v3451_v7, %v3404_v16  ;;  %v3515_v8 = vadd.f32 %v3471_v0, %v3405_v47 }
 0x474   : > { %vm3757_vm11 = vcmp.lt.s32.totalorder %v3756_v13, 4 }
 0x479   : > { %v3491_v28 = vpop.f32.mrf.mxu2  ;;  %v3511_v45 = vpop.f32.mrf.mxu3 }
 0x47a   : > { %v3581_v40 = vpop.f32.mrf.mxu1  ;;  %v3516_v38 = vadd.f32 %v3491_v28, %v3406_v23  ;;  %v3517_v60 = vadd.f32 %v3511_v45, %v3407_v55 }
 0x47b   : > { %v3561_v42 = vpop.f32.mrf.mxu0  ;;  %v3625_v48 = vadd.f32 %v3581_v40, %v3515_v8 }
 0x47c   : > { %v3624_v21 = vadd.f32 %v3561_v42, %v3514_v57  ;;  %v3766_v57 = vld [vmem:[%s5892_s11] sm:$0xff] }
 0x481   : > { %v3601_v9 = vpop.f32.mrf.mxu2 }
 0x482   : > { %v3621_v53 = vpop.f32.mrf.mxu3  ;;  %v3691_v10 = vpop.f32.mrf.mxu1  ;;  %v3626_v61 = vadd.f32 %v3601_v9, %v3516_v38 }
 0x483   : > { %v3671_v12 = vpop.f32.mrf.mxu0  ;;  %v3735_v44 = vadd.f32 %v3691_v10, %v3625_v48  ;;  %v3627_v22 = vadd.f32 %v3621_v53, %v3517_v60  ;;  %v3836_v48 = vld [vmem:[%s5895_s14] sm:$0xff] }
 0x484   : > { %v3734_v59 = vadd.f32 %v3671_v12, %v3624_v21 }
 0x485   : > { %v3744_v7 = vadd.f32 %v3741_v31, %v3735_v44 }
 0x486   : > { %v3743_v0 = vadd.f32 %v3741_v31, %v3734_v59 }
 0x487   : > { %v3748_v40 = vmax.f32 %v3744_v7, 0.0 }
 0x488   : > { %v3747_v2 = vmax.f32 %v3743_v0, 0.0 }
 0x489   : > { %v3711_v58 = vpop.f32.mrf.mxu2  ;;  %v3752_v50 = vadd.f32 %v3748_v40, %v5510_v39  ;;  %v3767_v39 = vld [vmem:[%s5892_s11 + $0x8] sm:$0xff] }
 0x48a   : > { %v3736_v29 = vadd.f32 %v3711_v58, %v3626_v61  ;;  %v3731_v56 = vpop.f32.mrf.mxu3  ;;  %v3751_v28 = vadd.f32 %v3747_v2, %v5519_v11 }
 0x48b   : > { %v3737_v20 = vadd.f32 %v3731_v56, %v3627_v22  ;;  %v4638_v22 = vld [vmem:[%s5894_s13 + $0x8] sm:$0xff] }
 0x48c   : > { %v3745_v6 = vadd.f32 %v3741_v31, %v3736_v29 }
 0x48d   : > { %v3746_v5 = vadd.f32 %v3741_v31, %v3737_v20 }
 0x48e   : > { %v3749_v63 = vmax.f32 %v3745_v6, 0.0  ;;  %v4643_v6 = vld [vmem:[%s5894_s13 + $0x10] sm:$0xff] }
 0x48f   : > { %v3750_v42 = vmax.f32 %v3746_v5, 0.0 }
 0x490   : > { %v3753_v45 = vadd.f32 %v3749_v63, %v5522_v3 }
 0x491   : > { %v3754_v41 = vadd.f32 %v3750_v42, %v5531_v32 }
 0x492   : > { %v3760_v43 = vsub.f32 %v3751_v28, %v3753_v45  ;;  %v3758_v46 = vadd.f32 %v3753_v45, %v3751_v28 }
 0x493   : > { %v3761_v35 = vsub.f32 %v3752_v50, %v3754_v41  ;;  %v3759_v25 = vadd.f32 %v3754_v41, %v3752_v50  ;;  %v4646_v41 = vld [vmem:[%s5894_s13 + $0x18] sm:$0xff] }
 0x494   : > { %v3762_v16 = vand.u32 2147483647, %v3760_v43  ;;  %v4649_v43 = vld [vmem:[%s5894_s13 + $0x20] sm:$0xff] }
 0x495   : > { %v3763_v47 = vand.u32 2147483647, %v3761_v35 }
 0x496   : > { %v3764_v54 = vsel %vm3757_vm11, %v3758_v46, %v3762_v16 }
 0x497   : > { %3801 = vmatpush.msra.mxu0 %v3764_v54  ;;  %v3765_v11 = vsel %vm3757_vm11, %v3759_v25, %v3763_v47  ;;  %v4652_v25 = vld [vmem:[%s5894_s13 + $0x28] sm:$0xff]  ;;  %v4655_v47 = vld [vmem:[%s5894_s13 + $0x30] sm:$0xff] }
 0x498   : > { %3824 = vmatpush.msra.mxu1 %v3765_v11  ;;  %4634 = vmatmul.msk.f32.vlgmr.msra.gmra.mxu0 %vm524_vm0, %v3766_v57 }
 0x499   : > { %4636 = vmatmul.msk.f32.vlgmr.msra.gmra.mxu1 %vm524_vm0, %v3766_v57 }
 0x4a0   : > { %4635 = vmatmul.msk.f32.gmra.mxu0 %vm524_vm0, %v3767_v39 }
 0x4a1   : > { %4637 = vmatmul.msk.f32.gmra.mxu1 %vm524_vm0, %v3767_v39 }
 0x4bf   : > { %v3778_v8 = vpop.permute.xlu1 %3777 }
 0x515   : > { %v5740_v3 = vpop.f32.mrf.mxu0 }
 0x516   : > { %v5742_v32 = vpop.f32.mrf.mxu1 }
 0x51d   : > { %v3806_v9 = vpop.f32.mrf.mxu0 }
 0x51e   : > { %v3829_v1 = vpop.f32.mrf.mxu1  ;;  %v3807_v52 = vadd.f32 %v3806_v9, %v3778_v8 }
 0x51f   : > { %v3830_v21 = vadd.f32 %v3829_v1, %v3778_v8 }
 0x520   : > { %v3834_v53 = vmax.f32 %v3807_v52, 0.0 }
 0x521   : > { %v3835_v10 = vmax.f32 %v3830_v21, 0.0  ;;  %v6003_v21 = vld [vmem:[#allocation26_spill] sm:$0xff] }
 0x522   : > { %3854 = vrot.lane.b32.xlu0 %v3834_v53, %s4788_s20 }
 0x523   : > { %3838 = vrot.lane.b32.xlu1 %v3835_v10, %s4787_s18  ;;  %3851 = vrot.lane.b32.xlu2 %v3835_v10, %s4788_s20  ;;  %s4671_s20 = sshll.u32 %s4896_s22, 4  ;;  %s502_s22 = scalar_lea.vmem [#allocation2], %s4450_s23 }
 0x524   : > { %s4370_s25 = scalar_lea.hbm %s5896_s15, %s4671_s20  ;;  %s4742_s23 = scalar_lea.hbm %s5896_s15, 32 }
 0x52a   : > { %3950 = vrot.lane.b32.xlu0 %v3835_v10, %s4789_s21 }
 0x52b   : > { %3953 = vrot.lane.b32.xlu1 %v3834_v53, %s4789_s21  ;;  %3842 = vrot.lane.b32.xlu2 %v3834_v53, %s4787_s18 }
 0x532   : > { %4011 = vrot.lane.b32.xlu0 %v3834_v53, %s4790_s24 }
 0x533   : > { %4113 = vrot.lane.b32.xlu1 %v3834_v53, %s5970_s29  ;;  %4008 = vrot.lane.b32.xlu2 %v3835_v10, %s4790_s24  ;;  %s4372_s24 = sshll.u32 %s502_s22, 4  ;;  %s4373_s24 = int_to_ptr.vmem [resolvable:$true] %s4372_s24 }
 0x53a   : > { %4171 = vrot.lane.b32.xlu0 %v3834_v53, %s4791_s27 }
 0x53b   : > { %4173 = vrot.lane.b32.xlu1 %v3835_v10, %s4791_s27  ;;  %4115 = vrot.lane.b32.xlu2 %v3835_v10, %s5970_s29  ;;  %s4374_s27 = sshll.u32 %s4370_s25, 4  ;;  %s4375_s27 = int_to_ptr.hbm [resolvable:$true] %s4374_s27 }
 0x53c   : > { %s4736_s29 = sshra.s32 %s4375_s27, 4  ;;  %s4737_s29 = int_to_ptr.hbm [resolvable:$true] %s4736_s29 }
 0x53d   : > { %p4743_p0 = scmp.lt.s32.totalorder %s4737_s29, %s5896_s15 }
 0x542   : > { %4231 = vrot.lane.b32.xlu0 %v3835_v10, %s5971_s30 }
 0x543   : > { %4287 = vrot.lane.b32.xlu1 %v3834_v53, %s4794_s16  ;;  %4229 = vrot.lane.b32.xlu2 %v3834_v53, %s5971_s30  ;;  %s4738_s30 = scalar_lea.hbm %s4737_s29, 16 }
 0x544   : > { %p4739_p11 = scmp.ne.s32.totalorder %s4737_s29, %s4738_s30  ;;  %p4744_p1 = scmp.lt.s32.totalorder %s4742_s23, %s4738_s30 }
 0x546   : > { %p4740_p12 = pnand %p4739_p11, %p4913_p5  ;;  %p4745_p2 = por %p4744_p1, %p4743_p0 }
 0x548   : > { %p4741_p13 = pneg %p4740_p12 }
 0x54a   : > { %3772 = vperm.xlu0 %4720, %v3768_v51   ;;  %v4661_v51 = vld [vmem:[%s5894_s13 + $0x40] sm:$0xff]  ;;  %p4746_p3 = pnand %p4745_p2, %p4741_p13 }
 0x54b   : > { %4347 = vperm.xlu1 %4721, %v3836_v48   ;;  %4289 = vrot.lane.b32.xlu2 %v3835_v10, %s4794_s16  ;;  %s4359_s16 = scalar_lea.sflag [#allocation3], %s500_s17 }
 0x57d   : > { %v3852_v12 = vpop.permute.xlu2 %3851 }
 0x585   : > { %v3843_v23 = vpop.permute.xlu2 %3842 }
 0x58d   : > { %v4009_v7 = vpop.permute.xlu2 %4008 }
 0x594   : > { %v3855_v59 = vpop.permute.xlu0 %3854 }
 0x595   : > { %v3839_v55 = vpop.permute.xlu1 %3838  ;;  %v3856_v44 = vsel %vm661_vm1, %v3855_v59, %v3852_v12  ;;  %v3859_v38 = vsel %vm661_vm1, %v3852_v12, %v3855_v59  ;;  %v4116_v2 = vpop.permute.xlu2 %4115 }
 0x596   : > { %v3844_v31 = vsel %vm627_vm2, %v3843_v23, %v3839_v55  ;;  %v3847_v60 = vsel %vm627_vm2, %v3839_v55, %v3843_v23  ;;  %v3860_v61 = vmul.f32 %v3859_v38, %v5038_v36  ;;  %v3861_v0 = vmul.f32 %v3856_v44, %v5026_v27 }
 0x597   : > { %v3848_v58 = vmul.f32 %v3847_v60, %v5040_v37  ;;  %v3849_v29 = vmul.f32 %v3844_v31, %v5024_v26  ;;  %v3850_v26 = vld [vmem:[%s5894_s13] sm:$0xff] }
 0x598   : > { %3882 = vmatpush.msra.mxu2 %v3860_v61  ;;  %3902 = vmatpush.msra.mxu3 %v3861_v0 }
 0x599   : > { %4639 = vmatmul.msk.f32.vlgmr.msra.gmra.mxu2 %vm524_vm0, %v4638_v22  ;;  %4640 = vmatmul.msk.f32.vlgmr.msra.gmra.mxu3 %vm524_vm0, %v4638_v22 }
 0x59a   : > { %3925 = vmatpush.msrb.mxu2 %v3848_v58  ;;  %3945 = vmatpush.msrb.mxu3 %v3849_v29 }
 0x59c   : > { %v3951_v36 = vpop.permute.xlu0 %3950 }
 0x59d   : > { %v3954_v56 = vpop.permute.xlu1 %3953 }
 0x59e   : > { %v3955_v27 = vsel %vm888_vm5, %v3954_v56, %v3951_v36  ;;  %v3958_v20 = vsel %vm888_vm5, %v3951_v36, %v3954_v56 }
 0x59f   : > { %v3959_v24 = vmul.f32 %v3958_v20, %v5086_v62  ;;  %v3960_v37 = vmul.f32 %v3955_v27, %v5063_v49 }
 0x5a1   : > { %3981 = vmatpush.msrb.mxu0 %v3959_v24  ;;  %4001 = vmatpush.msrb.mxu1 %v3960_v37 }
 0x5a2   : > { %4641 = vmatmul.msk.f32.vlgmr.msrb.gmra.mxu2 %vm524_vm0, %v3850_v26  ;;  %4642 = vmatmul.msk.f32.vlgmr.msrb.gmra.mxu3 %vm524_vm0, %v3850_v26 }
 0x5a3   : > { %4086 = vmatpush.msra.mxu0 %v3834_v53  ;;  %4106 = vmatpush.msra.mxu1 %v3835_v10  ;;  %v4658_v10 = vld [vmem:[%s5894_s13 + $0x38] sm:$0xff] }
 0x5a4   : > { %v4012_v62 = vpop.permute.xlu0 %4011  ;;  %4644 = vmatmul.msk.f32.vlgmr.msrb.gmra.mxu0 %vm524_vm0, %v4643_v6  ;;  %4645 = vmatmul.msk.f32.vlgmr.msrb.gmra.mxu1 %vm524_vm0, %v4643_v6 }
 0x5a5   : > { %v4114_v49 = vpop.permute.xlu1 %4113  ;;  %v4013_v40 = vsel %vm1022_vm6, %v4012_v62, %v4009_v7  ;;  %v4016_v5 = vsel %vm1022_vm6, %v4009_v7, %v4012_v62 }
 0x5a6   : > { %v4117_v63 = vsel %vm1252_vm7, %v4114_v49, %v4116_v2  ;;  %v4121_v42 = vsel %vm1252_vm7, %v4116_v2, %v4114_v49  ;;  %v4017_v13 = vmul.f32 %v4016_v5, %v5985_v19  ;;  %v4018_v28 = vmul.f32 %v4013_v40, %v5113_v18  ;;  %v4230_v18 = vpop.permute.xlu2 %4229 }
 0x5a7   : > { %v4122_v45 = vmul.f32 %v4117_v63, %v5987_v14  ;;  %v4123_v50 = vmul.f32 %v4121_v42, %v5988_v33 }
 0x5a8   : > { %4039 = vmatpush.msra.mxu2 %v4017_v13  ;;  %4059 = vmatpush.msra.mxu3 %v4018_v28 }
 0x5aa   : > { %4144 = vmatpush.msrb.mxu2 %v4122_v45  ;;  %4164 = vmatpush.msrb.mxu3 %v4123_v50 }
 0x5ab   : > { %4647 = vmatmul.msk.f32.vlgmr.msra.gmra.mxu2 %vm524_vm0, %v4646_v41  ;;  %4648 = vmatmul.msk.f32.vlgmr.msra.gmra.mxu3 %vm524_vm0, %v4646_v41 }
 0x5ac   : > { %v4172_v19 = vpop.permute.xlu0 %4171  ;;  %4650 = vmatmul.msk.f32.vlgmr.msra.gmra.mxu0 %vm524_vm0, %v4649_v43  ;;  %4651 = vmatmul.msk.f32.vlgmr.msra.gmra.mxu1 %vm524_vm0, %v4649_v43 }
 0x5ad   : > { %v4174_v14 = vpop.permute.xlu1 %4173 }
 0x5ae   : > { %v4175_v33 = vsel %vm1386_vm8, %v4172_v19, %v4174_v14  ;;  %v4179_v35 = vsel %vm1386_vm8, %v4174_v14, %v4172_v19 }
 0x5af   : > { %v4180_v46 = vmul.f32 %v4175_v33, %v5989_v17  ;;  %v4181_v16 = vmul.f32 %v4179_v35, %v5994_v30  ;;  %v4290_v17 = vpop.permute.xlu2 %4289 }
 0x5b1   : > { %4202 = vmatpush.msrb.mxu0 %v4180_v46  ;;  %4222 = vmatpush.msrb.mxu1 %v4181_v16 }
 0x5b3   : > { %4653 = vmatmul.msk.f32.vlgmr.msrb.gmra.mxu2 %vm524_vm0, %v4652_v25  ;;  %4654 = vmatmul.msk.f32.vlgmr.msrb.gmra.mxu3 %vm524_vm0, %v4652_v25 }
 0x5b4   : > { %v4232_v57 = vpop.permute.xlu0 %4231  ;;  %4656 = vmatmul.msk.f32.vlgmr.msrb.gmra.mxu0 %vm524_vm0, %v4655_v47  ;;  %4657 = vmatmul.msk.f32.vlgmr.msrb.gmra.mxu1 %vm524_vm0, %v4655_v47 }
 0x5b5   : > { %v4288_v30 = vpop.permute.xlu1 %4287  ;;  %v4233_v54 = vsel %vm1520_vm9, %v4230_v18, %v4232_v57  ;;  %v4237_v11 = vsel %vm1520_vm9, %v4232_v57, %v4230_v18 }
 0x5b6   : > { %v4291_v39 = vsel %vm1654_vm10, %v4288_v30, %v4290_v17  ;;  %v4295_v8 = vsel %vm1654_vm10, %v4290_v17, %v4288_v30  ;;  %v4238_v9 = vmul.f32 %v4233_v54, %v5997_v34  ;;  %v4239_v1 = vmul.f32 %v4237_v11, %v5998_v4 }
 0x5b7   : > { %v4296_v52 = vmul.f32 %v4291_v39, %v5999_v15  ;;  %v4297_v53 = vmul.f32 %v4295_v8, %v6003_v21 }
 0x5b8   : > { %4260 = vmatpush.msra.mxu2 %v4238_v9  ;;  %4280 = vmatpush.msra.mxu3 %v4239_v1 }
 0x5b9   : > { %4318 = vmatpush.msra.mxu0 %v4296_v52  ;;  %4338 = vmatpush.msra.mxu1 %v4297_v53 }
 0x5bb   : > { %4659 = vmatmul.msk.f32.vlgmr.msra.gmra.mxu2 %vm524_vm0, %v4658_v10  ;;  %4660 = vmatmul.msk.f32.vlgmr.msra.gmra.mxu3 %vm524_vm0, %v4658_v10 }
 0x5bc   : > { %4662 = vmatmul.msk.f32.vlgmr.msra.gmra.mxu0 %vm524_vm0, %v4661_v51  ;;  %4663 = vmatmul.msk.f32.vlgmr.msra.gmra.mxu1 %vm524_vm0, %v4661_v51  ;;  %v3773_v26 = vpop.permute.xlu0 %3772 }
 0x5bd   : > { %v3804_v13 = vadd.f32 %v5740_v3, %v3773_v26  ;;  %v3827_v28 = vadd.f32 %v5742_v32, %v3773_v26  ;;  %v4348_v41 = vpop.permute.xlu1 %4347 }
 0x5bf   : > { %v3832_v19 = vmax.f32 %v3804_v13, 0.0  ;;  %v3833_v14 = vmax.f32 %v3827_v28, 0.0 }
 0x61c   : > { %v3884_v34 = vpop.f32.mrf.mxu2  ;;  %v3904_v4 = vpop.f32.mrf.mxu3 }
 0x621   : > { %v3983_v15 = vpop.f32.mrf.mxu0  ;;  %v4003_v48 = vpop.f32.mrf.mxu1 }
 0x625   : > { %v3927_v12 = vpop.f32.mrf.mxu2  ;;  %v3947_v23 = vpop.f32.mrf.mxu3 }
 0x626   : > { %v3928_v44 = vadd.f32 %v3927_v12, %v3884_v34  ;;  %v3948_v38 = vadd.f32 %v3947_v23, %v3904_v4 }
 0x628   : > { %v4006_v61 = vadd.f32 %v3983_v15, %v3928_v44  ;;  %v4007_v0 = vadd.f32 %v4003_v48, %v3948_v38 }
 0x629   : > { %v4088_v59 = vpop.f32.mrf.mxu0  ;;  %v4108_v55 = vpop.f32.mrf.mxu1 }
 0x62e   : > { %v4041_v31 = vpop.f32.mrf.mxu2  ;;  %v4061_v60 = vpop.f32.mrf.mxu3 }
 0x62f   : > { %v4064_v22 = vadd.f32 %v4041_v31, %v4006_v61  ;;  %v4065_v7 = vadd.f32 %v4061_v60, %v4007_v0 }
 0x631   : > { %v4204_v58 = vpop.f32.mrf.mxu0  ;;  %v4224_v29 = vpop.f32.mrf.mxu1  ;;  %v4111_v27 = vadd.f32 %v4088_v59, %v4064_v22  ;;  %v4112_v20 = vadd.f32 %v4108_v55, %v4065_v7 }
 0x636   : > { %v4146_v36 = vpop.f32.mrf.mxu2  ;;  %v4166_v56 = vpop.f32.mrf.mxu3 }
 0x637   : > { %v4169_v24 = vadd.f32 %v4146_v36, %v4111_v27  ;;  %v4170_v37 = vadd.f32 %v4166_v56, %v4112_v20 }
 0x639   : > { %v4227_v2 = vadd.f32 %v4204_v58, %v4169_v24  ;;  %v4228_v6 = vadd.f32 %v4224_v29, %v4170_v37  ;;  %v4320_v62 = vpop.f32.mrf.mxu0  ;;  %v4340_v49 = vpop.f32.mrf.mxu1 }
 0x63e   : > { %v4262_v40 = vpop.f32.mrf.mxu2  ;;  %v4282_v5 = vpop.f32.mrf.mxu3 }
 0x63f   : > { %v4285_v63 = vadd.f32 %v4262_v40, %v4227_v2  ;;  %v4286_v42 = vadd.f32 %v4282_v5, %v4228_v6 }
 0x641   : > { %v4343_v45 = vadd.f32 %v4320_v62, %v4285_v63  ;;  %v4344_v50 = vadd.f32 %v4340_v49, %v4286_v42 }
 0x643   : > { %v4350_v43 = vadd.f32 %v4348_v41, %v4343_v45  ;;  %v4351_v18 = vadd.f32 %v4348_v41, %v4344_v50 }
 0x645   : > { %v4352_v33 = vmax.f32 %v4350_v43, 0.0  ;;  %v4353_v35 = vmax.f32 %v4351_v18, 0.0 }
 0x647   : > { %v4354_v3 = vadd.f32 %v4352_v33, %v3832_v19  ;;  %v4355_v32 = vadd.f32 %v4353_v35, %v3833_v14 }
 0x649   : > { %4356 = vst [vmem:[%s502_s22] sm:$0xff] %v4354_v3 }
 0x64a   : > { %4357 = vst [vmem:[%s502_s22 + $0x8] sm:$0xff] %v4355_v32 }
 0x64b   : > { %4749 = shalt.err (!%p4746_p3)
}
 0x64c   : > { %4672 = dma.vmem_to_hbm [thread:$0]  (%p4913_p5), %s4373_s24, 256, %s4375_s27, %s4359_s16  }
 0x64d PF: > { %s6004_s17 = sld [smem:[#allocation7_spill]] }
 0x64e   : > { %s6005_s25 = sld [smem:[#allocation5_spill]] }
 0x653   : > { %p4678_p4 = scmp.ge.s32.totalorder %s6004_s17, 2 }
 0x654   : > { %s4386_s0 = sand.u32 1, %s6005_s25  }
 0x655   : > { %p4675_p7 = pnand %p4678_p4, %p4917_p6  ;;  %s4387_s26 = scalar_lea.sflag [#allocation3], %s4386_s0 }
 0x657   : > { %p4676_p8 = pneg %p4675_p7 }
 0x659   : > { %4767 = dma.done.wait (%p4676_p8), %s4387_s26, 256  }
 0x65a   : > { %4769 = vsyncadd (%p4676_p8), %s4387_s26, 4294967040  ;;  %s6007_s21 = sld [smem:[#allocation8_spill]]  ;;  %s6010_s18 = smov %s4776_s19 }
 0x65b   : > { %s6008_s29 = sld [smem:[#allocation6_spill]] }
 0x65c   : > { %s6009_s20 = sld [smem:[#allocation9_spill]] }
 0x660   : > { %p25_p9 = scmp.ge.s32.totalorder %s6007_s21, 4  }
 0x661   : > { %s6011_s19 = smov %s6008_s29 }
 0x662   :  { %27 = sbr.rel (!%p25_p9) target bundleno = 5 (0x5), region = 157 }
 0x667   :  { %4393 = vsyncpa [#allocation3], 1 }
 0x668   :  { %4395 = vsyncpa [#allocation3 + $0x1], 1 }

</bundles_post_ra>
